<compile_context>
chip_gen: v7x
topology: tpu7x:2x2x1
jax: 0.10.0
libtpu: 0.0.40
codegen_flags: <defaults>
</compile_context>

<pallas_src>
import functools

import jax
import jax.numpy as jnp
from jax.experimental import pallas as pl
from jax.experimental.pallas import tpu as pltpu


COMPUTE_DTYPE = jnp.bfloat16   # matmul / activation-storage dtype (fp32 accumulation)


# ---------------------------------------------------------------------------
# VMEM-aware tile sizing.
# ---------------------------------------------------------------------------
def _tpu_vmem_capacity_bytes():
    try:
        return int(pltpu.get_tpu_info().vmem_capacity_bytes)
    except Exception:
        return 64 * 1024 * 1024  # conservative (v7x-sized) fallback


_VMEM_CAP = _tpu_vmem_capacity_bytes()
_VMEM_BUDGET = _VMEM_CAP // 6                                    # per-kernel working set
_VMEM_LIMIT = int(min(_VMEM_CAP * 0.5, 100 * 1024 * 1024))       # scoped-VMEM request


def _compiler_params(dims):
    return pltpu.CompilerParams(dimension_semantics=dims,
                                vmem_limit_bytes=_VMEM_LIMIT)


def _pick_tile_rows(total_rows, bytes_per_row, budget, want_multiple_tiles=False):
    """Largest divisor of total_rows whose (tile+halo) working set fits the budget."""
    divisors = [d for d in range(1, total_rows + 1) if total_rows % d == 0]
    fitting = [d for d in divisors if (d + 2) * bytes_per_row <= budget]
    if not fitting:
        return 1
    tile = max(fitting)
    if want_multiple_tiles and tile == total_rows:
        smaller = [d for d in fitting if d < total_rows]
        if smaller:                      # keep both v7x TensorCores busy when N == 1
            tile = max(smaller)
    return tile


# ---------------------------------------------------------------------------
# Kernel 1: ConvTranspose2d(2, 2, stride=2) as two matmuls over the di taps.
# Output layout (N, H, 2, W, 2*Co): row-major reshape to (N, 2H, 2W, Co) is free.
# ---------------------------------------------------------------------------
def _convT2x2_kernel(x_ref, w_ref, b_ref, o_ref):
    th, W1, Cin = x_ref.shape
    two_co = w_ref.shape[-1]
    x2d = x_ref[...].reshape(th * W1, Cin)                     # bf16
    for di in range(2):
        y = jnp.dot(x2d, w_ref[di], preferred_element_type=jnp.float32)
        y = y + b_ref[...]                                     # fp32 bias
        o_ref[:, di, :, :] = y.reshape(th, W1, two_co).astype(o_ref.dtype)


def conv_transpose2x2(x, w, b, compute_dtype=COMPUTE_DTYPE):
    """x: (N, H, W, Cin) NHWC; w: (Cin, Co, 2, 2) torch layout; b: (Co,)."""
    N, H1, W1, Cin = x.shape
    Co = w.shape[1]
    # (Cin, Co, di, dj) -> (di, Cin, dj, Co) -> (di, Cin, dj*Co + co)
    w_arr = jnp.transpose(w, (2, 0, 3, 1)).reshape(2, Cin, 2 * Co).astype(compute_dtype)
    b_arr = jnp.tile(b, 2).reshape(1, 2 * Co).astype(jnp.float32)

    row_bytes = W1 * (Cin * 2 * 2 + Co * 32) + 64
    th = _pick_tile_rows(H1, row_bytes, _VMEM_BUDGET, want_multiple_tiles=(N == 1))
    nH = H1 // th

    out = pl.pallas_call(
        _convT2x2_kernel,
        grid=(N, nH),
        in_specs=[
            pl.BlockSpec((None, th, W1, Cin), lambda n, i: (n, i, 0, 0)),
            pl.BlockSpec((2, Cin, 2 * Co), lambda n, i: (0, 0, 0)),
            pl.BlockSpec((1, 2 * Co), lambda n, i: (0, 0)),
        ],
        out_specs=pl.BlockSpec((None, th, 2, W1, 2 * Co), lambda n, i: (n, i, 0, 0, 0)),
        out_shape=jax.ShapeDtypeStruct((N, H1, 2, W1, 2 * Co), compute_dtype),
        compiler_params=_compiler_params(("parallel", "parallel")),
    )(x.astype(compute_dtype), w_arr, b_arr)

    # Free (row-major) reshape: (N, H, 2, W, 2*Co) == (N, 2H, 2W, Co) tap-interleaved.
    return out.reshape(N, 2 * H1, 2 * W1, Co)


# ---------------------------------------------------------------------------
# Kernel 2: Conv2d(3x3, pad=1) over one or two concat-fused input streams,
# with an optional fused (GroupNorm affine + ReLU) applied to the input stream,
# emitting the raw conv output tile plus per-tile per-channel sum / sqsum.
# ---------------------------------------------------------------------------
def _make_conv3x3_kernel(num_streams, has_affine, th, Wo, Ho, compute_dtype):
    def kernel(*refs):
        pos = 0
        mains, halos = [], []
        for _ in range(num_streams):
            mains.append(refs[pos])
            halos.append(refs[pos + 1])
            pos += 2
        if has_affine:
            scale_ref, shift_ref = refs[pos], refs[pos + 1]
            pos += 2
        w_refs = list(refs[pos:pos + num_streams])
        pos += num_streams
        b_ref = refs[pos]
        pos += 1
        out_ref, stats_ref = refs[pos], refs[pos + 1]
        Cout = out_ref.shape[-1]

        # Row-validity mask over the (th + 2) haloed rows of this tile.
        row0 = pl.program_id(1) * th
        rows = row0 - 1 + jax.lax.broadcasted_iota(jnp.int32, (th + 2, 1, 1), 0)
        rmask = jnp.logical_and(rows >= 0, rows < Ho)

        acc = jnp.zeros((th * Wo, Cout), jnp.float32)
        for s in range(num_streams):
            halo = halos[s][...]                                   # (2, Wo, Cs)
            xfull = jnp.concatenate([halo[0:1], mains[s][...], halo[1:2]],
                                    axis=0).astype(jnp.float32)    # (th+2, Wo, Cs)
            if has_affine:
                # Previous layer's GroupNorm + ReLU, fused into this conv's input stage.
                xfull = jnp.maximum(xfull * scale_ref[...] + shift_ref[...], 0.0)
            # Zero out-of-image rows AFTER the affine (== zero padding of the activation).
            xfull = jnp.where(rmask, xfull, 0.0).astype(compute_dtype)

            Cs = xfull.shape[-1]
            # Pack the three W-taps into the contraction dim (K = 3*Cs): two shifted
            # copies with the zero column folded in (no unaligned per-tap slices).
            # (pltpu.roll on the XLU is a further option for building these shifts.)
            zcol = jnp.zeros((th + 2, 1, Cs), compute_dtype)
            x_m1 = jnp.concatenate([zcol, xfull[:, :Wo - 1, :]], axis=1)  # x[.., w-1]
            x_p1 = jnp.concatenate([xfull[:, 1:, :], zcol], axis=1)       # x[.., w+1]
            xcat = jnp.concatenate([x_m1, xfull, x_p1], axis=-1)          # (th+2, Wo, 3Cs)
            xcat = xcat.reshape((th + 2) * Wo, 3 * Cs)

            # Three H-taps = three leading-dim slices (8-aligned when Wo % 8 == 0).
            for di in range(3):
                acc = acc + jnp.dot(xcat[di * Wo:(di + th) * Wo], w_refs[s][di],
                                    preferred_element_type=jnp.float32)

        acc = acc + b_ref[...]                                     # fp32 bias
        out_ref[...] = acc.reshape(th, Wo, Cout).astype(out_ref.dtype)

        # Per-channel statistics for GroupNorm (VPU/XLU reductions, no MXU).
        s1 = jnp.sum(acc, axis=0, keepdims=True)                   # (1, Cout)
        s2 = jnp.sum(acc * acc, axis=0, keepdims=True)             # (1, Cout)
        stats_ref[...] = jnp.concatenate([s1, s2], axis=0)[None, :, :]

    return kernel


def _conv_weight_slabs(w, split_sizes, compute_dtype):
    """torch (Cout, Cin_total, 3, 3) -> per-stream slabs (3, 3*Cs, Cout), rows (dj, ci)."""
    wt = jnp.transpose(w, (2, 3, 1, 0))            # (di, dj, ci, co)
    slabs, off = [], 0
    for Cs in split_sizes:
        ws = wt[:, :, off:off + Cs, :]
        slabs.append(ws.reshape(3, 3 * Cs, ws.shape[-1]).astype(compute_dtype))
        off += Cs
    return slabs


def _conv_row_bytes(Wo, cs_list, Cout, elt=2):
    cin = sum(cs_list)
    return Wo * (cin * elt * 2 + cin * elt * 6 + Cout * 4 + Cout * elt * 2) + 128


def conv3x3_stats(streams, w_torch, b, affine=None,
                  compute_dtype=COMPUTE_DTYPE, out_dtype=COMPUTE_DTYPE):
    """3x3 conv (pad=1) over channel-concatenated `streams` (concat fused in-kernel).

    Returns (raw_out (N,H,W,Cout) in out_dtype, stats (N, nH, 2, Cout) fp32).
    `affine=(scale, shift)` applies per-channel scale/shift + ReLU to the (single)
    input stream before convolving (used to fuse the previous GroupNorm + ReLU).
    """
    N, Ho, Wo, _ = streams[0].shape
    cs_list = [s.shape[-1] for s in streams]
    Cout = w_torch.shape[0]
    assert w_torch.shape[1] == sum(cs_list)
    has_affine = affine is not None
    assert not (has_affine and len(streams) > 1)

    slabs = _conv_weight_slabs(w_torch, cs_list, compute_dtype)
    th = _pick_tile_rows(Ho, _conv_row_bytes(Wo, cs_list, Cout), _VMEM_BUDGET,
                         want_multiple_tiles=(N == 1))
    nH = Ho // th

    inputs, in_specs = [], []
    for s_arr, Cs in zip(streams, cs_list):
        x = s_arr.astype(compute_dtype)
        idx = jnp.arange(nH) * th
        top = jnp.clip(idx - 1, 0, Ho - 1)
        bot = jnp.clip(idx + th, 0, Ho - 1)
        # Tiny per-tile halo rows (2 rows per tile); invalid ones are masked in-kernel.
        halo = jnp.stack([x[:, top], x[:, bot]], axis=2).reshape(N, 2 * nH, Wo, Cs)
        inputs += [x, halo]
        in_specs += [
            pl.BlockSpec((None, th, Wo, Cs), lambda n, i: (n, i, 0, 0)),
            pl.BlockSpec((None, 2, Wo, Cs), lambda n, i: (n, i, 0, 0)),
        ]
    if has_affine:
        scale, shift = affine
        C_in = cs_list[0]
        inputs += [scale.reshape(N, 1, C_in).astype(jnp.float32),
                   shift.reshape(N, 1, C_in).astype(jnp.float32)]
        in_specs += [pl.BlockSpec((None, 1, C_in), lambda n, i: (n, 0, 0)),
                     pl.BlockSpec((None, 1, C_in), lambda n, i: (n, 0, 0))]
    for slab in slabs:
        inputs.append(slab)
        in_specs.append(pl.BlockSpec(slab.shape, lambda n, i: (0, 0, 0)))
    inputs.append(b.reshape(1, Cout).astype(jnp.float32))
    in_specs.append(pl.BlockSpec((1, Cout), lambda n, i: (0, 0)))

    kernel = _make_conv3x3_kernel(len(streams), has_affine, th, Wo, Ho, compute_dtype)
    raw, stats = pl.pallas_call(
        kernel,
        grid=(N, nH),
        in_specs=in_specs,
        out_specs=[
            pl.BlockSpec((None, th, Wo, Cout), lambda n, i: (n, i, 0, 0)),
            pl.BlockSpec((None, 1, 2, Cout), lambda n, i: (n, i, 0, 0)),
        ],
        out_shape=[
            jax.ShapeDtypeStruct((N, Ho, Wo, Cout), out_dtype),
            jax.ShapeDtypeStruct((N, nH, 2, Cout), jnp.float32),
        ],
        compiler_params=_compiler_params(("parallel", "parallel")),
    )(*inputs)
    return raw, stats


def _gn_scale_shift(stats, gamma, beta, groups, spatial, eps=1e-5):
    """Per-sample, per-channel GroupNorm scale/shift from per-tile channel stats."""
    s = stats[:, :, 0, :].sum(axis=1)                      # (N, C)
    sq = stats[:, :, 1, :].sum(axis=1)
    N, C = s.shape
    gs = C // groups
    cnt = float(spatial * gs)
    gsum = s.reshape(N, groups, gs).sum(-1)
    gsq = sq.reshape(N, groups, gs).sum(-1)
    mean = gsum / cnt
    var = jnp.maximum(gsq / cnt - mean * mean, 0.0)        # guard tiny cancellation
    inv = jax.lax.rsqrt(var + eps)
    mean_c = jnp.repeat(mean, gs, axis=1)                  # (N, C)
    inv_c = jnp.repeat(inv, gs, axis=1)
    scale = gamma[None, :] * inv_c
    shift = beta[None, :] - mean_c * scale
    return scale, shift


# ---------------------------------------------------------------------------
# Up2d module (bilinear=False branch): params + forward.
# ---------------------------------------------------------------------------
def init_up2d_params(key, in_channels, out_channels):
    half = in_channels // 2
    ks = jax.random.split(key, 10)
    return {
        # ConvTranspose2d(in_channels, in_channels // 2, 2, stride=2)
        "up_w": 0.1 * jax.random.normal(ks[0], (in_channels, half, 2, 2), jnp.float32),
        "up_b": 0.1 * jax.random.normal(ks[1], (half,), jnp.float32),
        # DoubleConv2d(in_channels, out_channels)
        "c1_w": 0.1 * jax.random.normal(ks[2], (out_channels, in_channels, 3, 3), jnp.float32),
        "c1_b": 0.1 * jax.random.normal(ks[3], (out_channels,), jnp.float32),
        "g1_w": 1.0 + 0.1 * jax.random.normal(ks[4], (out_channels,), jnp.float32),
        "g1_b": 0.1 * jax.random.normal(ks[5], (out_channels,), jnp.float32),
        "c2_w": 0.1 * jax.random.normal(ks[6], (out_channels, out_channels, 3, 3), jnp.float32),
        "c2_b": 0.1 * jax.random.normal(ks[7], (out_channels,), jnp.float32),
        "g2_w": 1.0 + 0.1 * jax.random.normal(ks[8], (out_channels,), jnp.float32),
        "g2_b": 0.1 * jax.random.normal(ks[9], (out_channels,), jnp.float32),
    }


def up2d_forward(params, x1, x2, out_channels, eps=1e-5):
    """x1: (N, Cin, H, W), x2: (N, Cin//2, ~2H, ~2W)  (NCHW, as in PyTorch)."""
    cdt = COMPUTE_DTYPE
    # NCHW -> NHWC (cast to bf16 fuses with the layout transpose in XLA).
    x1 = jnp.transpose(x1, (0, 2, 3, 1)).astype(cdt)
    x2 = jnp.transpose(x2, (0, 2, 3, 1)).astype(cdt)

    # 1) transposed-conv upsample; tap interleave is a free reshape of the kernel output.
    x1u = conv_transpose2x2(x1, params["up_w"], params["up_b"], compute_dtype=cdt)

    # 2) F.pad to x2's spatial size -- skipped entirely in the common exact-2x case.
    Ho, Wo = x2.shape[1], x2.shape[2]
    dY, dX = Ho - x1u.shape[1], Wo - x1u.shape[2]
    if dY > 0 or dX > 0:
        # TODO(synk): negative diffs (cropping) not handled, matching the previous version.
        x1u = jnp.pad(x1u, ((0, 0), (dY // 2, dY - dY // 2),
                            (dX // 2, dX - dX // 2), (0, 0)))

    groups = out_channels // 2

    # 3) conv1: channel concat fused (x2 first, then x1u -- torch.cat((x2, x1), dim=1)).
    h1_raw, st1 = conv3x3_stats([x2, x1u], params["c1_w"], params["c1_b"],
                                affine=None, compute_dtype=cdt)
    scale1, shift1 = _gn_scale_shift(st1, params["g1_w"], params["g1_b"],
                                     groups, Ho * Wo, eps)

    # 4) conv2 with GN1 + ReLU fused into its input stage.
    h2_raw, st2 = conv3x3_stats([h1_raw], params["c2_w"], params["c2_b"],
                                affine=(scale1, shift1), compute_dtype=cdt)
    scale2, shift2 = _gn_scale_shift(st2, params["g2_w"], params["g2_b"],
                                     groups, Ho * Wo, eps)

    # 5) final GN2 affine + ReLU: plain elementwise, fused by XLA with the unavoidable
    #    NHWC -> NCHW output transpose (single HBM round-trip).
    out = jnp.maximum(h2_raw.astype(jnp.float32) * scale2[:, None, None, :]
                      + shift2[:, None, None, :], 0.0)
    return jnp.transpose(out, (0, 3, 1, 2))


if __name__ == "__main__":
    key = jax.random.PRNGKey(0)
    k_p, k_x1, k_x2 = jax.random.split(key, 3)

    N, Cin, Cout = 2, 8, 4
    H, W = 8, 8                      # x1 spatial; x2 is 2x in each spatial dim

    params = init_up2d_params(k_p, Cin, Cout)
    x1 = jax.random.normal(k_x1, (N, Cin, H, W), jnp.float32)
    x2 = jax.random.normal(k_x2, (N, Cin // 2, 2 * H, 2 * W), jnp.float32)

    fwd = jax.jit(functools.partial(up2d_forward, out_channels=Cout))
    out = jax.block_until_ready(fwd(params, x1, x2))

    assert out.shape == (N, Cout, 2 * H, 2 * W), out.shape
    assert bool(jnp.all(jnp.isfinite(out)))
    print("KERNEL_OK")
</pallas_src>

<mosaic_0001>
module attributes {stable_mosaic.version = 11 : i64} {
  func.func @_convT2x2_kernel(%arg0: i32, %arg1: i32, %arg2: memref<1x8x8x8xbf16, #tpu.memory_space<vmem>>, %arg3: memref<2x8x8xbf16, #tpu.memory_space<vmem>>, %arg4: memref<1x8xf32, #tpu.memory_space<vmem>>, %arg5: memref<1x8x2x8x8xbf16, #tpu.memory_space<vmem>>) attributes {dimension_semantics = [#tpu.dimension_semantics<parallel>, #tpu.dimension_semantics<parallel>], iteration_bounds = array<i64: 2, 1>, scalar_prefetch = 0 : i64, scratch_operands = 0 : i64, tpu.core_type = #tpu.core_type<tc>, window_params = [{transform_indices = @transform_0, window_bounds = array<i64: 1, 8, 8, 8>}, {pipeline_mode = #tpu.pipeline_mode<synchronous>, transform_indices = @transform_1, window_bounds = array<i64: 2, 8, 8>}, {pipeline_mode = #tpu.pipeline_mode<synchronous>, transform_indices = @transform_2, window_bounds = array<i64: 1, 8>}, {transform_indices = @transform_3, window_bounds = array<i64: 1, 8, 2, 8, 8>}]} {
    %c0 = arith.constant 0 : index
    %c0_0 = arith.constant 0 : index
    %c0_1 = arith.constant 0 : index
    %c0_2 = arith.constant 0 : index
    %0 = vector.load %arg2[%c0, %c0_0, %c0_1, %c0_2] : memref<1x8x8x8xbf16, #tpu.memory_space<vmem>>, vector<1x8x8x8xbf16>
    %1 = vector.shape_cast %0 : vector<1x8x8x8xbf16> to vector<8x8x8xbf16>
    %2 = vector.shape_cast %1 : vector<8x8x8xbf16> to vector<64x8xbf16>
    %c0_3 = arith.constant 0 : index
    %c0_4 = arith.constant 0 : index
    %c0_5 = arith.constant 0 : index
    %3 = vector.load %arg3[%c0_3, %c0_4, %c0_5] : memref<2x8x8xbf16, #tpu.memory_space<vmem>>, vector<1x8x8xbf16>
    %4 = vector.shape_cast %3 : vector<1x8x8xbf16> to vector<8x8xbf16>
    %cst = arith.constant dense<0.000000e+00> : vector<64x8xf32>
    %5 = tpu.matmul %2, %4, %cst {dimension_numbers = #tpu.dot_dimension_numbers<[1], [0], [0], [1], [0, 0, 1, 1], [], []>} : vector<64x8xbf16>, vector<8x8xbf16>, vector<64x8xf32> -> vector<64x8xf32>
    %c0_6 = arith.constant 0 : index
    %c0_7 = arith.constant 0 : index
    %6 = vector.load %arg4[%c0_6, %c0_7] : memref<1x8xf32, #tpu.memory_space<vmem>>, vector<1x8xf32>
    %7 = vector.broadcast %6 : vector<1x8xf32> to vector<64x8xf32>
    %8 = arith.addf %5, %7 : vector<64x8xf32>
    %9 = vector.shape_cast %8 : vector<64x8xf32> to vector<8x8x8xf32>
    %10 = arith.truncf %9 : vector<8x8x8xf32> to vector<8x8x8xbf16>
    %c0_8 = arith.constant 0 : index
    %c0_9 = arith.constant 0 : index
    %c0_10 = arith.constant 0 : index
    %c0_11 = arith.constant 0 : index
    %c0_12 = arith.constant 0 : index
    %11 = vector.load %arg5[%c0_8, %c0_9, %c0_10, %c0_11, %c0_12] : memref<1x8x2x8x8xbf16, #tpu.memory_space<vmem>>, vector<1x8x1x8x8xbf16>
    %12 = vector.shape_cast %11 : vector<1x8x1x8x8xbf16> to vector<8x8x8xbf16>
    %13 = vector.shape_cast %10 : vector<8x8x8xbf16> to vector<1x8x1x8x8xbf16>
    tpu.vector_store %arg5[%c0_8, %c0_9, %c0_10, %c0_11, %c0_12], %13 {strides = array<i32>} : memref<1x8x2x8x8xbf16, #tpu.memory_space<vmem>>, vector<1x8x1x8x8xbf16>,
    %c1 = arith.constant 1 : index
    %c0_13 = arith.constant 0 : index
    %c0_14 = arith.constant 0 : index
    %14 = vector.load %arg3[%c1, %c0_13, %c0_14] : memref<2x8x8xbf16, #tpu.memory_space<vmem>>, vector<1x8x8xbf16>
    %15 = vector.shape_cast %14 : vector<1x8x8xbf16> to vector<8x8xbf16>
    %cst_15 = arith.constant dense<0.000000e+00> : vector<64x8xf32>
    %16 = tpu.matmul %2, %15, %cst_15 {dimension_numbers = #tpu.dot_dimension_numbers<[1], [0], [0], [1], [0, 0, 1, 1], [], []>} : vector<64x8xbf16>, vector<8x8xbf16>, vector<64x8xf32> -> vector<64x8xf32>
    %c0_16 = arith.constant 0 : index
    %c0_17 = arith.constant 0 : index
    %17 = vector.load %arg4[%c0_16, %c0_17] : memref<1x8xf32, #tpu.memory_space<vmem>>, vector<1x8xf32>
    %18 = vector.broadcast %17 : vector<1x8xf32> to vector<64x8xf32>
    %19 = arith.addf %16, %18 : vector<64x8xf32>
    %20 = vector.shape_cast %19 : vector<64x8xf32> to vector<8x8x8xf32>
    %21 = arith.truncf %20 : vector<8x8x8xf32> to vector<8x8x8xbf16>
    %c0_18 = arith.constant 0 : index
    %c0_19 = arith.constant 0 : index
    %c1_20 = arith.constant 1 : index
    %c0_21 = arith.constant 0 : index
    %c0_22 = arith.constant 0 : index
    %22 = vector.load %arg5[%c0_18, %c0_19, %c1_20, %c0_21, %c0_22] : memref<1x8x2x8x8xbf16, #tpu.memory_space<vmem>>, vector<1x8x1x8x8xbf16>
    %23 = vector.shape_cast %22 : vector<1x8x1x8x8xbf16> to vector<8x8x8xbf16>
    %24 = vector.shape_cast %21 : vector<8x8x8xbf16> to vector<1x8x1x8x8xbf16>
    tpu.vector_store %arg5[%c0_18, %c0_19, %c1_20, %c0_21, %c0_22], %24 {strides = array<i32>} : memref<1x8x2x8x8xbf16, #tpu.memory_space<vmem>>, vector<1x8x1x8x8xbf16>,
    return
  }
  func.func @transform_0(%arg0: i32, %arg1: i32) -> (i32, i32, i32, i32) {
    %c0_i32 = arith.constant 0 : i32
    %c0_i32_0 = arith.constant 0 : i32
    %c0_i32_1 = arith.constant 0 : i32
    return %arg0, %arg1, %c0_i32, %c0_i32_0 : i32, i32, i32, i32
  }
  func.func @transform_1(%arg0: i32, %arg1: i32) -> (i32, i32, i32) {
    %c0_i32 = arith.constant 0 : i32
    %c0_i32_0 = arith.constant 0 : i32
    %c0_i32_1 = arith.constant 0 : i32
    %c0_i32_2 = arith.constant 0 : i32
    return %c0_i32, %c0_i32_0, %c0_i32_1 : i32, i32, i32
  }
  func.func @transform_2(%arg0: i32, %arg1: i32) -> (i32, i32) {
    %c0_i32 = arith.constant 0 : i32
    %c0_i32_0 = arith.constant 0 : i32
    %c0_i32_1 = arith.constant 0 : i32
    return %c0_i32, %c0_i32_0 : i32, i32
  }
  func.func @transform_3(%arg0: i32, %arg1: i32) -> (i32, i32, i32, i32, i32) {
    %c0_i32 = arith.constant 0 : i32
    %c0_i32_0 = arith.constant 0 : i32
    %c0_i32_1 = arith.constant 0 : i32
    %c0_i32_2 = arith.constant 0 : i32
    return %arg0, %arg1, %c0_i32, %c0_i32_0, %c0_i32_1 : i32, i32, i32, i32, i32
  }
}

module attributes {stable_mosaic.version = 11 : i64} {
  func.func @kernel(%arg0: i32, %arg1: i32, %arg2: memref<1x16x16x4xbf16, #tpu.memory_space<vmem>>, %arg3: memref<1x2x16x4xbf16, #tpu.memory_space<vmem>>, %arg4: memref<1x16x16x4xbf16, #tpu.memory_space<vmem>>, %arg5: memref<1x2x16x4xbf16, #tpu.memory_space<vmem>>, %arg6: memref<3x12x4xbf16, #tpu.memory_space<vmem>>, %arg7: memref<3x12x4xbf16, #tpu.memory_space<vmem>>, %arg8: memref<1x4xf32, #tpu.memory_space<vmem>>, %arg9: memref<1x16x16x4xbf16, #tpu.memory_space<vmem>>, %arg10: memref<1x1x2x4xf32, #tpu.memory_space<vmem>>) attributes {dimension_semantics = [#tpu.dimension_semantics<parallel>, #tpu.dimension_semantics<parallel>], iteration_bounds = array<i64: 2, 1>, scalar_prefetch = 0 : i64, scratch_operands = 0 : i64, tpu.core_type = #tpu.core_type<tc>, window_params = [{transform_indices = @transform_0, window_bounds = array<i64: 1, 16, 16, 4>}, {transform_indices = @transform_1, window_bounds = array<i64: 1, 2, 16, 4>}, {transform_indices = @transform_2, window_bounds = array<i64: 1, 16, 16, 4>}, {transform_indices = @transform_3, window_bounds = array<i64: 1, 2, 16, 4>}, {pipeline_mode = #tpu.pipeline_mode<synchronous>, transform_indices = @transform_4, window_bounds = array<i64: 3, 12, 4>}, {pipeline_mode = #tpu.pipeline_mode<synchronous>, transform_indices = @transform_5, window_bounds = array<i64: 3, 12, 4>}, {pipeline_mode = #tpu.pipeline_mode<synchronous>, transform_indices = @transform_6, window_bounds = array<i64: 1, 4>}, {transform_indices = @transform_7, window_bounds = array<i64: 1, 16, 16, 4>}, {transform_indices = @transform_8, window_bounds = array<i64: 1, 1, 2, 4>}]} {
    %c16_i32 = arith.constant 16 : i32
    %0 = arith.muli %arg1, %c16_i32 : i32
    %c1_i32 = arith.constant 1 : i32
    %1 = arith.subi %0, %c1_i32 : i32
    %2 = tpu.iota {dimensions = array<i32: 0>} : vector<18x1x1xi32>
    %3 = vector.broadcast %1 : i32 to vector<18x1x1xi32>
    %4 = arith.addi %3, %2 : vector<18x1x1xi32>
    %c0_i32 = arith.constant 0 : i32
    %5 = vector.broadcast %c0_i32 : i32 to vector<18x1x1xi32>
    %6 = arith.cmpi sge, %4, %5 : vector<18x1x1xi32>
    %c16_i32_0 = arith.constant 16 : i32
    %7 = vector.broadcast %c16_i32_0 : i32 to vector<18x1x1xi32>
    %8 = arith.cmpi slt, %4, %7 : vector<18x1x1xi32>
    %9 = arith.andi %6, %8 : vector<18x1x1xi1>
    %cst = arith.constant 0.000000e+00 : f32
    %10 = vector.broadcast %cst : f32 to vector<256x4xf32>
    %c0 = arith.constant 0 : index
    %c0_1 = arith.constant 0 : index
    %c0_2 = arith.constant 0 : index
    %c0_3 = arith.constant 0 : index
    %11 = vector.load %arg3[%c0, %c0_1, %c0_2, %c0_3] : memref<1x2x16x4xbf16, #tpu.memory_space<vmem>>, vector<1x2x16x4xbf16>
    %12 = vector.shape_cast %11 : vector<1x2x16x4xbf16> to vector<2x16x4xbf16>
    %13 = vector.extract_strided_slice %12 {offsets = [0, 0, 0], sizes = [1, 16, 4], strides = [1, 1, 1]} : vector<2x16x4xbf16> to vector<1x16x4xbf16>
    %c0_4 = arith.constant 0 : index
    %c0_5 = arith.constant 0 : index
    %c0_6 = arith.constant 0 : index
    %c0_7 = arith.constant 0 : index
    %14 = vector.load %arg2[%c0_4, %c0_5, %c0_6, %c0_7] : memref<1x16x16x4xbf16, #tpu.memory_space<vmem>>, vector<1x16x16x4xbf16>
    %15 = vector.shape_cast %14 : vector<1x16x16x4xbf16> to vector<16x16x4xbf16>
    %16 = vector.extract_strided_slice %12 {offsets = [1, 0, 0], sizes = [1, 16, 4], strides = [1, 1, 1]} : vector<2x16x4xbf16> to vector<1x16x4xbf16>
    %17 = tpu.concatenate %13, %15, %16 in 0 : vector<1x16x4xbf16>, vector<16x16x4xbf16>, vector<1x16x4xbf16> -> vector<18x16x4xbf16>
    %18 = arith.extf %17 : vector<18x16x4xbf16> to vector<18x16x4xf32>
    %cst_8 = arith.constant 0.000000e+00 : f32
    %19 = vector.shape_cast %9 : vector<18x1x1xi1> to vector<18x1x1xi1>
    %20 = vector.broadcast %19 : vector<18x1x1xi1> to vector<18x16x4xi1>
    %21 = vector.broadcast %cst_8 : f32 to vector<18x16x4xf32>
    %22 = arith.select %20, %18, %21 : vector<18x16x4xi1>, vector<18x16x4xf32>
    %23 = arith.truncf %22 : vector<18x16x4xf32> to vector<18x16x4xbf16>
    %cst_9 = arith.constant 0.000000e+00 : bf16
    %24 = vector.broadcast %cst_9 : bf16 to vector<18x1x4xbf16>
    %25 = vector.extract_strided_slice %23 {offsets = [0, 0, 0], sizes = [18, 15, 4], strides = [1, 1, 1]} : vector<18x16x4xbf16> to vector<18x15x4xbf16>
    %26 = tpu.concatenate %24, %25 in 1 : vector<18x1x4xbf16>, vector<18x15x4xbf16> -> vector<18x16x4xbf16>
    %27 = vector.extract_strided_slice %23 {offsets = [0, 1, 0], sizes = [18, 15, 4], strides = [1, 1, 1]} : vector<18x16x4xbf16> to vector<18x15x4xbf16>
    %28 = tpu.concatenate %27, %24 in 1 : vector<18x15x4xbf16>, vector<18x1x4xbf16> -> vector<18x16x4xbf16>
    %29 = tpu.concatenate %26, %23, %28 in 2 : vector<18x16x4xbf16>, vector<18x16x4xbf16>, vector<18x16x4xbf16> -> vector<18x16x12xbf16>
    %30 = vector.shape_cast %29 : vector<18x16x12xbf16> to vector<288x12xbf16>
    %31 = vector.extract_strided_slice %30 {offsets = [0, 0], sizes = [256, 12], strides = [1, 1]} : vector<288x12xbf16> to vector<256x12xbf16>
    %c0_10 = arith.constant 0 : index
    %c0_11 = arith.constant 0 : index
    %c0_12 = arith.constant 0 : index
    %32 = vector.load %arg6[%c0_10, %c0_11, %c0_12] : memref<3x12x4xbf16, #tpu.memory_space<vmem>>, vector<1x12x4xbf16>
    %33 = vector.shape_cast %32 : vector<1x12x4xbf16> to vector<12x4xbf16>
    %cst_13 = arith.constant dense<0.000000e+00> : vector<256x4xf32>
    %34 = tpu.matmul %31, %33, %cst_13 {dimension_numbers = #tpu.dot_dimension_numbers<[1], [0], [0], [1], [0, 0, 1, 1], [], []>} : vector<256x12xbf16>, vector<12x4xbf16>, vector<256x4xf32> -> vector<256x4xf32>
    %35 = arith.addf %10, %34 : vector<256x4xf32>
    %36 = vector.extract_strided_slice %30 {offsets = [16, 0], sizes = [256, 12], strides = [1, 1]} : vector<288x12xbf16> to vector<256x12xbf16>
    %c1 = arith.constant 1 : index
    %c0_14 = arith.constant 0 : index
    %c0_15 = arith.constant 0 : index
    %37 = vector.load %arg6[%c1, %c0_14, %c0_15] : memref<3x12x4xbf16, #tpu.memory_space<vmem>>, vector<1x12x4xbf16>
    %38 = vector.shape_cast %37 : vector<1x12x4xbf16> to vector<12x4xbf16>
    %cst_16 = arith.constant dense<0.000000e+00> : vector<256x4xf32>
    %39 = tpu.matmul %36, %38, %cst_16 {dimension_numbers = #tpu.dot_dimension_numbers<[1], [0], [0], [1], [0, 0, 1, 1], [], []>} : vector<256x12xbf16>, vector<12x4xbf16>, vector<256x4xf32> -> vector<256x4xf32>
    %40 = arith.addf %35, %39 : vector<256x4xf32>
    %41 = vector.extract_strided_slice %30 {offsets = [32, 0], sizes = [256, 12], strides = [1, 1]} : vector<288x12xbf16> to vector<256x12xbf16>
    %c2 = arith.constant 2 : index
    %c0_17 = arith.constant 0 : index
    %c0_18 = arith.constant 0 : index
    %42 = vector.load %arg6[%c2, %c0_17, %c0_18] : memref<3x12x4xbf16, #tpu.memory_space<vmem>>, vector<1x12x4xbf16>
    %43 = vector.shape_cast %42 : vector<1x12x4xbf16> to vector<12x4xbf16>
    %cst_19 = arith.constant dense<0.000000e+00> : vector<256x4xf32>
    %44 = tpu.matmul %41, %43, %cst_19 {dimension_numbers = #tpu.dot_dimension_numbers<[1], [0], [0], [1], [0, 0, 1, 1], [], []>} : vector<256x12xbf16>, vector<12x4xbf16>, vector<256x4xf32> -> vector<256x4xf32>
    %45 = arith.addf %40, %44 : vector<256x4xf32>
    %c0_20 = arith.constant 0 : index
    %c0_21 = arith.constant 0 : index
    %c0_22 = arith.constant 0 : index
    %c0_23 = arith.constant 0 : index
    %46 = vector.load %arg5[%c0_20, %c0_21, %c0_22, %c0_23] : memref<1x2x16x4xbf16, #tpu.memory_space<vmem>>, vector<1x2x16x4xbf16>
    %47 = vector.shape_cast %46 : vector<1x2x16x4xbf16> to vector<2x16x4xbf16>
    %48 = vector.extract_strided_slice %47 {offsets = [0, 0, 0], sizes = [1, 16, 4], strides = [1, 1, 1]} : vector<2x16x4xbf16> to vector<1x16x4xbf16>
    %c0_24 = arith.constant 0 : index
    %c0_25 = arith.constant 0 : index
    %c0_26 = arith.constant 0 : index
    %c0_27 = arith.constant 0 : index
    %49 = vector.load %arg4[%c0_24, %c0_25, %c0_26, %c0_27] : memref<1x16x16x4xbf16, #tpu.memory_space<vmem>>, vector<1x16x16x4xbf16>
    %50 = vector.shape_cast %49 : vector<1x16x16x4xbf16> to vector<16x16x4xbf16>
    %51 = vector.extract_strided_slice %47 {offsets = [1, 0, 0], sizes = [1, 16, 4], strides = [1, 1, 1]} : vector<2x16x4xbf16> to vector<1x16x4xbf16>
    %52 = tpu.concatenate %48, %50, %51 in 0 : vector<1x16x4xbf16>, vector<16x16x4xbf16>, vector<1x16x4xbf16> -> vector<18x16x4xbf16>
    %53 = arith.extf %52 : vector<18x16x4xbf16> to vector<18x16x4xf32>
    %cst_28 = arith.constant 0.000000e+00 : f32
    %54 = vector.shape_cast %9 : vector<18x1x1xi1> to vector<18x1x1xi1>
    %55 = vector.broadcast %54 : vector<18x1x1xi1> to vector<18x16x4xi1>
    %56 = vector.broadcast %cst_28 : f32 to vector<18x16x4xf32>
    %57 = arith.select %55, %53, %56 : vector<18x16x4xi1>, vector<18x16x4xf32>
    %58 = arith.truncf %57 : vector<18x16x4xf32> to vector<18x16x4xbf16>
    %cst_29 = arith.constant 0.000000e+00 : bf16
    %59 = vector.broadcast %cst_29 : bf16 to vector<18x1x4xbf16>
    %60 = vector.extract_strided_slice %58 {offsets = [0, 0, 0], sizes = [18, 15, 4], strides = [1, 1, 1]} : vector<18x16x4xbf16> to vector<18x15x4xbf16>
    %61 = tpu.concatenate %59, %60 in 1 : vector<18x1x4xbf16>, vector<18x15x4xbf16> -> vector<18x16x4xbf16>
    %62 = vector.extract_strided_slice %58 {offsets = [0, 1, 0], sizes = [18, 15, 4], strides = [1, 1, 1]} : vector<18x16x4xbf16> to vector<18x15x4xbf16>
    %63 = tpu.concatenate %62, %59 in 1 : vector<18x15x4xbf16>, vector<18x1x4xbf16> -> vector<18x16x4xbf16>
    %64 = tpu.concatenate %61, %58, %63 in 2 : vector<18x16x4xbf16>, vector<18x16x4xbf16>, vector<18x16x4xbf16> -> vector<18x16x12xbf16>
    %65 = vector.shape_cast %64 : vector<18x16x12xbf16> to vector<288x12xbf16>
    %66 = vector.extract_strided_slice %65 {offsets = [0, 0], sizes = [256, 12], strides = [1, 1]} : vector<288x12xbf16> to vector<256x12xbf16>
    %c0_30 = arith.constant 0 : index
    %c0_31 = arith.constant 0 : index
    %c0_32 = arith.constant 0 : index
    %67 = vector.load %arg7[%c0_30, %c0_31, %c0_32] : memref<3x12x4xbf16, #tpu.memory_space<vmem>>, vector<1x12x4xbf16>
    %68 = vector.shape_cast %67 : vector<1x12x4xbf16> to vector<12x4xbf16>
    %cst_33 = arith.constant dense<0.000000e+00> : vector<256x4xf32>
    %69 = tpu.matmul %66, %68, %cst_33 {dimension_numbers = #tpu.dot_dimension_numbers<[1], [0], [0], [1], [0, 0, 1, 1], [], []>} : vector<256x12xbf16>, vector<12x4xbf16>, vector<256x4xf32> -> vector<256x4xf32>
    %70 = arith.addf %45, %69 : vector<256x4xf32>
    %71 = vector.extract_strided_slice %65 {offsets = [16, 0], sizes = [256, 12], strides = [1, 1]} : vector<288x12xbf16> to vector<256x12xbf16>
    %c1_34 = arith.constant 1 : index
    %c0_35 = arith.constant 0 : index
    %c0_36 = arith.constant 0 : index
    %72 = vector.load %arg7[%c1_34, %c0_35, %c0_36] : memref<3x12x4xbf16, #tpu.memory_space<vmem>>, vector<1x12x4xbf16>
    %73 = vector.shape_cast %72 : vector<1x12x4xbf16> to vector<12x4xbf16>
    %cst_37 = arith.constant dense<0.000000e+00> : vector<256x4xf32>
    %74 = tpu.matmul %71, %73, %cst_37 {dimension_numbers = #tpu.dot_dimension_numbers<[1], [0], [0], [1], [0, 0, 1, 1], [], []>} : vector<256x12xbf16>, vector<12x4xbf16>, vector<256x4xf32> -> vector<256x4xf32>
    %75 = arith.addf %70, %74 : vector<256x4xf32>
    %76 = vector.extract_strided_slice %65 {offsets = [32, 0], sizes = [256, 12], strides = [1, 1]} : vector<288x12xbf16> to vector<256x12xbf16>
    %c2_38 = arith.constant 2 : index
    %c0_39 = arith.constant 0 : index
    %c0_40 = arith.constant 0 : index
    %77 = vector.load %arg7[%c2_38, %c0_39, %c0_40] : memref<3x12x4xbf16, #tpu.memory_space<vmem>>, vector<1x12x4xbf16>
    %78 = vector.shape_cast %77 : vector<1x12x4xbf16> to vector<12x4xbf16>
    %cst_41 = arith.constant dense<0.000000e+00> : vector<256x4xf32>
    %79 = tpu.matmul %76, %78, %cst_41 {dimension_numbers = #tpu.dot_dimension_numbers<[1], [0], [0], [1], [0, 0, 1, 1], [], []>} : vector<256x12xbf16>, vector<12x4xbf16>, vector<256x4xf32> -> vector<256x4xf32>
    %80 = arith.addf %75, %79 : vector<256x4xf32>
    %c0_42 = arith.constant 0 : index
    %c0_43 = arith.constant 0 : index
    %81 = vector.load %arg8[%c0_42, %c0_43] : memref<1x4xf32, #tpu.memory_space<vmem>>, vector<1x4xf32>
    %82 = vector.broadcast %81 : vector<1x4xf32> to vector<256x4xf32>
    %83 = arith.addf %80, %82 : vector<256x4xf32>
    %84 = vector.shape_cast %83 : vector<256x4xf32> to vector<16x16x4xf32>
    %85 = arith.truncf %84 : vector<16x16x4xf32> to vector<16x16x4xbf16>
    %c0_44 = arith.constant 0 : index
    %c0_45 = arith.constant 0 : index
    %c0_46 = arith.constant 0 : index
    %c0_47 = arith.constant 0 : index
    %86 = vector.load %arg9[%c0_44, %c0_45, %c0_46, %c0_47] : memref<1x16x16x4xbf16, #tpu.memory_space<vmem>>, vector<1x16x16x4xbf16>
    %87 = vector.shape_cast %86 : vector<1x16x16x4xbf16> to vector<16x16x4xbf16>
    %88 = vector.shape_cast %85 : vector<16x16x4xbf16> to vector<1x16x16x4xbf16>
    tpu.vector_store %arg9[%c0_44, %c0_45, %c0_46, %c0_47], %88 {strides = array<i32>} : memref<1x16x16x4xbf16, #tpu.memory_space<vmem>>, vector<1x16x16x4xbf16>,
    %cst_48 = arith.constant dense<0.000000e+00> : vector<4xf32>
    %89 = vector.multi_reduction <add>, %83, %cst_48 [0] : vector<256x4xf32> to vector<4xf32>
    %90 = vector.shape_cast %89 : vector<4xf32> to vector<1x4xf32>
    %91 = arith.mulf %83, %83 : vector<256x4xf32>
    %cst_49 = arith.constant dense<0.000000e+00> : vector<4xf32>
    %92 = vector.multi_reduction <add>, %91, %cst_49 [0] : vector<256x4xf32> to vector<4xf32>
    %93 = vector.shape_cast %92 : vector<4xf32> to vector<1x4xf32>
    %94 = tpu.concatenate %90, %93 in 0 : vector<1x4xf32>, vector<1x4xf32> -> vector<2x4xf32>
    %95 = vector.shape_cast %94 : vector<2x4xf32> to vector<1x2x4xf32>
    %c0_50 = arith.constant 0 : index
    %c0_51 = arith.constant 0 : index
    %c0_52 = arith.constant 0 : index
    %c0_53 = arith.constant 0 : index
    %96 = vector.load %arg10[%c0_50, %c0_51, %c0_52, %c0_53] : memref<1x1x2x4xf32, #tpu.memory_space<vmem>>, vector<1x1x2x4xf32>
    %97 = vector.shape_cast %96 : vector<1x1x2x4xf32> to vector<1x2x4xf32>
    %98 = vector.shape_cast %95 : vector<1x2x4xf32> to vector<1x1x2x4xf32>
    tpu.vector_store %arg10[%c0_50, %c0_51, %c0_52, %c0_53], %98 {strides = array<i32>} : memref<1x1x2x4xf32, #tpu.memory_space<vmem>>, vector<1x1x2x4xf32>,
    return
  }
  func.func @transform_0(%arg0: i32, %arg1: i32) -> (i32, i32, i32, i32) {
    %c0_i32 = arith.constant 0 : i32
    %c0_i32_0 = arith.constant 0 : i32
    %c0_i32_1 = arith.constant 0 : i32
    return %arg0, %arg1, %c0_i32, %c0_i32_0 : i32, i32, i32, i32
  }
  func.func @transform_1(%arg0: i32, %arg1: i32) -> (i32, i32, i32, i32) {
    %c0_i32 = arith.constant 0 : i32
    %c0_i32_0 = arith.constant 0 : i32
    %c0_i32_1 = arith.constant 0 : i32
    return %arg0, %arg1, %c0_i32, %c0_i32_0 : i32, i32, i32, i32
  }
  func.func @transform_2(%arg0: i32, %arg1: i32) -> (i32, i32, i32, i32) {
    %c0_i32 = arith.constant 0 : i32
    %c0_i32_0 = arith.constant 0 : i32
    %c0_i32_1 = arith.constant 0 : i32
    return %arg0, %arg1, %c0_i32, %c0_i32_0 : i32, i32, i32, i32
  }
  func.func @transform_3(%arg0: i32, %arg1: i32) -> (i32, i32, i32, i32) {
    %c0_i32 = arith.constant 0 : i32
    %c0_i32_0 = arith.constant 0 : i32
    %c0_i32_1 = arith.constant 0 : i32
    return %arg0, %arg1, %c0_i32, %c0_i32_0 : i32, i32, i32, i32
  }
  func.func @transform_4(%arg0: i32, %arg1: i32) -> (i32, i32, i32) {
    %c0_i32 = arith.constant 0 : i32
    %c0_i32_0 = arith.constant 0 : i32
    %c0_i32_1 = arith.constant 0 : i32
    %c0_i32_2 = arith.constant 0 : i32
    return %c0_i32, %c0_i32_0, %c0_i32_1 : i32, i32, i32
  }
  func.func @transform_5(%arg0: i32, %arg1: i32) -> (i32, i32, i32) {
    %c0_i32 = arith.constant 0 : i32
    %c0_i32_0 = arith.constant 0 : i32
    %c0_i32_1 = arith.constant 0 : i32
    %c0_i32_2 = arith.constant 0 : i32
    return %c0_i32, %c0_i32_0, %c0_i32_1 : i32, i32, i32
  }
  func.func @transform_6(%arg0: i32, %arg1: i32) -> (i32, i32) {
    %c0_i32 = arith.constant 0 : i32
    %c0_i32_0 = arith.constant 0 : i32
    %c0_i32_1 = arith.constant 0 : i32
    return %c0_i32, %c0_i32_0 : i32, i32
  }
  func.func @transform_7(%arg0: i32, %arg1: i32) -> (i32, i32, i32, i32) {
    %c0_i32 = arith.constant 0 : i32
    %c0_i32_0 = arith.constant 0 : i32
    %c0_i32_1 = arith.constant 0 : i32
    return %arg0, %arg1, %c0_i32, %c0_i32_0 : i32, i32, i32, i32
  }
  func.func @transform_8(%arg0: i32, %arg1: i32) -> (i32, i32, i32, i32) {
    %c0_i32 = arith.constant 0 : i32
    %c0_i32_0 = arith.constant 0 : i32
    %c0_i32_1 = arith.constant 0 : i32
    return %arg0, %arg1, %c0_i32, %c0_i32_0 : i32, i32, i32, i32
  }
}

module attributes {stable_mosaic.version = 11 : i64} {
  func.func @kernel(%arg0: i32, %arg1: i32, %arg2: memref<1x16x16x4xbf16, #tpu.memory_space<vmem>>, %arg3: memref<1x2x16x4xbf16, #tpu.memory_space<vmem>>, %arg4: memref<1x1x4xf32, #tpu.memory_space<vmem>>, %arg5: memref<1x1x4xf32, #tpu.memory_space<vmem>>, %arg6: memref<3x12x4xbf16, #tpu.memory_space<vmem>>, %arg7: memref<1x4xf32, #tpu.memory_space<vmem>>, %arg8: memref<1x16x16x4xbf16, #tpu.memory_space<vmem>>, %arg9: memref<1x1x2x4xf32, #tpu.memory_space<vmem>>) attributes {dimension_semantics = [#tpu.dimension_semantics<parallel>, #tpu.dimension_semantics<parallel>], iteration_bounds = array<i64: 2, 1>, scalar_prefetch = 0 : i64, scratch_operands = 0 : i64, tpu.core_type = #tpu.core_type<tc>, window_params = [{transform_indices = @transform_0, window_bounds = array<i64: 1, 16, 16, 4>}, {transform_indices = @transform_1, window_bounds = array<i64: 1, 2, 16, 4>}, {transform_indices = @transform_2, window_bounds = array<i64: 1, 1, 4>}, {transform_indices = @transform_3, window_bounds = array<i64: 1, 1, 4>}, {pipeline_mode = #tpu.pipeline_mode<synchronous>, transform_indices = @transform_4, window_bounds = array<i64: 3, 12, 4>}, {pipeline_mode = #tpu.pipeline_mode<synchronous>, transform_indices = @transform_5, window_bounds = array<i64: 1, 4>}, {transform_indices = @transform_6, window_bounds = array<i64: 1, 16, 16, 4>}, {transform_indices = @transform_7, window_bounds = array<i64: 1, 1, 2, 4>}]} {
    %c16_i32 = arith.constant 16 : i32
    %0 = arith.muli %arg1, %c16_i32 : i32
    %c1_i32 = arith.constant 1 : i32
    %1 = arith.subi %0, %c1_i32 : i32
    %2 = tpu.iota {dimensions = array<i32: 0>} : vector<18x1x1xi32>
    %3 = vector.broadcast %1 : i32 to vector<18x1x1xi32>
    %4 = arith.addi %3, %2 : vector<18x1x1xi32>
    %c0_i32 = arith.constant 0 : i32
    %5 = vector.broadcast %c0_i32 : i32 to vector<18x1x1xi32>
    %6 = arith.cmpi sge, %4, %5 : vector<18x1x1xi32>
    %c16_i32_0 = arith.constant 16 : i32
    %7 = vector.broadcast %c16_i32_0 : i32 to vector<18x1x1xi32>
    %8 = arith.cmpi slt, %4, %7 : vector<18x1x1xi32>
    %9 = arith.andi %6, %8 : vector<18x1x1xi1>
    %cst = arith.constant 0.000000e+00 : f32
    %10 = vector.broadcast %cst : f32 to vector<256x4xf32>
    %c0 = arith.constant 0 : index
    %c0_1 = arith.constant 0 : index
    %c0_2 = arith.constant 0 : index
    %c0_3 = arith.constant 0 : index
    %11 = vector.load %arg3[%c0, %c0_1, %c0_2, %c0_3] : memref<1x2x16x4xbf16, #tpu.memory_space<vmem>>, vector<1x2x16x4xbf16>
    %12 = vector.shape_cast %11 : vector<1x2x16x4xbf16> to vector<2x16x4xbf16>
    %13 = vector.extract_strided_slice %12 {offsets = [0, 0, 0], sizes = [1, 16, 4], strides = [1, 1, 1]} : vector<2x16x4xbf16> to vector<1x16x4xbf16>
    %c0_4 = arith.constant 0 : index
    %c0_5 = arith.constant 0 : index
    %c0_6 = arith.constant 0 : index
    %c0_7 = arith.constant 0 : index
    %14 = vector.load %arg2[%c0_4, %c0_5, %c0_6, %c0_7] : memref<1x16x16x4xbf16, #tpu.memory_space<vmem>>, vector<1x16x16x4xbf16>
    %15 = vector.shape_cast %14 : vector<1x16x16x4xbf16> to vector<16x16x4xbf16>
    %16 = vector.extract_strided_slice %12 {offsets = [1, 0, 0], sizes = [1, 16, 4], strides = [1, 1, 1]} : vector<2x16x4xbf16> to vector<1x16x4xbf16>
    %17 = tpu.concatenate %13, %15, %16 in 0 : vector<1x16x4xbf16>, vector<16x16x4xbf16>, vector<1x16x4xbf16> -> vector<18x16x4xbf16>
    %18 = arith.extf %17 : vector<18x16x4xbf16> to vector<18x16x4xf32>
    %c0_8 = arith.constant 0 : index
    %c0_9 = arith.constant 0 : index
    %c0_10 = arith.constant 0 : index
    %19 = vector.load %arg4[%c0_8, %c0_9, %c0_10] : memref<1x1x4xf32, #tpu.memory_space<vmem>>, vector<1x1x4xf32>
    %20 = vector.shape_cast %19 : vector<1x1x4xf32> to vector<1x4xf32>
    %21 = vector.shape_cast %20 : vector<1x4xf32> to vector<1x1x4xf32>
    %22 = vector.broadcast %21 : vector<1x1x4xf32> to vector<18x16x4xf32>
    %23 = arith.mulf %18, %22 : vector<18x16x4xf32>
    %c0_11 = arith.constant 0 : index
    %c0_12 = arith.constant 0 : index
    %c0_13 = arith.constant 0 : index
    %24 = vector.load %arg5[%c0_11, %c0_12, %c0_13] : memref<1x1x4xf32, #tpu.memory_space<vmem>>, vector<1x1x4xf32>
    %25 = vector.shape_cast %24 : vector<1x1x4xf32> to vector<1x4xf32>
    %26 = vector.shape_cast %25 : vector<1x4xf32> to vector<1x1x4xf32>
    %27 = vector.broadcast %26 : vector<1x1x4xf32> to vector<18x16x4xf32>
    %28 = arith.addf %23, %27 : vector<18x16x4xf32>
    %cst_14 = arith.constant 0.000000e+00 : f32
    %29 = vector.broadcast %cst_14 : f32 to vector<18x16x4xf32>
    %30 = arith.maximumf %28, %29 : vector<18x16x4xf32>
    %cst_15 = arith.constant 0.000000e+00 : f32
    %31 = vector.shape_cast %9 : vector<18x1x1xi1> to vector<18x1x1xi1>
    %32 = vector.broadcast %31 : vector<18x1x1xi1> to vector<18x16x4xi1>
    %33 = vector.broadcast %cst_15 : f32 to vector<18x16x4xf32>
    %34 = arith.select %32, %30, %33 : vector<18x16x4xi1>, vector<18x16x4xf32>
    %35 = arith.truncf %34 : vector<18x16x4xf32> to vector<18x16x4xbf16>
    %cst_16 = arith.constant 0.000000e+00 : bf16
    %36 = vector.broadcast %cst_16 : bf16 to vector<18x1x4xbf16>
    %37 = vector.extract_strided_slice %35 {offsets = [0, 0, 0], sizes = [18, 15, 4], strides = [1, 1, 1]} : vector<18x16x4xbf16> to vector<18x15x4xbf16>
    %38 = tpu.concatenate %36, %37 in 1 : vector<18x1x4xbf16>, vector<18x15x4xbf16> -> vector<18x16x4xbf16>
    %39 = vector.extract_strided_slice %35 {offsets = [0, 1, 0], sizes = [18, 15, 4], strides = [1, 1, 1]} : vector<18x16x4xbf16> to vector<18x15x4xbf16>
    %40 = tpu.concatenate %39, %36 in 1 : vector<18x15x4xbf16>, vector<18x1x4xbf16> -> vector<18x16x4xbf16>
    %41 = tpu.concatenate %38, %35, %40 in 2 : vector<18x16x4xbf16>, vector<18x16x4xbf16>, vector<18x16x4xbf16> -> vector<18x16x12xbf16>
    %42 = vector.shape_cast %41 : vector<18x16x12xbf16> to vector<288x12xbf16>
    %43 = vector.extract_strided_slice %42 {offsets = [0, 0], sizes = [256, 12], strides = [1, 1]} : vector<288x12xbf16> to vector<256x12xbf16>
    %c0_17 = arith.constant 0 : index
    %c0_18 = arith.constant 0 : index
    %c0_19 = arith.constant 0 : index
    %44 = vector.load %arg6[%c0_17, %c0_18, %c0_19] : memref<3x12x4xbf16, #tpu.memory_space<vmem>>, vector<1x12x4xbf16>
    %45 = vector.shape_cast %44 : vector<1x12x4xbf16> to vector<12x4xbf16>
    %cst_20 = arith.constant dense<0.000000e+00> : vector<256x4xf32>
    %46 = tpu.matmul %43, %45, %cst_20 {dimension_numbers = #tpu.dot_dimension_numbers<[1], [0], [0], [1], [0, 0, 1, 1], [], []>} : vector<256x12xbf16>, vector<12x4xbf16>, vector<256x4xf32> -> vector<256x4xf32>
    %47 = arith.addf %10, %46 : vector<256x4xf32>
    %48 = vector.extract_strided_slice %42 {offsets = [16, 0], sizes = [256, 12], strides = [1, 1]} : vector<288x12xbf16> to vector<256x12xbf16>
    %c1 = arith.constant 1 : index
    %c0_21 = arith.constant 0 : index
    %c0_22 = arith.constant 0 : index
    %49 = vector.load %arg6[%c1, %c0_21, %c0_22] : memref<3x12x4xbf16, #tpu.memory_space<vmem>>, vector<1x12x4xbf16>
    %50 = vector.shape_cast %49 : vector<1x12x4xbf16> to vector<12x4xbf16>
    %cst_23 = arith.constant dense<0.000000e+00> : vector<256x4xf32>
    %51 = tpu.matmul %48, %50, %cst_23 {dimension_numbers = #tpu.dot_dimension_numbers<[1], [0], [0], [1], [0, 0, 1, 1], [], []>} : vector<256x12xbf16>, vector<12x4xbf16>, vector<256x4xf32> -> vector<256x4xf32>
    %52 = arith.addf %47, %51 : vector<256x4xf32>
    %53 = vector.extract_strided_slice %42 {offsets = [32, 0], sizes = [256, 12], strides = [1, 1]} : vector<288x12xbf16> to vector<256x12xbf16>
    %c2 = arith.constant 2 : index
    %c0_24 = arith.constant 0 : index
    %c0_25 = arith.constant 0 : index
    %54 = vector.load %arg6[%c2, %c0_24, %c0_25] : memref<3x12x4xbf16, #tpu.memory_space<vmem>>, vector<1x12x4xbf16>
    %55 = vector.shape_cast %54 : vector<1x12x4xbf16> to vector<12x4xbf16>
    %cst_26 = arith.constant dense<0.000000e+00> : vector<256x4xf32>
    %56 = tpu.matmul %53, %55, %cst_26 {dimension_numbers = #tpu.dot_dimension_numbers<[1], [0], [0], [1], [0, 0, 1, 1], [], []>} : vector<256x12xbf16>, vector<12x4xbf16>, vector<256x4xf32> -> vector<256x4xf32>
    %57 = arith.addf %52, %56 : vector<256x4xf32>
    %c0_27 = arith.constant 0 : index
    %c0_28 = arith.constant 0 : index
    %58 = vector.load %arg7[%c0_27, %c0_28] : memref<1x4xf32, #tpu.memory_space<vmem>>, vector<1x4xf32>
    %59 = vector.broadcast %58 : vector<1x4xf32> to vector<256x4xf32>
    %60 = arith.addf %57, %59 : vector<256x4xf32>
    %61 = vector.shape_cast %60 : vector<256x4xf32> to vector<16x16x4xf32>
    %62 = arith.truncf %61 : vector<16x16x4xf32> to vector<16x16x4xbf16>
    %c0_29 = arith.constant 0 : index
    %c0_30 = arith.constant 0 : index
    %c0_31 = arith.constant 0 : index
    %c0_32 = arith.constant 0 : index
    %63 = vector.load %arg8[%c0_29, %c0_30, %c0_31, %c0_32] : memref<1x16x16x4xbf16, #tpu.memory_space<vmem>>, vector<1x16x16x4xbf16>
    %64 = vector.shape_cast %63 : vector<1x16x16x4xbf16> to vector<16x16x4xbf16>
    %65 = vector.shape_cast %62 : vector<16x16x4xbf16> to vector<1x16x16x4xbf16>
    tpu.vector_store %arg8[%c0_29, %c0_30, %c0_31, %c0_32], %65 {strides = array<i32>} : memref<1x16x16x4xbf16, #tpu.memory_space<vmem>>, vector<1x16x16x4xbf16>,
    %cst_33 = arith.constant dense<0.000000e+00> : vector<4xf32>
    %66 = vector.multi_reduction <add>, %60, %cst_33 [0] : vector<256x4xf32> to vector<4xf32>
    %67 = vector.shape_cast %66 : vector<4xf32> to vector<1x4xf32>
    %68 = arith.mulf %60, %60 : vector<256x4xf32>
    %cst_34 = arith.constant dense<0.000000e+00> : vector<4xf32>
    %69 = vector.multi_reduction <add>, %68, %cst_34 [0] : vector<256x4xf32> to vector<4xf32>
    %70 = vector.shape_cast %69 : vector<4xf32> to vector<1x4xf32>
    %71 = tpu.concatenate %67, %70 in 0 : vector<1x4xf32>, vector<1x4xf32> -> vector<2x4xf32>
    %72 = vector.shape_cast %71 : vector<2x4xf32> to vector<1x2x4xf32>
    %c0_35 = arith.constant 0 : index
    %c0_36 = arith.constant 0 : index
    %c0_37 = arith.constant 0 : index
    %c0_38 = arith.constant 0 : index
    %73 = vector.load %arg9[%c0_35, %c0_36, %c0_37, %c0_38] : memref<1x1x2x4xf32, #tpu.memory_space<vmem>>, vector<1x1x2x4xf32>
    %74 = vector.shape_cast %73 : vector<1x1x2x4xf32> to vector<1x2x4xf32>
    %75 = vector.shape_cast %72 : vector<1x2x4xf32> to vector<1x1x2x4xf32>
    tpu.vector_store %arg9[%c0_35, %c0_36, %c0_37, %c0_38], %75 {strides = array<i32>} : memref<1x1x2x4xf32, #tpu.memory_space<vmem>>, vector<1x1x2x4xf32>,
    return
  }
  func.func @transform_0(%arg0: i32, %arg1: i32) -> (i32, i32, i32, i32) {
    %c0_i32 = arith.constant 0 : i32
    %c0_i32_0 = arith.constant 0 : i32
    %c0_i32_1 = arith.constant 0 : i32
    return %arg0, %arg1, %c0_i32, %c0_i32_0 : i32, i32, i32, i32
  }
  func.func @transform_1(%arg0: i32, %arg1: i32) -> (i32, i32, i32, i32) {
    %c0_i32 = arith.constant 0 : i32
    %c0_i32_0 = arith.constant 0 : i32
    %c0_i32_1 = arith.constant 0 : i32
    return %arg0, %arg1, %c0_i32, %c0_i32_0 : i32, i32, i32, i32
  }
  func.func @transform_2(%arg0: i32, %arg1: i32) -> (i32, i32, i32) {
    %c0_i32 = arith.constant 0 : i32
    %c0_i32_0 = arith.constant 0 : i32
    %c0_i32_1 = arith.constant 0 : i32
    return %arg0, %c0_i32, %c0_i32_0 : i32, i32, i32
  }
  func.func @transform_3(%arg0: i32, %arg1: i32) -> (i32, i32, i32) {
    %c0_i32 = arith.constant 0 : i32
    %c0_i32_0 = arith.constant 0 : i32
    %c0_i32_1 = arith.constant 0 : i32
    return %arg0, %c0_i32, %c0_i32_0 : i32, i32, i32
  }
  func.func @transform_4(%arg0: i32, %arg1: i32) -> (i32, i32, i32) {
    %c0_i32 = arith.constant 0 : i32
    %c0_i32_0 = arith.constant 0 : i32
    %c0_i32_1 = arith.constant 0 : i32
    %c0_i32_2 = arith.constant 0 : i32
    return %c0_i32, %c0_i32_0, %c0_i32_1 : i32, i32, i32
  }
  func.func @transform_5(%arg0: i32, %arg1: i32) -> (i32, i32) {
    %c0_i32 = arith.constant 0 : i32
    %c0_i32_0 = arith.constant 0 : i32
    %c0_i32_1 = arith.constant 0 : i32
    return %c0_i32, %c0_i32_0 : i32, i32
  }
  func.func @transform_6(%arg0: i32, %arg1: i32) -> (i32, i32, i32, i32) {
    %c0_i32 = arith.constant 0 : i32
    %c0_i32_0 = arith.constant 0 : i32
    %c0_i32_1 = arith.constant 0 : i32
    return %arg0, %arg1, %c0_i32, %c0_i32_0 : i32, i32, i32, i32
  }
  func.func @transform_7(%arg0: i32, %arg1: i32) -> (i32, i32, i32, i32) {
    %c0_i32 = arith.constant 0 : i32
    %c0_i32_0 = arith.constant 0 : i32
    %c0_i32_1 = arith.constant 0 : i32
    return %arg0, %arg1, %c0_i32, %c0_i32_0 : i32, i32, i32, i32
  }
}

</mosaic_0001>

<bundles_post_ra>
// kernel: tile.8
= control target key start
LH: loop header
LB: loop body
LE: loop exit
PB: predicated region body
PF: predicated region fallthrough
CT: control target
= control target key end

     0   :  { %s22_s0 = inlined_call_operand.vmem [shape: f32[4], index: 0, kind: input, shape index: {}]   ;;  %s23_s1 = inlined_call_operand.vmem [shape: f32[2,4], index: 1, kind: output, shape index: {}]  }
   0x1   :  { %v4_v0 = vld [vmem:[%s22_s0] ss:$0 sm:$0xff] }
   0x2   :  { %5 = vst [vmem:[%s23_s1] sm:$0x3] %v4_v0 }

// kernel: tile.9
= control target key start
LH: loop header
LB: loop body
LE: loop exit
PB: predicated region body
PF: predicated region fallthrough
CT: control target
= control target key end

     0   :  { %vm7_vm0 = vcmask 31744   ;;  %vm13_vm1 = vcmask 64544   ;;  %s39_s0 = inlined_call_operand.vmem [shape: f32[2,4], index: 0, kind: input, shape index: {}]   ;;  %s40_s1 = inlined_call_operand.vmem [shape: f32[1,8], index: 1, kind: output, shape index: {}]  }
   0x1   :  { %v4_v0 = vld [vmem:[%s39_s0] sm:$0x3]  ;;  %s22_s0 = smov 4  }
   0x2   :  { %5 = vst [vmem:[#allocation1] sm:$0x3] %v4_v0 }
   0x9   :  { %v10_v1 = vld [vmem:[#allocation1 + $0x1] sm:$0x1]   ;;  %v6_v2 = vld [vmem:[#allocation1] sm:$0x1]  }
   0xa   :  { %11 = vrot.lane.b32.xlu0 %v10_v1, %s22_s0  ;;  %8 = vst.msk [vmem:[#allocation0] sm:$0x1] %vm7_vm0, %v6_v2  }
  0x7c   :  { %v12_v3 = vpop.permute.xlu0 %11  }
  0x7d   :  { %14 = vst.msk [vmem:[#allocation0] sm:$0x1] %vm13_vm1, %v12_v3  }
  0x84   :  { %v18_v4 = vld [vmem:[#allocation0] sm:$0x1] }
  0x85   :  { %20 = vst [vmem:[%s40_s1] sm:$0x1] %v18_v4 }

// kernel: up2d_forward.3
= control target key start
LH: loop header
LB: loop body
LE: loop exit
PB: predicated region body
PF: predicated region fallthrough
CT: control target
= control target key end

     0   :  { %s675_s12 = smov 0   ;;  %s677_s13 = smov 0   ;;  %s751_s0 = inlined_call_operand.vmem [shape: bf16[2,8,8,8], index: 0, kind: input, shape index: {}]   ;;  %s752_s1 = inlined_call_operand.vmem [shape: bf16[2,8,8], index: 1, kind: input, shape index: {}]   ;;  %s753_s2 = inlined_call_operand.vmem [shape: f32[1,8], index: 2, kind: input, shape index: {}]   ;;  %s754_s3 = inlined_call_operand.vmem [shape: bf16[2,8,2,8,8], index: 3, kind: output, shape index: {}]  }
   0x1   :  { %s679_s14 = smov 0  }
   0x2 LB: > { %s25_s15 = sadd.s32 1, %s649_s13  ;;  %p539_p0 = scmp.ge.s32.totalorder %s653_s14, 1  ;;  %s653_s14 = sphi %s679_s14, %s13_s14   ;;  %s649_s13 = sphi %s677_s13, %s756_s13   ;;  %s645_s12 = sphi %s675_s12, %s755_s12  }
   0x3   : > { %p27_p1 = scmp.ge.s32.totalorder %s25_s15, 2  ;;  %p158_p2 = scmp.lt.s32.totalorder %s653_s14, 3 }
   0x5   : > { %s758_s15 = smov (%p27_p1, %s25_s15), 0  ;;  %p159_p3 = pnand %p539_p0, %p158_p2 }
   0x6   : > { %v221_v0 = vld [vmem:[%s752_s1] sm:$0xf] (!%p159_p3)  ;;  %vm262_vm0 = vcmask (!%p159_p3), 1043456   ;;  %v553_v1 = vld [vmem:[%s752_s1 + $0x4] sm:$0xf] (!%p159_p3)  ;;  %p192_p4 = scmp.lt.s32.totalorder (!%p159_p3), %s645_s12, 1 }
   0x7   : > { %162 = sbr.rel (%p159_p3) target bundleno = 247 (0xf7), region = 32  ;;  %601 = vmatprep.subr.msk.bf16.mxu0 (!%p159_p3), %vm262_vm0, %v221_v0  ;;  %602 = vmatprep.subr.msk.bf16.mxu1 (!%p159_p3), %vm262_vm0, %v553_v1  ;;  %v264_v2 = vsel (!%p159_p3), %vm262_vm0, %v221_v0, 0  ;;  %v358_v3 = vsel (!%p159_p3), %vm262_vm0, %v553_v1, 0  ;;  %vm249_vm1 = vcmask (!%p159_p3), 64512   ;;  %v544_v8 = vld [vmem:[%s753_s2] ss:$0 sm:$0xff] (!%p159_p3) }
   0x8   : > { %582 = vmatpush3.bf16.msra.mxu0 (!%p159_p3), %v264_v2  ;;  %592 = vmatpush3.bf16.msra.mxu1 (!%p159_p3), %v358_v3  ;;  %vm339_vm2 = vcmask (!%p159_p3), 60416  }
   0xe   : > { %s760_s12 = smov (!%p192_p4, %s645_s12), 1 }
   0xf   : > { %s569_s20 = sshll.u32 %s760_s12, 5  ;;  %s570_s26 = sshll.u32 %s760_s12, 6 }
  0x10   : > { %s199_s23 = scalar_lea.vmem %s751_s0, %s569_s20  ;;  %s708_s29 = scalar_lea.vmem %s754_s3, %s570_s26 }
  0x11   : > { %v627_v4 = vld [vmem:[%s199_s23] sm:$0xff]   ;;  %v628_v5 = vld [vmem:[%s199_s23 + $0x8] sm:$0xff]   ;;  %v629_v6 = vld [vmem:[%s199_s23 + $0x10] sm:$0xff]  }
  0x12   : > { %583 = vmatprep.mubr.msk.bf16.mxu0 %vm249_vm1, %v627_v4  ;;  %593 = vmatprep.mubr.msk.bf16.mxu1 %vm249_vm1, %v627_v4  ;;  %v630_v7 = vld [vmem:[%s199_s23 + $0x18] sm:$0xff]  }
  0x13   : > { %584 = vmatmul.mubr.msk.bf16.vlgmr.msra.gmra.mrb[0].mxu0 %vm249_vm1, %v628_v5  ;;  %594 = vmatmul.mubr.msk.bf16.vlgmr.msra.gmra.mrb[0].mxu1 %vm249_vm1, %v628_v5 }
  0x14   : > { %587 = vmatprep.mubr.msk.bf16.mxu0 %vm249_vm1, %v629_v6  ;;  %597 = vmatprep.mubr.msk.bf16.mxu1 %vm249_vm1, %v629_v6 }
  0x1b   : > { %588 = vmatmul.mubr.msk.bf16.gmra.mrb[4].mxu0 %vm249_vm1, %v630_v7  ;;  %598 = vmatmul.mubr.msk.bf16.gmra.mrb[4].mxu1 %vm249_vm1, %v630_v7 }
  0xe6   : > { %v585_v9 = vpop.f32.mrb[0].mxu0  ;;  %v595_v10 = vpop.f32.mrb[0].mxu1 }
  0xe7   : > { %v309_v11 = vadd.f32 %v585_v9, %v544_v8  ;;  %v403_v12 = vadd.f32 %v595_v10, %v544_v8  ;;  %v300_v13 = vpop.f32.mrb[1].mxu0  ;;  %v394_v14 = vpop.f32.mrb[1].mxu1 }
  0xe8   : > { %v301_v15 = vadd.f32 %v544_v8, %v300_v13  ;;  %v395_v16 = vadd.f32 %v544_v8, %v394_v14  ;;  %v586_v17 = vpop.f32.mrb[2].mxu0  ;;  %v596_v18 = vpop.f32.mrb[2].mxu1 }
  0xe9   : > { %v333_v19 = vpack.c.bf16 %v309_v11, %v309_v11  ;;  %v427_v20 = vpack.c.bf16 %v403_v12, %v403_v12  ;;  %v312_v21 = vadd.f32 %v586_v17, %v544_v8  ;;  %v406_v22 = vadd.f32 %v596_v18, %v544_v8  ;;  %v303_v23 = vpop.f32.mrb[3].mxu0  ;;  %v397_v24 = vpop.f32.mrb[3].mxu1 }
  0xea   : > { %v331_v25 = vpack.c.bf16 %v301_v15, %v301_v15  ;;  %v425_v26 = vpack.c.bf16 %v395_v16, %v395_v16  ;;  %v304_v27 = vadd.f32 %v544_v8, %v303_v23  ;;  %v398_v28 = vadd.f32 %v544_v8, %v397_v24 }
  0xeb   : > { %342 = vst.msk [vmem:[%s708_s29 + $0x10] sm:$0xf] %vm339_vm2, %v333_v19  ;;  %561 = vst.msk [vmem:[%s708_s29 + $0x14] sm:$0xf] %vm339_vm2, %v427_v20  ;;  %v334_v29 = vpack.c.bf16 %v312_v21, %v312_v21  ;;  %v428_v30 = vpack.c.bf16 %v406_v22, %v406_v22 }
  0xec   : > { %340 = vst.msk [vmem:[%s708_s29] sm:$0xf] %vm339_vm2, %v331_v25  ;;  %559 = vst.msk [vmem:[%s708_s29 + $0x4] sm:$0xf] %vm339_vm2, %v425_v26  ;;  %v332_v31 = vpack.c.bf16 %v304_v27, %v304_v27  ;;  %v426_v32 = vpack.c.bf16 %v398_v28, %v398_v28 }
  0xed   : > { %343 = vst.msk [vmem:[%s708_s29 + $0x18] sm:$0xf] %vm339_vm2, %v334_v29  ;;  %562 = vst.msk [vmem:[%s708_s29 + $0x1c] sm:$0xf] %vm339_vm2, %v428_v30 }
  0xee   : > { %341 = vst.msk [vmem:[%s708_s29 + $0x8] sm:$0xf] %vm339_vm2, %v332_v31  ;;  %560 = vst.msk [vmem:[%s708_s29 + $0xc] sm:$0xf] %vm339_vm2, %v426_v32  ;;  %v589_v33 = vpop.f32.mrb[4].mxu0  ;;  %v599_v34 = vpop.f32.mrb[4].mxu1 }
  0xef   : > { %v325_v35 = vadd.f32 %v589_v33, %v544_v8  ;;  %v419_v36 = vadd.f32 %v599_v34, %v544_v8  ;;  %v316_v37 = vpop.f32.mrb[5].mxu0  ;;  %v410_v38 = vpop.f32.mrb[5].mxu1 }
  0xf0   : > { %v317_v39 = vadd.f32 %v544_v8, %v316_v37  ;;  %v411_v40 = vadd.f32 %v544_v8, %v410_v38  ;;  %v590_v41 = vpop.f32.mrb[6].mxu0  ;;  %v600_v42 = vpop.f32.mrb[6].mxu1 }
  0xf1   : > { %v337_v43 = vpack.c.bf16 %v325_v35, %v325_v35  ;;  %v431_v44 = vpack.c.bf16 %v419_v36, %v419_v36  ;;  %v328_v45 = vadd.f32 %v590_v41, %v544_v8  ;;  %v422_v46 = vadd.f32 %v600_v42, %v544_v8  ;;  %v319_v47 = vpop.f32.mrb[7].mxu0  ;;  %v413_v48 = vpop.f32.mrb[7].mxu1 }
  0xf2   : > { %v335_v49 = vpack.c.bf16 %v317_v39, %v317_v39  ;;  %v429_v50 = vpack.c.bf16 %v411_v40, %v411_v40  ;;  %v320_v51 = vadd.f32 %v544_v8, %v319_v47  ;;  %v414_v52 = vadd.f32 %v544_v8, %v413_v48 }
  0xf3   : > { %346 = vst.msk [vmem:[%s708_s29 + $0x30] sm:$0xf] %vm339_vm2, %v337_v43  ;;  %565 = vst.msk [vmem:[%s708_s29 + $0x34] sm:$0xf] %vm339_vm2, %v431_v44  ;;  %v338_v53 = vpack.c.bf16 %v328_v45, %v328_v45  ;;  %v432_v54 = vpack.c.bf16 %v422_v46, %v422_v46 }
  0xf4   : > { %344 = vst.msk [vmem:[%s708_s29 + $0x20] sm:$0xf] %vm339_vm2, %v335_v49  ;;  %563 = vst.msk [vmem:[%s708_s29 + $0x24] sm:$0xf] %vm339_vm2, %v429_v50  ;;  %v336_v55 = vpack.c.bf16 %v320_v51, %v320_v51  ;;  %v430_v56 = vpack.c.bf16 %v414_v52, %v414_v52 }
  0xf5   : > { %347 = vst.msk [vmem:[%s708_s29 + $0x38] sm:$0xf] %vm339_vm2, %v338_v53  ;;  %566 = vst.msk [vmem:[%s708_s29 + $0x3c] sm:$0xf] %vm339_vm2, %v432_v54 }
  0xf6   : > { %345 = vst.msk [vmem:[%s708_s29 + $0x28] sm:$0xf] %vm339_vm2, %v336_v55  ;;  %564 = vst.msk [vmem:[%s708_s29 + $0x2c] sm:$0xf] %vm339_vm2, %v430_v56 }
  0xf7 PF: > { %s13_s14 = sadd.s32 1, %s653_s14   ;;  %s755_s12 = smov %s649_s13 }
  0xf8   : > { %p10_p5 = scmp.ge.s32.totalorder %s13_s14, 4   ;;  %s756_s13 = smov %s758_s15 }
  0xfa   :  { %12 = sbr.rel (!%p10_p5) target bundleno = 2 (0x2), region = 64 }

// kernel: up2d_forward.5
= control target key start
LH: loop header
LB: loop body
LE: loop exit
PB: predicated region body
PF: predicated region fallthrough
CT: control target
= control target key end

     0   :  { %s2883_s24 = smov 0   ;;  %s2885_s1 = smov 0   ;;  %s3675_s0 = inlined_call_operand.vmem [shape: bf16[2,16,16,4], index: 0, kind: input, shape index: {}]   ;;  %s3676_s1 = inlined_call_operand.vmem [shape: bf16[2,2,16,4], index: 1, kind: input, shape index: {}]   ;;  %s3677_s2 = inlined_call_operand.vmem [shape: f32[2,1,4], index: 2, kind: input, shape index: {}]   ;;  %s3678_s3 = inlined_call_operand.vmem [shape: f32[2,1,4], index: 3, kind: input, shape index: {}]   ;;  %s3679_s4 = inlined_call_operand.vmem [shape: bf16[3,12,4], index: 4, kind: input, shape index: {}]   ;;  %s3680_s5 = inlined_call_operand.vmem [shape: f32[1,4], index: 5, kind: input, shape index: {}]   ;;  %s3681_s6 = inlined_call_operand.vmem [shape: bf16[2,16,16,4], index: 6, kind: output, shape index: {0}]   ;;  %s3682_s7 = inlined_call_operand.vmem [shape: f32[2,1,2,4], index: 7, kind: output, shape index: {1}]  }
   0x1   :  { %s2887_s25 = smov 0  }
   0x2 LB: > { %s30_s26 = sadd.s32 1, %s2833_s1  ;;  %p2347_p0 = scmp.ge.s32.totalorder %s2837_s25, 1  ;;  %s2837_s25 = sphi %s2887_s25, %s18_s25   ;;  %s2833_s1 = sphi %s2885_s1, %s3688_s1   ;;  %s2829_s24 = sphi %s2883_s24, %s3687_s24  }
   0x3   : > { %p32_p1 = scmp.ge.s32.totalorder %s30_s26, 2  ;;  %p298_p2 = scmp.lt.s32.totalorder %s2837_s25, 3 }
   0x5   : > { %s3690_s26 = smov (%p32_p1, %s30_s26), 0  ;;  %p299_p3 = pnand %p2347_p0, %p298_p2 }
   0x6   : > { %vm987_vm0 = vcmask (!%p299_p3), 1047552   ;;  %vm988_vm1 = vsmask.f32 (!%p299_p3), 7424  ;;  %v2839_v0 = vmov (!%p299_p3), 0.0|0.0   ;;  %s2840_s27 = smov (!%p299_p3), 4   ;;  %v2841_v1 = vmov (!%p299_p3), 0  }
   0x7   : > { %302 = sbr.rel (%p299_p3) target bundleno = 484 (0x1e4), region = 44  ;;  %1026 = vrot.lane.b32.xlu0 (!%p299_p3), %v2839_v0, %s2840_s27  ;;  %v933_v2 = vrot.slane (!%p299_p3), %v2841_v1, 1  ;;  %vm2904_vm2 = vmand (!%p299_p3), %vm987_vm0, %vm988_vm1  ;;  %p364_p4 = scmp.lt.s32.totalorder (!%p299_p3), %s2829_s24, 1  ;;  %v2812_v5 = vld [vmem:[%s3679_s4 + $0x8] sm:$0x3f] (!%p299_p3)   ;;  %vm1251_vm3 = vcmask (!%p299_p3), 1045504  }
   0x8   : > { %s2842_s28 = smov (!%p299_p3), 8   ;;  %v2813_v6 = vld [vmem:[%s3679_s4] sm:$0x3f] (!%p299_p3)   ;;  %2780 = vmatprep.subr.msk.bf16.mxu1 (!%p299_p3), %vm1251_vm3, %v2812_v5  ;;  %v1253_v10 = vsel (!%p299_p3), %vm1251_vm3, %v2812_v5, 0  ;;  %v2974_v40 = vld [vmem:[%s3679_s4 + $0x10] sm:$0x3f] (!%p299_p3)  }
   0x9   : > { %v2910_v4 = vsel (!%p299_p3), %vm2904_vm2, %v933_v2, 0  ;;  %2781 = vmatprep.subr.msk.bf16.mxu0 (!%p299_p3), %vm1251_vm3, %v2813_v6  ;;  %v2946_v11 = vsel (!%p299_p3), %vm1251_vm3, %v2813_v6, 0  ;;  %2613 = vmatpush3.bf16.msra.mxu1 (!%p299_p3), %v1253_v10  ;;  %vm912_vm4 = vcmask (!%p299_p3), 1040384   ;;  %vm913_vm5 = vsmask.f32 (!%p299_p3), 256 }
   0xa   : > { %1080 = vrot.lane.b32.xlu1 (!%p299_p3), %v2910_v4, %s2842_s28  ;;  %2647 = vmatpush3.bf16.msra.mxu0 (!%p299_p3), %v2946_v11  ;;  %vm3321_vm6 = vmand (!%p299_p3), %vm912_vm4, %vm913_vm5  ;;  %vm1116_vm7 = vcmask (!%p299_p3), 31744   ;;  %vm1171_vm8 = vcmask (!%p299_p3), 64512   ;;  %vm1218_vm9 = vcmask (!%p299_p3), 97280   ;;  %vm1960_vm10 = vcmask (!%p299_p3), 27648  }
   0xb   : > { %2782 = vmatprep.subr.msk.bf16.mxu1 (!%p299_p3), %vm1251_vm3, %v2813_v6  ;;  %2783 = vmatprep.subr.msk.bf16.mxu0 (!%p299_p3), %vm1251_vm3, %v2974_v40  ;;  %vm2165_vm11 = vcmask (!%p299_p3), 25600  }
   0xe   : > { %s3692_s24 = smov (!%p364_p4, %s2829_s24), 1 }
   0xf   : > { %s2447_s29 = sshll.u32 %s3692_s24, 7  ;;  %s387_s9 = scalar_lea.vmem %s3677_s2, %s3692_s24 }
  0x10   : > { %s2932_s16 = scalar_lea.vmem %s3675_s0, %s2447_s29  ;;  %s390_s19 = scalar_lea.vmem %s3678_s3, %s3692_s24  ;;  %v2939_v8 = vld [vmem:[%s387_s9] ss:$0 sm:$0xff] }
  0x11   : > { %v2546_v7 = vld [vmem:[%s2932_s16 + $0x8] sm:$0xff]   ;;  %v2483_v9 = vld [vmem:[%s2932_s16] sm:$0xff]   ;;  %v2548_v16 = vld [vmem:[%s2932_s16 + $0x18] sm:$0xff]   ;;  %s3492_s30 = scalar_lea.vmem %s3681_s6, %s2447_s29  ;;  %s2354_s29 = sshll.u32 %s3692_s24, 1 }
  0x12   : > { %v2488_v12 = vunpack.c.l.bf16 %v2546_v7  ;;  %v2489_v13 = vunpack.c.h.bf16 %v2546_v7  ;;  %v2484_v14 = vunpack.c.l.bf16 %v2483_v9  ;;  %v2485_v15 = vunpack.c.h.bf16 %v2483_v9  ;;  %v2547_v17 = vld [vmem:[%s2932_s16 + $0x10] sm:$0xff]   ;;  %v2951_v18 = vld [vmem:[%s390_s19] ss:$0 sm:$0xff]  ;;  %v2550_v39 = vld [vmem:[%s2932_s16 + $0x28] sm:$0xff]   ;;  %s408_s10 = scalar_lea.vmem %s3682_s7, %s2354_s29 }
  0x13   : > { %v2496_v19 = vunpack.c.l.bf16 %v2548_v16  ;;  %v2497_v20 = vunpack.c.h.bf16 %v2548_v16  ;;  %v2492_v21 = vunpack.c.l.bf16 %v2547_v17  ;;  %v2493_v22 = vunpack.c.h.bf16 %v2547_v17  ;;  %v2549_v45 = vld [vmem:[%s2932_s16 + $0x20] sm:$0xff]  }
  0x14   : > { %v567_v23 = vmul.f32 %v2488_v12, %v2939_v8  ;;  %v568_v24 = vmul.f32 %v2489_v13, %v2939_v8  ;;  %v565_v25 = vmul.f32 %v2484_v14, %v2939_v8  ;;  %v566_v26 = vmul.f32 %v2485_v15, %v2939_v8 }
  0x15   : > { %v571_v27 = vmul.f32 %v2496_v19, %v2939_v8  ;;  %v572_v28 = vmul.f32 %v2497_v20, %v2939_v8  ;;  %v569_v29 = vmul.f32 %v2492_v21, %v2939_v8  ;;  %v570_v30 = vmul.f32 %v2493_v22, %v2939_v8  ;;  %v2552_v21 = vld [vmem:[%s2932_s16 + $0x38] sm:$0xff]  }
  0x16   : > { %v610_v31 = vadd.f32 %v2951_v18, %v567_v23  ;;  %v611_v32 = vadd.f32 %v2951_v18, %v568_v24  ;;  %v608_v33 = vadd.f32 %v2951_v18, %v565_v25  ;;  %v609_v34 = vadd.f32 %v2951_v18, %v566_v26  ;;  %v2551_v26 = vld [vmem:[%s2932_s16 + $0x30] sm:$0xff]  }
  0x17   : > { %v614_v35 = vadd.f32 %v2951_v18, %v571_v27  ;;  %v615_v36 = vadd.f32 %v2951_v18, %v572_v28  ;;  %v612_v37 = vadd.f32 %v2951_v18, %v569_v29  ;;  %v613_v38 = vadd.f32 %v2951_v18, %v570_v30 }
  0x18   : > { %v646_v41 = vmax.f32 %v610_v31, 0.0  ;;  %v647_v42 = vmax.f32 %v611_v32, 0.0  ;;  %v644_v43 = vmax.f32 %v608_v33, 0.0  ;;  %v645_v44 = vmax.f32 %v609_v34, 0.0  ;;  %v2554_v31 = vld [vmem:[%s2932_s16 + $0x48] sm:$0xff]  }
  0x19   : > { %v650_v46 = vmax.f32 %v614_v35, 0.0  ;;  %v651_v47 = vmax.f32 %v615_v36, 0.0  ;;  %v648_v48 = vmax.f32 %v612_v37, 0.0  ;;  %v649_v49 = vmax.f32 %v613_v38, 0.0 }
  0x1a   : > { %v2979_v50 = vpack.c.bf16 %v647_v42, %v646_v41  ;;  %v2981_v51 = vpack.c.bf16 %v645_v44, %v644_v43  ;;  %v2504_v52 = vunpack.c.l.bf16 %v2550_v39  ;;  %v2505_v53 = vunpack.c.h.bf16 %v2550_v39 }
  0x1b   : > { %v2983_v54 = vpack.c.bf16 %v651_v47, %v650_v46  ;;  %v2985_v55 = vpack.c.bf16 %v649_v49, %v648_v48  ;;  %v2500_v56 = vunpack.c.l.bf16 %v2549_v45  ;;  %v2501_v57 = vunpack.c.h.bf16 %v2549_v45 }
  0x1c   : > { %1030 = vrot.lane.b32.xlu1 %v2979_v50, %s2840_s27  ;;  %1028 = vrot.lane.b32.xlu0 %v2981_v51, %s2840_s27  ;;  %v783_v58 = vshrl.u32 %v2979_v50, 16  ;;  %v786_v59 = vshll.u32 %v2979_v50, 16  ;;  %v776_v60 = vshrl.u32 %v2981_v51, 16  ;;  %v779_v61 = vshll.u32 %v2981_v51, 16 }
  0x1d   : > { %v797_v62 = vshrl.u32 %v2983_v54, 16  ;;  %v800_v63 = vshll.u32 %v2983_v54, 16  ;;  %v790_v2 = vshrl.u32 %v2985_v55, 16  ;;  %v793_v5 = vshll.u32 %v2985_v55, 16 }
  0x1e   : > { %v937_v6 = vrot.slane %v786_v59, 1  ;;  %v935_v7 = vrot.slane %v779_v61, 1  ;;  %v575_v14 = vmul.f32 %v2504_v52, %v2939_v8  ;;  %v576_v15 = vmul.f32 %v2505_v53, %v2939_v8 }
  0x1f   : > { %v941_v9 = vrot.slane %v800_v63, 1  ;;  %v939_v10 = vrot.slane %v793_v5, 1  ;;  %v573_v19 = vmul.f32 %v2500_v56, %v2939_v8  ;;  %v574_v20 = vmul.f32 %v2501_v57, %v2939_v8 }
  0x20   : > { %v938_v12 = vor.u32 %v937_v6, %v783_v58  ;;  %v936_v13 = vor.u32 %v935_v7, %v776_v60  ;;  %v618_v24 = vadd.f32 %v2951_v18, %v575_v14  ;;  %v619_v25 = vadd.f32 %v2951_v18, %v576_v15  ;;  %v2553_v14 = vld [vmem:[%s2932_s16 + $0x40] sm:$0xff]  }
  0x21   : > { %v942_v16 = vor.u32 %v941_v9, %v797_v62  ;;  %v940_v17 = vor.u32 %v939_v10, %v790_v2  ;;  %v616_v29 = vadd.f32 %v2951_v18, %v573_v19  ;;  %v617_v30 = vadd.f32 %v2951_v18, %v574_v20 }
  0x22   : > { %v992_v22 = vsel %vm2904_vm2, %v938_v12, 0  ;;  %v991_v23 = vsel %vm2904_vm2, %v936_v13, 0  ;;  %v654_v32 = vmax.f32 %v618_v24, 0.0  ;;  %v655_v33 = vmax.f32 %v619_v25, 0.0 }
  0x23   : > { %1084 = vrot.lane.b32.xlu1 %v992_v22, %s2842_s28  ;;  %1082 = vrot.lane.b32.xlu0 %v991_v23, %s2842_s28  ;;  %v994_v27 = vsel %vm2904_vm2, %v942_v16, 0  ;;  %v993_v28 = vsel %vm2904_vm2, %v940_v17, 0  ;;  %v2512_v34 = vunpack.c.l.bf16 %v2552_v21  ;;  %v2513_v35 = vunpack.c.h.bf16 %v2552_v21 }
  0x24   : > { %v652_v36 = vmax.f32 %v616_v29, 0.0  ;;  %v653_v37 = vmax.f32 %v617_v30, 0.0  ;;  %v2508_v38 = vunpack.c.l.bf16 %v2551_v26  ;;  %v2509_v39 = vunpack.c.h.bf16 %v2551_v26 }
  0x25   : > { %v3036_v41 = vpack.c.bf16 %v655_v33, %v654_v32  ;;  %v579_v42 = vmul.f32 %v2512_v34, %v2939_v8  ;;  %v580_v43 = vmul.f32 %v2513_v35, %v2939_v8  ;;  %v2520_v44 = vunpack.c.l.bf16 %v2554_v31  ;;  %v2556_v34 = vld [vmem:[%s2932_s16 + $0x58] sm:$0xff]  }
  0x26   : > { %v3044_v45 = vpack.c.bf16 %v653_v37, %v652_v36  ;;  %v577_v46 = vmul.f32 %v2508_v38, %v2939_v8  ;;  %v578_v47 = vmul.f32 %v2509_v39, %v2939_v8  ;;  %v2521_v48 = vunpack.c.h.bf16 %v2554_v31  ;;  %v2555_v39 = vld [vmem:[%s2932_s16 + $0x50] sm:$0xff]  }
  0x27   : > { %1034 = vrot.lane.b32.xlu1 %v2983_v54, %s2840_s27  ;;  %1032 = vrot.lane.b32.xlu0 %v2985_v55, %s2840_s27  ;;  %v811_v49 = vshrl.u32 %v3036_v41, 16  ;;  %v814_v52 = vshll.u32 %v3036_v41, 16  ;;  %v622_v53 = vadd.f32 %v2951_v18, %v579_v42  ;;  %v623_v56 = vadd.f32 %v2951_v18, %v580_v43 }
  0x28   : > { %v804_v57 = vshrl.u32 %v3044_v45, 16  ;;  %v807_v6 = vshll.u32 %v3044_v45, 16  ;;  %v620_v7 = vadd.f32 %v2951_v18, %v577_v46  ;;  %v621_v9 = vadd.f32 %v2951_v18, %v578_v47 }
  0x29   : > { %v945_v10 = vrot.slane %v814_v52, 1  ;;  %v658_v12 = vmax.f32 %v622_v53, 0.0  ;;  %v659_v13 = vmax.f32 %v623_v56, 0.0  ;;  %v583_v21 = vmul.f32 %v2520_v44, %v2939_v8 }
  0x2a   : > { %v943_v15 = vrot.slane %v807_v6, 1  ;;  %v656_v16 = vmax.f32 %v620_v7, 0.0  ;;  %v657_v17 = vmax.f32 %v621_v9, 0.0  ;;  %v584_v22 = vmul.f32 %v2521_v48, %v2939_v8 }
  0x2b   : > { %1088 = vrot.lane.b32.xlu1 %v994_v27, %s2842_s28  ;;  %1086 = vrot.lane.b32.xlu0 %v993_v28, %s2842_s28  ;;  %v946_v19 = vor.u32 %v945_v10, %v811_v49  ;;  %v3065_v20 = vpack.c.bf16 %v659_v13, %v658_v12  ;;  %v2516_v25 = vunpack.c.l.bf16 %v2553_v14  ;;  %v2517_v26 = vunpack.c.h.bf16 %v2553_v14 }
  0x2c   : > { %v944_v23 = vor.u32 %v943_v15, %v804_v57  ;;  %v3071_v24 = vpack.c.bf16 %v657_v17, %v656_v16  ;;  %v626_v29 = vadd.f32 %v2951_v18, %v583_v21  ;;  %v627_v33 = vadd.f32 %v2951_v18, %v584_v22  ;;  %v2558_v16 = vld [vmem:[%s2932_s16 + $0x68] sm:$0xff]  }
  0x2d   : > { %v825_v27 = vshrl.u32 %v3065_v20, 16  ;;  %v828_v28 = vshll.u32 %v3065_v20, 16  ;;  %v996_v30 = vsel %vm2904_vm2, %v946_v19, 0  ;;  %v581_v38 = vmul.f32 %v2516_v25, %v2939_v8 }
  0x2e   : > { %v818_v31 = vshrl.u32 %v3071_v24, 16  ;;  %v821_v32 = vshll.u32 %v3071_v24, 16  ;;  %v995_v35 = vsel %vm2904_vm2, %v944_v23, 0  ;;  %v662_v37 = vmax.f32 %v626_v29, 0.0 }
  0x2f   : > { %1038 = vrot.lane.b32.xlu1 %v3036_v41, %s2840_s27  ;;  %1036 = vrot.lane.b32.xlu0 %v3044_v45, %s2840_s27  ;;  %v949_v36 = vrot.slane %v828_v28, 1  ;;  %v3094_v42 = vrot.slane %v783_v58, 7  ;;  %v663_v44 = vmax.f32 %v627_v33, 0.0  ;;  %v582_v46 = vmul.f32 %v2517_v26, %v2939_v8 }
  0x30   : > { %v947_v43 = vrot.slane %v821_v32, 1  ;;  %v624_v48 = vadd.f32 %v2951_v18, %v581_v38  ;;  %v2528_v53 = vunpack.c.l.bf16 %v2556_v34  ;;  %v2529_v56 = vunpack.c.h.bf16 %v2556_v34 }
  0x31   : > { %v950_v47 = vor.u32 %v949_v36, %v825_v27  ;;  %v3106_v7 = vpack.c.bf16 %v663_v44, %v662_v37  ;;  %v625_v9 = vadd.f32 %v2951_v18, %v582_v46  ;;  %v2524_v10 = vunpack.c.l.bf16 %v2555_v39 }
  0x32   : > { %v948_v58 = vor.u32 %v947_v43, %v818_v31  ;;  %v3111_v12 = vrot.slane %v776_v60, 7  ;;  %v660_v13 = vmax.f32 %v624_v48, 0.0  ;;  %v587_v14 = vmul.f32 %v2528_v53, %v2939_v8 }
  0x33   : > { %1092 = vrot.lane.b32.xlu1 %v996_v30, %s2842_s28  ;;  %1090 = vrot.lane.b32.xlu0 %v995_v35, %s2842_s28  ;;  %v588_v15 = vmul.f32 %v2529_v56, %v2939_v8  ;;  %v998_v17 = vsel %vm2904_vm2, %v950_v47, 0  ;;  %v661_v19 = vmax.f32 %v625_v9, 0.0  ;;  %v839_v21 = vshrl.u32 %v3106_v7, 16 }
  0x34   : > { %v842_v22 = vshll.u32 %v3106_v7, 16  ;;  %v630_v23 = vadd.f32 %v2951_v18, %v587_v14  ;;  %v2525_v60 = vunpack.c.h.bf16 %v2555_v39  ;;  %v585_v26 = vmul.f32 %v2524_v10, %v2939_v8 }
  0x35   : > { %v631_v25 = vadd.f32 %v2951_v18, %v588_v15  ;;  %v997_v29 = vsel %vm2904_vm2, %v948_v58, 0  ;;  %v3129_v30 = vpack.c.bf16 %v661_v19, %v660_v13  ;;  %v2536_v34 = vunpack.c.l.bf16 %v2558_v16  ;;  %v2557_v58 = vld [vmem:[%s2932_s16 + $0x60] sm:$0xff]  }
  0x36   : > { %v953_v33 = vrot.slane %v842_v22, 1  ;;  %v666_v35 = vmax.f32 %v630_v23, 0.0  ;;  %v586_v37 = vmul.f32 %v2525_v60, %v2939_v8  ;;  %v628_v38 = vadd.f32 %v2951_v18, %v585_v26  ;;  %v2560_v60 = vld [vmem:[%s2932_s16 + $0x78] sm:$0xff]  }
  0x37   : > { %1042 = vrot.lane.b32.xlu1 %v3065_v20, %s2840_s27  ;;  %1040 = vrot.lane.b32.xlu0 %v3071_v24, %s2840_s27  ;;  %v667_v36 = vmax.f32 %v631_v25, 0.0  ;;  %v832_v43 = vshrl.u32 %v3129_v30, 16  ;;  %v835_v44 = vshll.u32 %v3129_v30, 16  ;;  %v2537_v46 = vunpack.c.h.bf16 %v2558_v16 }
  0x38   : > { %v954_v39 = vor.u32 %v953_v33, %v839_v21  ;;  %v629_v48 = vadd.f32 %v2951_v18, %v586_v37  ;;  %v664_v53 = vmax.f32 %v628_v38, 0.0  ;;  %v591_v56 = vmul.f32 %v2536_v34, %v2939_v8 }
  0x39   : > { %v3139_v47 = vpack.c.bf16 %v667_v36, %v666_v35  ;;  %v3146_v9 = vrot.slane %v797_v62, 7  ;;  %v3150_v10 = vrot.slane %v790_v2, 7  ;;  %v951_v13 = vrot.slane %v835_v44, 1 }
  0x3a   : > { %v592_v14 = vmul.f32 %v2537_v46, %v2939_v8  ;;  %v665_v15 = vmax.f32 %v629_v48, 0.0  ;;  %v634_v62 = vadd.f32 %v2951_v18, %v591_v56  ;;  %v2533_v25 = vunpack.c.h.bf16 %v2557_v58 }
  0x3b   : > { %1096 = vrot.lane.b32.xlu1 %v998_v17, %s2842_s28  ;;  %1094 = vrot.lane.b32.xlu0 %v997_v29, %s2842_s28  ;;  %v853_v16 = vshrl.u32 %v3139_v47, 16  ;;  %v856_v19 = vshll.u32 %v3139_v47, 16  ;;  %v952_v2 = vor.u32 %v951_v13, %v832_v43  ;;  %v2532_v17 = vunpack.c.l.bf16 %v2557_v58 }
  0x3c   : > { %v635_v23 = vadd.f32 %v2951_v18, %v592_v14  ;;  %v1000_v26 = vsel %vm2904_vm2, %v954_v39, 0  ;;  %v3166_v29 = vpack.c.bf16 %v665_v15, %v664_v53  ;;  %v670_v34 = vmax.f32 %v634_v62, 0.0  ;;  %v2559_v15 = vld [vmem:[%s2932_s16 + $0x70] sm:$0xff]  }
  0x3d   : > { %v957_v33 = vrot.slane %v856_v19, 1  ;;  %v999_v35 = vsel %vm2904_vm2, %v952_v2, 0  ;;  %v589_v37 = vmul.f32 %v2532_v17, %v2939_v8  ;;  %v590_v38 = vmul.f32 %v2533_v25, %v2939_v8 }
  0x3e   : > { %v671_v36 = vmax.f32 %v635_v23, 0.0  ;;  %v846_v46 = vshrl.u32 %v3166_v29, 16  ;;  %v849_v48 = vshll.u32 %v3166_v29, 16  ;;  %v2544_v53 = vunpack.c.l.bf16 %v2560_v60 }
  0x3f   : > { %1046 = vrot.lane.b32.xlu1 %v3106_v7, %s2840_s27  ;;  %1044 = vrot.lane.b32.xlu0 %v3129_v30, %s2840_s27  ;;  %v958_v39 = vor.u32 %v957_v33, %v853_v16  ;;  %v632_v58 = vadd.f32 %v2951_v18, %v589_v37  ;;  %v633_v13 = vadd.f32 %v2951_v18, %v590_v38  ;;  %v2545_v14 = vunpack.c.h.bf16 %v2560_v60 }
  0x40   : > { %v3182_v56 = vpack.c.bf16 %v671_v36, %v670_v34  ;;  %v813_v62 = vrot.slane %v811_v49, 7  ;;  %v806_v2 = vrot.slane %v804_v57, 7  ;;  %v955_v23 = vrot.slane %v849_v48, 1 }
  0x41   : > { %v595_v17 = vmul.f32 %v2544_v53, %v2939_v8  ;;  %v827_v25 = vrot.slane %v825_v27, 7  ;;  %v668_v60 = vmax.f32 %v632_v58, 0.0  ;;  %v669_v33 = vmax.f32 %v633_v13, 0.0 }
  0x42   : > { %v870_v34 = vshll.u32 %v3182_v56, 16  ;;  %v956_v49 = vor.u32 %v955_v23, %v846_v46  ;;  %v596_v36 = vmul.f32 %v2545_v14, %v2939_v8  ;;  %v2540_v37 = vunpack.c.l.bf16 %v2559_v15 }
  0x43   : > { %1100 = vrot.lane.b32.xlu1 %v1000_v26, %s2842_s28  ;;  %1098 = vrot.lane.b32.xlu0 %v999_v35, %s2842_s28  ;;  %v638_v57 = vadd.f32 %v2951_v18, %v595_v17  ;;  %v1002_v38 = vsel %vm2904_vm2, %v958_v39, 0  ;;  %v3203_v53 = vpack.c.bf16 %v669_v33, %v668_v60  ;;  %v867_v27 = vshrl.u32 %v3182_v56, 16 }
  0x44   : > { %v2541_v26 = vunpack.c.h.bf16 %v2559_v15  ;;  %v961_v35 = vrot.slane %v870_v34, 1  ;;  %v639_v58 = vadd.f32 %v2951_v18, %v596_v36  ;;  %v593_v23 = vmul.f32 %v2540_v37, %v2939_v8 }
  0x45   : > { %v674_v13 = vmax.f32 %v638_v57, 0.0  ;;  %v1001_v39 = vsel %vm2904_vm2, %v956_v49, 0  ;;  %v860_v14 = vshrl.u32 %v3203_v53, 16  ;;  %v863_v15 = vshll.u32 %v3203_v53, 16 }
  0x46   : > { %v594_v17 = vmul.f32 %v2541_v26, %v2939_v8  ;;  %v675_v60 = vmax.f32 %v639_v58, 0.0  ;;  %v636_v33 = vadd.f32 %v2951_v18, %v593_v23  ;;  %v3223_v36 = vor.u32 %v786_v59, %v3094_v42 }
  0x47   : > { %1050 = vrot.lane.b32.xlu1 %v3139_v47, %s2840_s27  ;;  %1048 = vrot.lane.b32.xlu0 %v3166_v29, %s2840_s27  ;;  %v3228_v57 = vor.u32 %v779_v61, %v3111_v12  ;;  %v820_v49 = vrot.slane %v818_v31, 7  ;;  %v841_v37 = vrot.slane %v839_v21, 7  ;;  %v959_v8 = vrot.slane %v863_v15, 1 }
  0x48   : > { %v637_v26 = vadd.f32 %v2951_v18, %v594_v17  ;;  %v834_v58 = vrot.slane %v832_v43, 7  ;;  %v962_v50 = vor.u32 %v961_v35, %v867_v27  ;;  %v766_v59 = vpack.c.bf16 %v675_v60, %v674_v13 }
  0x49   : > { %v672_v42 = vmax.f32 %v636_v33, 0.0  ;;  %v960_v51 = vor.u32 %v959_v8, %v860_v14  ;;  %v3241_v31 = vsel %vm1251_vm3, %v2974_v40, 0  ;;  %v3246_v18 = vor.u32 %v800_v63, %v3146_v9 }
  0x4a   : > { %v673_v61 = vmax.f32 %v637_v26, 0.0  ;;  %v855_v12 = vrot.slane %v853_v16, 7  ;;  %v884_v21 = vshll.u32 %v766_v59, 16  ;;  %v3253_v43 = vor.u32 %v793_v5, %v3150_v10 }
  0x4b   : > { %1104 = vrot.lane.b32.xlu1 %v1002_v38, %s2842_s28  ;;  %1102 = vrot.lane.b32.xlu0 %v1001_v39, %s2842_s28  ;;  %v3257_v38 = vor.u32 %v814_v52, %v813_v62  ;;  %v848_v40 = vrot.slane %v846_v46, 7  ;;  %v869_v35 = vrot.slane %v867_v27, 7  ;;  %v3261_v54 = vor.u32 %v807_v6, %v806_v2 }
  0x4c   : > { %v765_v13 = vpack.c.bf16 %v673_v61, %v672_v42  ;;  %v1004_v63 = vsel %vm2904_vm2, %v962_v50, 0  ;;  %v862_v9 = vrot.slane %v860_v14, 7  ;;  %v1003_v55 = vsel %vm2904_vm2, %v960_v51, 0 }
  0x4d   : > { %v881_v5 = vshrl.u32 %v766_v59, 16  ;;  %v965_v41 = vrot.slane %v884_v21, 1  ;;  %v3273_v45 = vor.u32 %v828_v28, %v827_v25  ;;  %v3277_v16 = vor.u32 %v821_v32, %v820_v49 }
  0x4e   : > { %v874_v52 = vshrl.u32 %v765_v13, 16  ;;  %v877_v10 = vshll.u32 %v765_v13, 16  ;;  %v3281_v46 = vor.u32 %v842_v22, %v841_v37  ;;  %v3285_v62 = vor.u32 %v835_v44, %v834_v58 }
  0x4f   : > { %1054 = vrot.lane.b32.xlu1 %v3182_v56, %s2840_s27  ;;  %1052 = vrot.lane.b32.xlu0 %v3203_v53, %s2840_s27  ;;  %v883_v6 = vrot.slane %v881_v5, 7  ;;  %v3289_v20 = vor.u32 %v856_v19, %v855_v12  ;;  %v966_v24 = vor.u32 %v965_v41, %v881_v5  ;;  %v3295_v28 = vor.u32 %v849_v48, %v848_v40 }
  0x50   : > { %v876_v2 = vrot.slane %v874_v52, 7  ;;  %v963_v53 = vrot.slane %v877_v10, 1  ;;  %v3299_v32 = vor.u32 %v870_v34, %v869_v35  ;;  %v3301_v22 = vor.u32 %v863_v15, %v862_v9 }
  0x51   : > { %v3303_v30 = vor.u32 %v884_v21, %v883_v6  ;;  %v1006_v47 = vsel %vm2904_vm2, %v966_v24, 0  ;;  %v771_v29 = vrot.slane %v2841_v1, 7  ;;  %v917_v27 = vsel %vm3321_vm6, 0, %v3223_v36 }
  0x52   : > { %v964_v7 = vor.u32 %v963_v53, %v874_v52  ;;  %v3305_v44 = vor.u32 %v877_v10, %v876_v2  ;;  %v916_v23 = vsel %vm3321_vm6, 0, %v3228_v57  ;;  %v919_v49 = vsel %vm3321_vm6, 0, %v3246_v18 }
  0x53   : > { %1108 = vrot.lane.b32.xlu1 %v1004_v63, %s2842_s28  ;;  %1106 = vrot.lane.b32.xlu0 %v1003_v55, %s2842_s28  ;;  %v3327_v3 = vsel %vm3321_vm6, 0, %v771_v29  ;;  %v918_v37 = vsel %vm3321_vm6, 0, %v3253_v43  ;;  %v921_v61 = vsel %vm3321_vm6, 0, %v3257_v38  ;;  %v922_v63 = vsel %vm3321_vm6, 0, %v3277_v16 }
  0x54   : > { %v1005_v19 = vsel %vm2904_vm2, %v964_v7, 0  ;;  %v925_v16 = vsel %vm3321_vm6, 0, %v3281_v46  ;;  %v924_v2 = vsel %vm3321_vm6, 0, %v3285_v62 }
  0x57   : > { %1058 = vrot.lane.b32.xlu1 %v766_v59, %s2840_s27  ;;  %1056 = vrot.lane.b32.xlu0 %v765_v13, %s2840_s27 }
  0x5b   : > { %1112 = vrot.lane.b32.xlu1 %v1006_v47, %s2842_s28  ;;  %1110 = vrot.lane.b32.xlu0 %v1005_v19, %s2842_s28 }
  0x5f   : > { %1060 = vrot.lane.b32.xlu0 %v2839_v0, %s2840_s27  ;;  %1114 = vrot.lane.b32.xlu1 %v2910_v4, %s2842_s28 }
  0x79   : > { %v1027_v56 = vpop.permute.xlu0 %1026 }
  0x7a   : > { %v1119_v0 = vsel %vm1116_vm7, %v3327_v3, %v1027_v56  ;;  %v927_v56 = vsel %vm3321_vm6, 0, %v3289_v20 }
  0x7c   : > { %v1081_v4 = vpop.permute.xlu1 %1080 }
  0x7d   : > { %v1173_v25 = vsel %vm1171_vm8, %v1119_v0, %v1081_v4  ;;  %v926_v0 = vsel %vm3321_vm6, 0, %v3295_v28 }
  0x7e   : > { %2648 = vmatprep.mubr.msk.bf16.mxu0 %vm1218_vm9, %v1173_v25 }
  0x8e   : > { %v1031_v1 = vpop.permute.xlu1 %1030  ;;  %v1029_v34 = vpop.permute.xlu0 %1028 }
  0x8f   : > { %v1125_v39 = vsel %vm1116_vm7, %v917_v27, %v1031_v1  ;;  %v1122_v14 = vsel %vm1116_vm7, %v916_v23, %v1029_v34 }
  0x95   : > { %v1085_v15 = vpop.permute.xlu1 %1084  ;;  %v1083_v17 = vpop.permute.xlu0 %1082 }
  0x96   : > { %v1177_v60 = vsel %vm1171_vm8, %v1125_v39, %v1085_v15  ;;  %v1175_v33 = vsel %vm1171_vm8, %v1122_v14, %v1083_v17  ;;  %v929_v39 = vsel %vm3321_vm6, 0, %v3299_v32  ;;  %v928_v14 = vsel %vm3321_vm6, 0, %v3301_v22 }
  0x97   : > { %2614 = vmatprep.mubr.msk.bf16.mxu1 %vm1218_vm9, %v1175_v33  ;;  %2649 = vmatmul.mubr.msk.bf16.vlgmr.msra.gmra.mrb[0].mxu0 %vm1218_vm9, %v1175_v33 }
  0x98   : > { %2615 = vmatmul.mubr.msk.bf16.vlgmr.msra.gmra.mrb[0].mxu1 %vm1218_vm9, %v1177_v60  ;;  %2652 = vmatprep.mubr.msk.bf16.mxu0 %vm1218_vm9, %v1177_v60 }
  0x99   : > { %2715 = vmatpush3.bf16.msra.mxu1 %v2946_v11  ;;  %2681 = vmatpush3.bf16.msra.mxu0 %v3241_v31  ;;  %v1035_v36 = vpop.permute.xlu1 %1034  ;;  %v1033_v57 = vpop.permute.xlu0 %1032  ;;  %v920_v31 = vsel %vm3321_vm6, 0, %v3261_v54  ;;  %v923_v54 = vsel %vm3321_vm6, 0, %v3273_v45 }
  0x9a   : > { %v1131_v8 = vsel %vm1116_vm7, %v919_v49, %v1035_v36  ;;  %v1128_v26 = vsel %vm1116_vm7, %v918_v37, %v1033_v57  ;;  %v931_v49 = vsel %vm3321_vm6, 0, %v3303_v30  ;;  %v930_v37 = vsel %vm3321_vm6, 0, %v3305_v44 }
  0x9d   : > { %v1089_v58 = vpop.permute.xlu1 %1088  ;;  %v1087_v50 = vpop.permute.xlu0 %1086 }
  0x9e   : > { %v1181_v11 = vsel %vm1171_vm8, %v1131_v8, %v1089_v58  ;;  %v1179_v59 = vsel %vm1171_vm8, %v1128_v26, %v1087_v50 }
  0x9f   : > { %2618 = vmatprep.mubr.msk.bf16.mxu1 %vm1218_vm9, %v1179_v59  ;;  %2653 = vmatmul.mubr.msk.bf16.gmra.mrb[4].mxu0 %vm1218_vm9, %v1179_v59 }
  0xa0   : > { %2619 = vmatmul.mubr.msk.bf16.gmra.mrb[4].mxu1 %vm1218_vm9, %v1181_v11  ;;  %2656 = vmatprep.mubr.msk.bf16.mxu0 %vm1218_vm9, %v1181_v11 }
  0xa1   : > { %v1039_v42 = vpop.permute.xlu1 %1038  ;;  %v1037_v51 = vpop.permute.xlu0 %1036 }
  0xa2   : > { %v1137_v18 = vsel %vm1116_vm7, %v921_v61, %v1039_v42  ;;  %v1134_v12 = vsel %vm1116_vm7, %v920_v31, %v1037_v51 }
  0xa5   : > { %v1093_v21 = vpop.permute.xlu1 %1092  ;;  %v1091_v43 = vpop.permute.xlu0 %1090 }
  0xa6   : > { %v1185_v40 = vsel %vm1171_vm8, %v1137_v18, %v1093_v21  ;;  %v1183_v35 = vsel %vm1171_vm8, %v1134_v12, %v1091_v43 }
  0xa7   : > { %2622 = vmatprep.mubr.msk.bf16.mxu1 %vm1218_vm9, %v1183_v35  ;;  %2657 = vmatmul.mubr.msk.bf16.gmra.mrb[8].mxu0 %vm1218_vm9, %v1183_v35 }
  0xa8   : > { %2623 = vmatmul.mubr.msk.bf16.gmra.mrb[8].mxu1 %vm1218_vm9, %v1185_v40  ;;  %2660 = vmatprep.mubr.msk.bf16.mxu0 %vm1218_vm9, %v1185_v40 }
  0xa9   : > { %v1043_v38 = vpop.permute.xlu1 %1042  ;;  %v1041_v13 = vpop.permute.xlu0 %1040 }
  0xaa   : > { %v1143_v9 = vsel %vm1116_vm7, %v923_v54, %v1043_v38  ;;  %v1140_v55 = vsel %vm1116_vm7, %v922_v63, %v1041_v13 }
  0xad   : > { %v1097_v5 = vpop.permute.xlu1 %1096  ;;  %v1095_v41 = vpop.permute.xlu0 %1094 }
  0xae   : > { %v1189_v52 = vsel %vm1171_vm8, %v1143_v9, %v1097_v5  ;;  %v1187_v10 = vsel %vm1171_vm8, %v1140_v55, %v1095_v41  ;;  %v3484_v41 = vld [vmem:[%s3680_s5] ss:$0 sm:$0xff] }
  0xaf   : > { %2626 = vmatprep.mubr.msk.bf16.mxu1 %vm1218_vm9, %v1187_v10  ;;  %2661 = vmatmul.mubr.msk.bf16.gmra.mrb[12].mxu0 %vm1218_vm9, %v1187_v10 }
  0xb0   : > { %2627 = vmatmul.mubr.msk.bf16.gmra.mrb[12].mxu1 %vm1218_vm9, %v1189_v52  ;;  %2682 = vmatprep.mubr.msk.bf16.mxu0 %vm1218_vm9, %v1177_v60 }
  0xb1   : > { %v1047_v45 = vpop.permute.xlu1 %1046  ;;  %v1045_v6 = vpop.permute.xlu0 %1044 }
  0xb2   : > { %v1149_v53 = vsel %vm1116_vm7, %v925_v16, %v1047_v45  ;;  %v1146_v24 = vsel %vm1116_vm7, %v924_v2, %v1045_v6 }
  0xb5   : > { %v1101_v7 = vpop.permute.xlu1 %1100  ;;  %v1099_v47 = vpop.permute.xlu0 %1098 }
  0xb6   : > { %v1193_v19 = vsel %vm1171_vm8, %v1149_v53, %v1101_v7  ;;  %v1191_v29 = vsel %vm1171_vm8, %v1146_v24, %v1099_v47 }
  0xb7   : > { %2630 = vmatprep.mubr.msk.bf16.mxu1 %vm1218_vm9, %v1191_v29  ;;  %2683 = vmatmul.mubr.msk.bf16.vlgmr.msra.gmra.mrb[0].mxu0 %vm1218_vm9, %v1179_v59 }
  0xb8   : > { %2631 = vmatmul.mubr.msk.bf16.gmra.mrb[16].mxu1 %vm1218_vm9, %v1193_v19  ;;  %2686 = vmatprep.mubr.msk.bf16.mxu0 %vm1218_vm9, %v1181_v11 }
  0xb9   : > { %v1051_v46 = vpop.permute.xlu1 %1050  ;;  %v1049_v62 = vpop.permute.xlu0 %1048 }
  0xba   : > { %v1155_v4 = vsel %vm1116_vm7, %v927_v56, %v1051_v46  ;;  %v1152_v25 = vsel %vm1116_vm7, %v926_v0, %v1049_v62 }
  0xbd   : > { %v1105_v1 = vpop.permute.xlu1 %1104  ;;  %v1103_v34 = vpop.permute.xlu0 %1102 }
  0xbe   : > { %v1197_v27 = vsel %vm1171_vm8, %v1155_v4, %v1105_v1  ;;  %v1195_v23 = vsel %vm1171_vm8, %v1152_v25, %v1103_v34 }
  0xbf   : > { %2634 = vmatprep.mubr.msk.bf16.mxu1 %vm1218_vm9, %v1195_v23  ;;  %2687 = vmatmul.mubr.msk.bf16.gmra.mrb[4].mxu0 %vm1218_vm9, %v1183_v35 }
  0xc0   : > { %2635 = vmatmul.mubr.msk.bf16.gmra.mrb[20].mxu1 %vm1218_vm9, %v1197_v27  ;;  %2690 = vmatprep.mubr.msk.bf16.mxu0 %vm1218_vm9, %v1185_v40 }
  0xc1   : > { %v1055_v20 = vpop.permute.xlu1 %1054  ;;  %v1053_v28 = vpop.permute.xlu0 %1052 }
  0xc2   : > { %v1161_v15 = vsel %vm1116_vm7, %v929_v39, %v1055_v20  ;;  %v1158_v17 = vsel %vm1116_vm7, %v928_v14, %v1053_v28 }
  0xc5   : > { %v1109_v60 = vpop.permute.xlu1 %1108  ;;  %v1107_v33 = vpop.permute.xlu0 %1106 }
  0xc6   : > { %v1201_v36 = vsel %vm1171_vm8, %v1161_v15, %v1109_v60  ;;  %v1199_v57 = vsel %vm1171_vm8, %v1158_v17, %v1107_v33 }
  0xc7   : > { %2638 = vmatprep.mubr.msk.bf16.mxu1 %vm1218_vm9, %v1199_v57  ;;  %2691 = vmatmul.mubr.msk.bf16.gmra.mrb[8].mxu0 %vm1218_vm9, %v1187_v10 }
  0xc8   : > { %2639 = vmatmul.mubr.msk.bf16.gmra.mrb[24].mxu1 %vm1218_vm9, %v1201_v36  ;;  %2694 = vmatprep.mubr.msk.bf16.mxu0 %vm1218_vm9, %v1189_v52 }
  0xc9   : > { %v1059_v32 = vpop.permute.xlu1 %1058  ;;  %v1057_v22 = vpop.permute.xlu0 %1056 }
  0xca   : > { %v1167_v8 = vsel %vm1116_vm7, %v931_v49, %v1059_v32  ;;  %v1164_v26 = vsel %vm1116_vm7, %v930_v37, %v1057_v22 }
  0xcd   : > { %v1113_v58 = vpop.permute.xlu1 %1112  ;;  %v1111_v50 = vpop.permute.xlu0 %1110 }
  0xce   : > { %v1205_v11 = vsel %vm1171_vm8, %v1167_v8, %v1113_v58  ;;  %v1203_v59 = vsel %vm1171_vm8, %v1164_v26, %v1111_v50 }
  0xcf   : > { %2642 = vmatprep.mubr.msk.bf16.mxu1 %vm1218_vm9, %v1203_v59  ;;  %2695 = vmatmul.mubr.msk.bf16.gmra.mrb[12].mxu0 %vm1218_vm9, %v1191_v29 }
  0xd0   : > { %2643 = vmatmul.mubr.msk.bf16.gmra.mrb[28].mxu1 %vm1218_vm9, %v1205_v11  ;;  %2698 = vmatprep.mubr.msk.bf16.mxu0 %vm1218_vm9, %v1193_v19 }
  0xd1   : > { %2664 = vmatprep.mubr.msk.bf16.mxu1 %vm1218_vm9, %v1189_v52  ;;  %v1061_v30 = vpop.permute.xlu0 %1060  ;;  %v1115_v48 = vpop.permute.xlu1 %1114 }
  0xd2   : > { %v1170_v44 = vsel %vm1116_vm7, %v3327_v3, %v1061_v30 }
  0xd3   : > { %v1207_v42 = vsel %vm1171_vm8, %v1170_v44, %v1115_v48 }
  0xd7   : > { %2699 = vmatmul.mubr.msk.bf16.gmra.mrb[16].mxu0 %vm1218_vm9, %v1195_v23 }
  0xd8   : > { %2665 = vmatmul.mubr.msk.bf16.vlgmr.msra.gmra.mrb[16].mxu1 %vm1218_vm9, %v1191_v29  ;;  %2702 = vmatprep.mubr.msk.bf16.mxu0 %vm1218_vm9, %v1197_v27 }
  0xd9   : > { %2668 = vmatprep.mubr.msk.bf16.mxu1 %vm1218_vm9, %v1193_v19 }
  0xdf   : > { %2703 = vmatmul.mubr.msk.bf16.gmra.mrb[20].mxu0 %vm1218_vm9, %v1199_v57 }
  0xe0   : > { %2669 = vmatmul.mubr.msk.bf16.gmra.mrb[20].mxu1 %vm1218_vm9, %v1195_v23  ;;  %2706 = vmatprep.mubr.msk.bf16.mxu0 %vm1218_vm9, %v1201_v36 }
  0xe1   : > { %2672 = vmatprep.mubr.msk.bf16.mxu1 %vm1218_vm9, %v1197_v27 }
  0xe7   : > { %2707 = vmatmul.mubr.msk.bf16.gmra.mrb[24].mxu0 %vm1218_vm9, %v1203_v59 }
  0xe8   : > { %2673 = vmatmul.mubr.msk.bf16.gmra.mrb[24].mxu1 %vm1218_vm9, %v1199_v57  ;;  %2710 = vmatprep.mubr.msk.bf16.mxu0 %vm1218_vm9, %v1205_v11 }
  0xe9   : > { %2676 = vmatprep.mubr.msk.bf16.mxu1 %vm1218_vm9, %v1201_v36 }
  0xef   : > { %2711 = vmatmul.mubr.msk.bf16.gmra.mrb[28].mxu0 %vm1218_vm9, %v1207_v42 }
  0xf0   : > { %2677 = vmatmul.mubr.msk.bf16.gmra.mrb[28].mxu1 %vm1218_vm9, %v1203_v59 }
 0x16b   : > { %v2616_v51 = vpop.f32.mrb[0].mxu1 }
 0x16c   : > { %v1289_v61 = vpop.f32.mrb[1].mxu1 }
 0x16d   : > { %v2617_v31 = vpop.f32.mrb[2].mxu1 }
 0x16e   : > { %v1292_v18 = vpop.f32.mrb[3].mxu1 }
 0x173   : > { %v2620_v12 = vpop.f32.mrb[4].mxu1 }
 0x174   : > { %v1305_v21 = vpop.f32.mrb[5].mxu1 }
 0x175   : > { %v2621_v43 = vpop.f32.mrb[6].mxu1 }
 0x176   : > { %v1308_v40 = vpop.f32.mrb[7].mxu1 }
 0x17b   : > { %v3465_v35 = vpop.f32.mrb[8].mxu1 }
 0x17c   : > { %v3467_v38 = vpop.f32.mrb[9].mxu1 }
 0x17d   : > { %v3469_v3 = vpop.f32.mrb[10].mxu1 }
 0x17e   : > { %v3471_v13 = vpop.f32.mrb[11].mxu1 }
 0x183   : > { %v3473_v54 = vpop.f32.mrb[12].mxu1 }
 0x184   : > { %v3475_v63 = vpop.f32.mrb[13].mxu1 }
 0x185   : > { %v3477_v9 = vpop.f32.mrb[14].mxu1 }
 0x186   : > { %v3479_v55 = vpop.f32.mrb[15].mxu1 }
 0x18a   : > { %v2684_v5 = vpop.f32.mrb[0].mxu0 }
 0x18b   : > { %v2716_v52 = vadd.f32 %v2684_v5, %v2616_v51  ;;  %v1634_v10 = vpop.f32.mrb[1].mxu0 }
 0x18c   : > { %v2717_v45 = vadd.f32 %v1634_v10, %v1289_v61  ;;  %v2685_v6 = vpop.f32.mrb[2].mxu0 }
 0x18d   : > { %v1802_v16 = vadd.f32 %v2716_v52, %v3484_v41  ;;  %v2718_v2 = vadd.f32 %v2685_v6, %v2617_v31  ;;  %v1637_v53 = vpop.f32.mrb[3].mxu0 }
 0x18e   : > { %v1800_v24 = vadd.f32 %v2717_v45, %v3484_v41  ;;  %v2719_v7 = vadd.f32 %v1637_v53, %v1292_v18 }
 0x18f   : > { %v2452_v47 = vpack.c.bf16 %v1802_v16, %v1802_v16  ;;  %v1803_v19 = vadd.f32 %v2718_v2, %v3484_v41  ;;  %v2064_v56 = vmul.f32 %v1802_v16, %v1802_v16  ;;  %v1996_v14 = vsel %vm1116_vm7, %v1802_v16, 0.0 }
 0x190   : > { %v2450_v29 = vpack.c.bf16 %v1800_v24, %v1800_v24  ;;  %v2062_v46 = vmul.f32 %v1800_v24, %v1800_v24  ;;  %v1801_v62 = vadd.f32 %v2719_v7, %v3484_v41  ;;  %v1993_v4 = vsel %vm1116_vm7, %v1800_v24, 0.0 }
 0x191   : > { %1963 = vst.msk [vmem:[%s3492_s30 + $0x8] sm:$0xf] %vm1960_vm10, %v2452_v47  ;;  %v2453_v0 = vpack.c.bf16 %v1803_v19, %v1803_v19  ;;  %v2065_v23 = vmul.f32 %v1803_v19, %v1803_v19  ;;  %v2097_v37 = vsel %vm1116_vm7, %v2064_v56, 0.0  ;;  %v1998_v58 = vsel %vm1116_vm7, %v1803_v19, 0.0 }
 0x192   : > { %1961 = vst.msk [vmem:[%s3492_s30] sm:$0xf] %vm1960_vm10, %v2450_v29  ;;  %v2451_v25 = vpack.c.bf16 %v1801_v62, %v1801_v62  ;;  %v1994_v1 = vsel %vm1116_vm7, %v1801_v62, 0.0  ;;  %v2063_v34 = vmul.f32 %v1801_v62, %v1801_v62  ;;  %v2688_v27 = vpop.f32.mrb[4].mxu0  ;;  %v2094_v15 = vsel %vm1116_vm7, %v2062_v46, 0.0 }
 0x193   : > { %1964 = vst.msk [vmem:[%s3492_s30 + $0xc] sm:$0xf] %vm1960_vm10, %v2453_v0  ;;  %v1995_v20 = vadd.f32 %v1994_v1, %v1993_v4  ;;  %v2720_v28 = vadd.f32 %v2688_v27, %v2620_v12  ;;  %v1650_v39 = vpop.f32.mrb[5].mxu0  ;;  %v2099_v50 = vsel %vm1116_vm7, %v2065_v23, 0.0 }
 0x194   : > { %1962 = vst.msk [vmem:[%s3492_s30 + $0x4] sm:$0xf] %vm1960_vm10, %v2451_v25  ;;  %v2095_v17 = vsel %vm1116_vm7, %v2063_v34, 0.0  ;;  %v2721_v60 = vadd.f32 %v1650_v39, %v1305_v21  ;;  %v2689_v33 = vpop.f32.mrb[6].mxu0 }
 0x195   : > { %v1997_v36 = vadd.f32 %v1996_v14, %v1995_v20  ;;  %v2096_v57 = vadd.f32 %v2095_v17, %v2094_v15  ;;  %v1806_v32 = vadd.f32 %v2720_v28, %v3484_v41  ;;  %v2722_v22 = vadd.f32 %v2689_v33, %v2621_v43  ;;  %v1653_v49 = vpop.f32.mrb[7].mxu0 }
 0x196   : > { %v1804_v8 = vadd.f32 %v2721_v60, %v3484_v41  ;;  %v2723_v26 = vadd.f32 %v1653_v49, %v1308_v40 }
 0x197   : > { %v2098_v11 = vadd.f32 %v2097_v37, %v2096_v57  ;;  %v2456_v59 = vpack.c.bf16 %v1806_v32, %v1806_v32  ;;  %v1999_v44 = vadd.f32 %v1998_v58, %v1997_v36  ;;  %v1807_v61 = vadd.f32 %v2722_v22, %v3484_v41 }
 0x198   : > { %v2454_v30 = vpack.c.bf16 %v1804_v8, %v1804_v8  ;;  %v2000_v48 = vsel %vm1116_vm7, %v1804_v8, 0.0  ;;  %v2066_v42 = vmul.f32 %v1804_v8, %v1804_v8  ;;  %v1805_v31 = vadd.f32 %v2723_v26, %v3484_v41 }
 0x199   : > { %1967 = vst.msk [vmem:[%s3492_s30 + $0x18] sm:$0xf] %vm1960_vm10, %v2456_v59  ;;  %v2100_v51 = vadd.f32 %v2099_v50, %v2098_v11  ;;  %v2001_v18 = vadd.f32 %v2000_v48, %v1999_v44  ;;  %v2068_v43 = vmul.f32 %v1806_v32, %v1806_v32  ;;  %v2457_v5 = vpack.c.bf16 %v1807_v61, %v1807_v61 }
 0x19a   : > { %1965 = vst.msk [vmem:[%s3492_s30 + $0x10] sm:$0xf] %vm1960_vm10, %v2454_v30  ;;  %v2101_v12 = vsel %vm1116_vm7, %v2066_v42, 0.0  ;;  %v2692_v21 = vpop.f32.mrb[8].mxu0  ;;  %v2455_v10 = vpack.c.bf16 %v1805_v31, %v1805_v31  ;;  %v2002_v45 = vsel %vm1116_vm7, %v1805_v31, 0.0  ;;  %v2067_v6 = vmul.f32 %v1805_v31, %v1805_v31 }
 0x19b   : > { %v2102_v40 = vadd.f32 %v2101_v12, %v2100_v51  ;;  %v1666_v52 = vpop.f32.mrb[9].mxu0  ;;  %v2724_v16 = vadd.f32 %v2692_v21, %v3465_v35  ;;  %v2004_v53 = vsel %vm1116_vm7, %v1806_v32, 0.0  ;;  %1968 = vst.msk [vmem:[%s3492_s30 + $0x1c] sm:$0xf] %vm1960_vm10, %v2457_v5  ;;  %v2003_v24 = vadd.f32 %v2002_v45, %v2001_v18 }
 0x19c   : > { %v2693_v2 = vpop.f32.mrb[10].mxu0  ;;  %v2725_v7 = vadd.f32 %v1666_v52, %v3467_v38  ;;  %v2069_v29 = vmul.f32 %v1807_v61, %v1807_v61  ;;  %1966 = vst.msk [vmem:[%s3492_s30 + $0x14] sm:$0xf] %vm1960_vm10, %v2455_v10  ;;  %v2103_v46 = vsel %vm1116_vm7, %v2067_v6, 0.0  ;;  %v2105_v38 = vsel %vm1116_vm7, %v2068_v43, 0.0 }
 0x19d   : > { %v2726_v47 = vadd.f32 %v2693_v2, %v3469_v3  ;;  %v1669_v19 = vpop.f32.mrb[11].mxu0  ;;  %v1810_v62 = vadd.f32 %v2724_v16, %v3484_v41  ;;  %v2005_v56 = vadd.f32 %v2004_v53, %v2003_v24  ;;  %v2104_v0 = vadd.f32 %v2103_v46, %v2102_v40 }
 0x19e   : > { %v2727_v35 = vadd.f32 %v1669_v19, %v3471_v13  ;;  %v1808_v4 = vadd.f32 %v2725_v7, %v3484_v41  ;;  %v2006_v3 = vsel %vm1116_vm7, %v1807_v61, 0.0  ;;  %v2107_v28 = vsel %vm1116_vm7, %v2069_v29, 0.0 }
 0x19f   : > { %v1811_v25 = vadd.f32 %v2726_v47, %v3484_v41  ;;  %v2460_v1 = vpack.c.bf16 %v1810_v62, %v1810_v62  ;;  %v2106_v27 = vadd.f32 %v2105_v38, %v2104_v0  ;;  %v2007_v20 = vadd.f32 %v2006_v3, %v2005_v56 }
 0x1a0   : > { %v1809_v34 = vadd.f32 %v2727_v35, %v3484_v41  ;;  %v2458_v23 = vpack.c.bf16 %v1808_v4, %v1808_v4  ;;  %v2008_v13 = vsel %vm1116_vm7, %v1808_v4, 0.0  ;;  %v2012_v39 = vsel %vm1116_vm7, %v1810_v62, 0.0 }
 0x1a1   : > { %1971 = vst.msk [vmem:[%s3492_s30 + $0x28] sm:$0xf] %vm1960_vm10, %v2460_v1  ;;  %v2070_v14 = vmul.f32 %v1808_v4, %v1808_v4  ;;  %v2461_v15 = vpack.c.bf16 %v1811_v25, %v1811_v25  ;;  %v2072_v60 = vmul.f32 %v1810_v62, %v1810_v62  ;;  %v2009_v33 = vadd.f32 %v2008_v13, %v2007_v20 }
 0x1a2   : > { %v2696_v17 = vpop.f32.mrb[12].mxu0  ;;  %1969 = vst.msk [vmem:[%s3492_s30 + $0x20] sm:$0xf] %vm1960_vm10, %v2458_v23  ;;  %v2108_v36 = vadd.f32 %v2107_v28, %v2106_v27  ;;  %v2459_v57 = vpack.c.bf16 %v1809_v34, %v1809_v34  ;;  %v2010_v49 = vsel %vm1116_vm7, %v1809_v34, 0.0  ;;  %v2071_v37 = vmul.f32 %v1809_v34, %v1809_v34 }
 0x1a3   : > { %v1682_v32 = vpop.f32.mrb[13].mxu0  ;;  %v2109_v22 = vsel %vm1116_vm7, %v2070_v14, 0.0  ;;  %1972 = vst.msk [vmem:[%s3492_s30 + $0x2c] sm:$0xf] %vm1960_vm10, %v2461_v15  ;;  %v2728_v8 = vadd.f32 %v2696_v17, %v3473_v54  ;;  %v2073_v50 = vmul.f32 %v1811_v25, %v1811_v25  ;;  %v2011_v11 = vadd.f32 %v2010_v49, %v2009_v33 }
 0x1a4   : > { %v2697_v26 = vpop.f32.mrb[14].mxu0  ;;  %v2110_v58 = vadd.f32 %v2109_v22, %v2108_v36  ;;  %1970 = vst.msk [vmem:[%s3492_s30 + $0x24] sm:$0xf] %vm1960_vm10, %v2459_v57  ;;  %v2729_v59 = vadd.f32 %v1682_v32, %v3475_v63  ;;  %v2111_v44 = vsel %vm1116_vm7, %v2071_v37, 0.0  ;;  %v2113_v18 = vsel %vm1116_vm7, %v2072_v60, 0.0 }
 0x1a5   : > { %v1685_v30 = vpop.f32.mrb[15].mxu0  ;;  %v1814_v48 = vadd.f32 %v2728_v8, %v3484_v41  ;;  %v2730_v42 = vadd.f32 %v2697_v26, %v3477_v9  ;;  %v2013_v61 = vadd.f32 %v2012_v39, %v2011_v11  ;;  %v2014_v12 = vsel %vm1116_vm7, %v1811_v25, 0.0 }
 0x1a6   : > { %v2731_v51 = vadd.f32 %v1685_v30, %v3479_v55  ;;  %v2112_v54 = vadd.f32 %v2111_v44, %v2110_v58  ;;  %v1812_v31 = vadd.f32 %v2729_v59, %v3484_v41  ;;  %v2115_v55 = vsel %vm1116_vm7, %v2073_v50, 0.0 }
 0x1a7   : > { %v2464_v63 = vpack.c.bf16 %v1814_v48, %v1814_v48  ;;  %v1815_v21 = vadd.f32 %v2730_v42, %v3484_v41  ;;  %v2015_v5 = vadd.f32 %v2014_v12, %v2013_v61  ;;  %v2076_v46 = vmul.f32 %v1814_v48, %v1814_v48 }
 0x1a8   : > { %v2114_v43 = vadd.f32 %v2113_v18, %v2112_v54  ;;  %v2462_v40 = vpack.c.bf16 %v1812_v31, %v1812_v31  ;;  %v2016_v9 = vsel %vm1116_vm7, %v1812_v31, 0.0  ;;  %v2074_v52 = vmul.f32 %v1812_v31, %v1812_v31 }
 0x1a9   : > { %1975 = vst.msk [vmem:[%s3492_s30 + $0x38] sm:$0xf] %vm1960_vm10, %v2464_v63  ;;  %v2465_v10 = vpack.c.bf16 %v1815_v21, %v1815_v21  ;;  %v2017_v6 = vadd.f32 %v2016_v9, %v2015_v5  ;;  %v1813_v2 = vadd.f32 %v2731_v51, %v3484_v41  ;;  %v2020_v27 = vsel %vm1116_vm7, %v1814_v48, 0.0 }
 0x1aa   : > { %v2700_v45 = vpop.f32.mrb[16].mxu0  ;;  %1973 = vst.msk [vmem:[%s3492_s30 + $0x30] sm:$0xf] %vm1960_vm10, %v2462_v40  ;;  %v2116_v16 = vadd.f32 %v2115_v55, %v2114_v43  ;;  %v2117_v7 = vsel %vm1116_vm7, %v2074_v52, 0.0  ;;  %v2077_v23 = vmul.f32 %v1815_v21, %v1815_v21  ;;  %v2022_v15 = vsel %vm1116_vm7, %v1815_v21, 0.0 }
 0x1ab   : > { %v2666_v53 = vpop.f32.mrb[16].mxu1  ;;  %v1698_v24 = vpop.f32.mrb[17].mxu0  ;;  %1976 = vst.msk [vmem:[%s3492_s30 + $0x3c] sm:$0xf] %vm1960_vm10, %v2465_v10  ;;  %v2463_v35 = vpack.c.bf16 %v1813_v2, %v1813_v2  ;;  %v2018_v56 = vsel %vm1116_vm7, %v1813_v2, 0.0  ;;  %v2075_v38 = vmul.f32 %v1813_v2, %v1813_v2  ;;  %v2121_v36 = vsel %vm1116_vm7, %v2076_v46, 0.0 }
 0x1ac   : > { %v2732_v47 = vadd.f32 %v2700_v45, %v2666_v53  ;;  %v1524_v19 = vpop.f32.mrb[17].mxu1  ;;  %v2701_v29 = vpop.f32.mrb[18].mxu0  ;;  %v2118_v62 = vadd.f32 %v2117_v7, %v2116_v16  ;;  %v2019_v25 = vadd.f32 %v2018_v56, %v2017_v6  ;;  %v2123_v49 = vsel %vm1116_vm7, %v2077_v23, 0.0 }
 0x1ad   : > { %v2667_v0 = vpop.f32.mrb[18].mxu1  ;;  %v1701_v4 = vpop.f32.mrb[19].mxu0  ;;  %v2733_v1 = vadd.f32 %v1698_v24, %v1524_v19  ;;  %1974 = vst.msk [vmem:[%s3492_s30 + $0x34] sm:$0xf] %vm1960_vm10, %v2463_v35  ;;  %v2119_v39 = vsel %vm1116_vm7, %v2075_v38, 0.0 }
 0x1ae   : > { %v1818_v3 = vadd.f32 %v2732_v47, %v3484_v41  ;;  %v1527_v34 = vpop.f32.mrb[19].mxu1  ;;  %v2734_v20 = vadd.f32 %v2701_v29, %v2667_v0  ;;  %v2021_v28 = vadd.f32 %v2020_v27, %v2019_v25  ;;  %v2120_v17 = vadd.f32 %v2119_v39, %v2118_v62 }
 0x1af   : > { %v2735_v13 = vadd.f32 %v1701_v4, %v1527_v34  ;;  %v1816_v60 = vadd.f32 %v2733_v1, %v3484_v41 }
 0x1b0   : > { %v2468_v14 = vpack.c.bf16 %v1818_v3, %v1818_v3  ;;  %v1819_v33 = vadd.f32 %v2734_v20, %v3484_v41  ;;  %v2023_v57 = vadd.f32 %v2022_v15, %v2021_v28  ;;  %v2122_v37 = vadd.f32 %v2121_v36, %v2120_v17 }
 0x1b1   : > { %v1817_v32 = vadd.f32 %v2735_v13, %v3484_v41  ;;  %v2466_v8 = vpack.c.bf16 %v1816_v60, %v1816_v60  ;;  %v2024_v26 = vsel %vm1116_vm7, %v1816_v60, 0.0  ;;  %v2028_v11 = vsel %vm1116_vm7, %v1818_v3, 0.0 }
 0x1b2   : > { %1979 = vst.msk [vmem:[%s3492_s30 + $0x48] sm:$0xf] %vm1960_vm10, %v2468_v14  ;;  %v2704_v22 = vpop.f32.mrb[20].mxu0  ;;  %v2025_v59 = vadd.f32 %v2024_v26, %v2023_v57  ;;  %v2078_v30 = vmul.f32 %v1816_v60, %v1816_v60  ;;  %v2469_v44 = vpack.c.bf16 %v1819_v33, %v1819_v33  ;;  %v2080_v51 = vmul.f32 %v1818_v3, %v1818_v3 }
 0x1b3   : > { %v2670_v58 = vpop.f32.mrb[20].mxu1  ;;  %v1714_v50 = vpop.f32.mrb[21].mxu0  ;;  %1977 = vst.msk [vmem:[%s3492_s30 + $0x40] sm:$0xf] %vm1960_vm10, %v2466_v8  ;;  %v2124_v61 = vadd.f32 %v2123_v49, %v2122_v37  ;;  %v2467_v54 = vpack.c.bf16 %v1817_v32, %v1817_v32  ;;  %v2026_v31 = vsel %vm1116_vm7, %v1817_v32, 0.0  ;;  %v2079_v43 = vmul.f32 %v1817_v32, %v1817_v32 }
 0x1b4   : > { %v1540_v48 = vpop.f32.mrb[21].mxu1  ;;  %v2705_v42 = vpop.f32.mrb[22].mxu0  ;;  %v2125_v63 = vsel %vm1116_vm7, %v2078_v30, 0.0  ;;  %1980 = vst.msk [vmem:[%s3492_s30 + $0x4c] sm:$0xf] %vm1960_vm10, %v2469_v44  ;;  %v2027_v21 = vadd.f32 %v2026_v31, %v2025_v59  ;;  %v2736_v40 = vadd.f32 %v2704_v22, %v2670_v58  ;;  %v2081_v55 = vmul.f32 %v1819_v33, %v1819_v33 }
 0x1b5   : > { %v2671_v18 = vpop.f32.mrb[22].mxu1  ;;  %v1717_v12 = vpop.f32.mrb[23].mxu0  ;;  %v2126_v9 = vadd.f32 %v2125_v63, %v2124_v61  ;;  %1978 = vst.msk [vmem:[%s3492_s30 + $0x44] sm:$0xf] %vm1960_vm10, %v2467_v54  ;;  %v2737_v52 = vadd.f32 %v1714_v50, %v1540_v48  ;;  %v2127_v6 = vsel %vm1116_vm7, %v2079_v43, 0.0  ;;  %v2030_v53 = vsel %vm1116_vm7, %v1819_v33, 0.0 }
 0x1b6   : > { %v1543_v5 = vpop.f32.mrb[23].mxu1  ;;  %v2738_v10 = vadd.f32 %v2705_v42, %v2671_v18  ;;  %v2029_v45 = vadd.f32 %v2028_v11, %v2027_v21  ;;  %v1822_v16 = vadd.f32 %v2736_v40, %v3484_v41  ;;  %v2129_v19 = vsel %vm1116_vm7, %v2080_v51, 0.0 }
 0x1b7   : > { %v2739_v2 = vadd.f32 %v1717_v12, %v1543_v5  ;;  %v2128_v24 = vadd.f32 %v2127_v6, %v2126_v9  ;;  %v1820_v7 = vadd.f32 %v2737_v52, %v3484_v41  ;;  %v2131_v3 = vsel %vm1116_vm7, %v2081_v55, 0.0 }
 0x1b8   : > { %v1823_v47 = vadd.f32 %v2738_v10, %v3484_v41  ;;  %v2472_v29 = vpack.c.bf16 %v1822_v16, %v1822_v16  ;;  %v2031_v46 = vadd.f32 %v2030_v53, %v2029_v45  ;;  %v2084_v36 = vmul.f32 %v1822_v16, %v1822_v16 }
 0x1b9   : > { %v2130_v35 = vadd.f32 %v2129_v19, %v2128_v24  ;;  %v2470_v56 = vpack.c.bf16 %v1820_v7, %v1820_v7  ;;  %v2032_v0 = vsel %vm1116_vm7, %v1820_v7, 0.0  ;;  %v2082_v4 = vmul.f32 %v1820_v7, %v1820_v7 }
 0x1ba   : > { %v2708_v62 = vpop.f32.mrb[24].mxu0  ;;  %1983 = vst.msk [vmem:[%s3492_s30 + $0x58] sm:$0xf] %vm1960_vm10, %v2472_v29  ;;  %v2033_v1 = vadd.f32 %v2032_v0, %v2031_v46  ;;  %v2473_v34 = vpack.c.bf16 %v1823_v47, %v1823_v47  ;;  %v1821_v28 = vadd.f32 %v2739_v2, %v3484_v41  ;;  %v2036_v58 = vsel %vm1116_vm7, %v1822_v16, 0.0 }
 0x1bb   : > { %v2674_v25 = vpop.f32.mrb[24].mxu1  ;;  %v1730_v38 = vpop.f32.mrb[25].mxu0  ;;  %1981 = vst.msk [vmem:[%s3492_s30 + $0x50] sm:$0xf] %vm1960_vm10, %v2470_v56  ;;  %v2132_v20 = vadd.f32 %v2131_v3, %v2130_v35  ;;  %v2133_v13 = vsel %vm1116_vm7, %v2082_v4, 0.0  ;;  %v2085_v50 = vmul.f32 %v1823_v47, %v1823_v47  ;;  %v2038_v51 = vsel %vm1116_vm7, %v1823_v47, 0.0 }
 0x1bc   : > { %v1556_v27 = vpop.f32.mrb[25].mxu1  ;;  %v2709_v23 = vpop.f32.mrb[26].mxu0  ;;  %1984 = vst.msk [vmem:[%s3492_s30 + $0x5c] sm:$0xf] %vm1960_vm10, %v2473_v34  ;;  %v2740_v15 = vadd.f32 %v2708_v62, %v2674_v25  ;;  %v2471_v32 = vpack.c.bf16 %v1821_v28, %v1821_v28  ;;  %v2034_v22 = vsel %vm1116_vm7, %v1821_v28, 0.0  ;;  %v2083_v37 = vmul.f32 %v1821_v28, %v1821_v28 }
 0x1bd   : > { %v2675_v39 = vpop.f32.mrb[26].mxu1  ;;  %v1733_v14 = vpop.f32.mrb[27].mxu0  ;;  %v2741_v17 = vadd.f32 %v1730_v38, %v1556_v27  ;;  %v2134_v57 = vadd.f32 %v2133_v13, %v2132_v20  ;;  %v2035_v49 = vadd.f32 %v2034_v22, %v2033_v1  ;;  %v2137_v63 = vsel %vm1116_vm7, %v2084_v36, 0.0 }
 0x1be   : > { %v2742_v60 = vadd.f32 %v2709_v23, %v2675_v39  ;;  %v1559_v33 = vpop.f32.mrb[27].mxu1  ;;  %v1826_v8 = vadd.f32 %v2740_v15, %v3484_v41  ;;  %1982 = vst.msk [vmem:[%s3492_s30 + $0x54] sm:$0xf] %vm1960_vm10, %v2471_v32  ;;  %v2135_v44 = vsel %vm1116_vm7, %v2083_v37, 0.0  ;;  %v2139_v55 = vsel %vm1116_vm7, %v2085_v50, 0.0 }
 0x1bf   : > { %v1824_v26 = vadd.f32 %v2741_v17, %v3484_v41  ;;  %v2743_v59 = vadd.f32 %v1733_v14, %v1559_v33  ;;  %v2037_v30 = vadd.f32 %v2036_v58, %v2035_v49  ;;  %v2136_v61 = vadd.f32 %v2135_v44, %v2134_v57 }
 0x1c0   : > { %v1827_v11 = vadd.f32 %v2742_v60, %v3484_v41  ;;  %v2476_v48 = vpack.c.bf16 %v1826_v8, %v1826_v8  ;;  %v2044_v10 = vsel %vm1116_vm7, %v1826_v8, 0.0  ;;  %v2088_v19 = vmul.f32 %v1826_v8, %v1826_v8 }
 0x1c1   : > { %v2474_v54 = vpack.c.bf16 %v1824_v26, %v1824_v26  ;;  %v2040_v31 = vsel %vm1116_vm7, %v1824_v26, 0.0  ;;  %v2039_v21 = vadd.f32 %v2038_v51, %v2037_v30  ;;  %v2086_v43 = vmul.f32 %v1824_v26, %v1824_v26 }
 0x1c2   : > { %v2712_v42 = vpop.f32.mrb[28].mxu0  ;;  %1987 = vst.msk [vmem:[%s3492_s30 + $0x68] sm:$0xf] %vm1960_vm10, %v2476_v48  ;;  %v2477_v40 = vpack.c.bf16 %v1827_v11, %v1827_v11  ;;  %v2138_v52 = vadd.f32 %v2137_v63, %v2136_v61  ;;  %v1825_v45 = vadd.f32 %v2743_v59, %v3484_v41  ;;  %v2046_v38 = vsel %vm1116_vm7, %v1827_v11, 0.0 }
 0x1c3   : > { %v2678_v18 = vpop.f32.mrb[28].mxu1  ;;  %v1746_v12 = vpop.f32.mrb[29].mxu0  ;;  %1985 = vst.msk [vmem:[%s3492_s30 + $0x60] sm:$0xf] %vm1960_vm10, %v2474_v54  ;;  %v2041_v2 = vadd.f32 %v2040_v31, %v2039_v21  ;;  %v2141_v53 = vsel %vm1116_vm7, %v2086_v43, 0.0  ;;  %v2089_v34 = vmul.f32 %v1827_v11, %v1827_v11  ;;  %v2145_v13 = vsel %vm1116_vm7, %v2088_v19, 0.0 }
 0x1c4   : > { %v1572_v5 = vpop.f32.mrb[29].mxu1  ;;  %v2713_v9 = vpop.f32.mrb[30].mxu0  ;;  %1988 = vst.msk [vmem:[%s3492_s30 + $0x6c] sm:$0xf] %vm1960_vm10, %v2477_v40  ;;  %v2744_v24 = vadd.f32 %v2712_v42, %v2678_v18  ;;  %v2140_v29 = vadd.f32 %v2139_v55, %v2138_v52  ;;  %v2475_v46 = vpack.c.bf16 %v1825_v45, %v1825_v45  ;;  %v2042_v62 = vsel %vm1116_vm7, %v1825_v45, 0.0 }
 0x1c5   : > { %v2679_v6 = vpop.f32.mrb[30].mxu1  ;;  %v1749_v16 = vpop.f32.mrb[31].mxu0  ;;  %v2745_v7 = vadd.f32 %v1746_v12, %v1572_v5  ;;  %v2043_v35 = vadd.f32 %v2042_v62, %v2041_v2  ;;  %v2087_v56 = vmul.f32 %v1825_v45, %v1825_v45  ;;  %v2147_v57 = vsel %vm1116_vm7, %v2089_v34, 0.0 }
 0x1c6   : > { %v1575_v47 = vpop.f32.mrb[31].mxu1  ;;  %v1830_v0 = vadd.f32 %v2744_v24, %v3484_v41  ;;  %v2142_v25 = vadd.f32 %v2141_v53, %v2140_v29  ;;  %1986 = vst.msk [vmem:[%s3492_s30 + $0x64] sm:$0xf] %vm1960_vm10, %v2475_v46  ;;  %v2746_v3 = vadd.f32 %v2713_v9, %v2679_v6 }
 0x1c7   : > { %v1828_v4 = vadd.f32 %v2745_v7, %v3484_v41  ;;  %v2747_v1 = vadd.f32 %v1749_v16, %v1575_v47  ;;  %v2045_v27 = vadd.f32 %v2044_v10, %v2043_v35  ;;  %v2143_v23 = vsel %vm1116_vm7, %v2087_v56, 0.0 }
 0x1c8   : > { %v2480_v20 = vpack.c.bf16 %v1830_v0, %v1830_v0  ;;  %v2144_v28 = vadd.f32 %v2143_v23, %v2142_v25  ;;  %v1831_v60 = vadd.f32 %v2746_v3, %v3484_v41  ;;  %v2092_v58 = vmul.f32 %v1830_v0, %v1830_v0 }
 0x1c9   : > { %v2478_v39 = vpack.c.bf16 %v1828_v4, %v1828_v4  ;;  %v2048_v14 = vsel %vm1116_vm7, %v1828_v4, 0.0  ;;  %v2047_v15 = vadd.f32 %v2046_v38, %v2045_v27  ;;  %v2090_v17 = vmul.f32 %v1828_v4, %v1828_v4 }
 0x1ca   : > { %1991 = vst.msk [vmem:[%s3492_s30 + $0x78] sm:$0xf] %vm1960_vm10, %v2480_v20  ;;  %v1829_v33 = vadd.f32 %v2747_v1, %v3484_v41  ;;  %v2146_v36 = vadd.f32 %v2145_v13, %v2144_v28  ;;  %v2481_v49 = vpack.c.bf16 %v1831_v60, %v1831_v60  ;;  %v2052_v41 = vsel %vm1116_vm7, %v1830_v0, 0.0 }
 0x1cb   : > { %1989 = vst.msk [vmem:[%s3492_s30 + $0x70] sm:$0xf] %vm1960_vm10, %v2478_v39  ;;  %v2049_v32 = vadd.f32 %v2048_v14, %v2047_v15  ;;  %v2149_v22 = vsel %vm1116_vm7, %v2090_v17, 0.0  ;;  %v2093_v30 = vmul.f32 %v1831_v60, %v1831_v60  ;;  %v2054_v42 = vsel %vm1116_vm7, %v1831_v60, 0.0 }
 0x1cc   : > { %v2148_v37 = vadd.f32 %v2147_v57, %v2146_v36  ;;  %v2479_v8 = vpack.c.bf16 %v1829_v33, %v1829_v33  ;;  %v2050_v26 = vsel %vm1116_vm7, %v1829_v33, 0.0  ;;  %1992 = vst.msk [vmem:[%s3492_s30 + $0x7c] sm:$0xf] %vm1960_vm10, %v2481_v49  ;;  %v2091_v11 = vmul.f32 %v1829_v33, %v1829_v33 }
 0x1cd   : > { %v2051_v50 = vadd.f32 %v2050_v26, %v2049_v32  ;;  %v2153_v61 = vsel %vm1116_vm7, %v2092_v58, 0.0  ;;  %v2155_v18 = vsel %vm1116_vm7, %v2093_v30, 0.0 }
 0x1ce   : > { %v2150_v59 = vadd.f32 %v2149_v22, %v2148_v37  ;;  %1990 = vst.msk [vmem:[%s3492_s30 + $0x74] sm:$0xf] %vm1960_vm10, %v2479_v8  ;;  %v2151_v48 = vsel %vm1116_vm7, %v2091_v11, 0.0 }
 0x1cf   : > { %v2053_v44 = vadd.f32 %v2052_v41, %v2051_v50 }
 0x1d0   : > { %v2152_v51 = vadd.f32 %v2151_v48, %v2150_v59 }
 0x1d1   : > { %v2055_v54 = vadd.f32 %v2054_v42, %v2053_v44 }
 0x1d2   : > { %v2154_v31 = vadd.f32 %v2153_v61, %v2152_v51 }
 0x1d3   : > { %v2056_v12 = vrot.slane %v2055_v54, 4 }
 0x1d4   : > { %v2156_v63 = vadd.f32 %v2155_v18, %v2154_v31 }
 0x1d5   : > { %v2057_v21 = vadd.f32 %v2056_v12, %v2055_v54 }
 0x1d6   : > { %v2157_v43 = vrot.slane %v2156_v63, 4 }
 0x1d7   : > { %v2058_v40 = vrot.slane %v2057_v21, 2 }
 0x1d8   : > { %v2158_v5 = vadd.f32 %v2157_v43, %v2156_v63 }
 0x1d9   : > { %v2059_v9 = vadd.f32 %v2058_v40, %v2057_v21 }
 0x1da   : > { %v2159_v55 = vrot.slane %v2158_v5, 2 }
 0x1db   : > { %v2060_v52 = vrot.slane %v2059_v9, 1 }
 0x1dc   : > { %v2160_v10 = vadd.f32 %v2159_v55, %v2158_v5 }
 0x1dd   : > { %v2061_v6 = vadd.f32 %v2060_v52, %v2059_v9 }
 0x1de   : > { %v2161_v45 = vrot.slane %v2160_v10, 1 }
 0x1e0   : > { %v2162_v16 = vadd.f32 %v2161_v45, %v2160_v10 }
 0x1e2   : > { %v2164_v2 = vsel %vm912_vm4, %v2061_v6, %v2162_v16 }
 0x1e3   : > { %2166 = vst.msk [vmem:[%s408_s10] sm:$0x3] %vm2165_vm11, %v2164_v2 }
 0x1e4 PF: > { %s18_s25 = sadd.s32 1, %s2837_s25   ;;  %s3687_s24 = smov %s2833_s1 }
 0x1e5   : > { %p15_p5 = scmp.ge.s32.totalorder %s18_s25, 4   ;;  %s3688_s1 = smov %s3690_s26 }
 0x1e7   :  { %17 = sbr.rel (!%p15_p5) target bundleno = 2 (0x2), region = 97 }

// kernel: up2d_forward.4
= control target key start
LH: loop header
LB: loop body
LE: loop exit
PB: predicated region body
PF: predicated region fallthrough
CT: control target
= control target key end

     0   :  { %s4373_s26 = smov 0   ;;  %s4375_s27 = smov 0   ;;  %s5366_s0 = inlined_call_operand.vmem [shape: bf16[2,16,16,4], index: 0, kind: input, shape index: {}]   ;;  %s5367_s1 = inlined_call_operand.vmem [shape: bf16[2,2,16,4], index: 1, kind: input, shape index: {}]   ;;  %s5368_s2 = inlined_call_operand.vmem [shape: bf16[2,16,16,4], index: 2, kind: input, shape index: {}]   ;;  %s5369_s3 = inlined_call_operand.vmem [shape: bf16[2,2,16,4], index: 3, kind: input, shape index: {}]   ;;  %s5370_s4 = inlined_call_operand.vmem [shape: bf16[3,12,4], index: 4, kind: input, shape index: {}]   ;;  %s5371_s5 = inlined_call_operand.vmem [shape: bf16[3,12,4], index: 5, kind: input, shape index: {}]   ;;  %s5372_s6 = inlined_call_operand.vmem [shape: f32[1,4], index: 6, kind: input, shape index: {}]   ;;  %s5373_s7 = inlined_call_operand.vmem [shape: bf16[2,16,16,4], index: 7, kind: output, shape index: {0}]   ;;  %s5374_s8 = inlined_call_operand.vmem [shape: f32[2,1,2,4], index: 8, kind: output, shape index: {1}]  }
   0x1   :  { %s4377_s3 = smov 0  }
   0x2 LB: > { %s31_s28 = sadd.s32 1, %s4318_s27  ;;  %p3531_p0 = scmp.ge.s32.totalorder %s4322_s3, 1  ;;  %s4322_s3 = sphi %s4377_s3, %s19_s3   ;;  %s4318_s27 = sphi %s4375_s27, %s5383_s27   ;;  %s4314_s26 = sphi %s4373_s26, %s5382_s26  }
   0x3   : > { %p33_p1 = scmp.ge.s32.totalorder %s31_s28, 2  ;;  %p343_p2 = scmp.lt.s32.totalorder %s4322_s3, 3 }
   0x5   : > { %s5385_s28 = smov (%p33_p1, %s31_s28), 0  ;;  %p344_p3 = pnand %p3531_p0, %p343_p2 }
   0x6   : > { %vm942_vm0 = vcmask (!%p344_p3), 1047552   ;;  %vm943_vm1 = vsmask.f32 (!%p344_p3), 7424  ;;  %v5375_v0 = vmov (!%p344_p3), 0.0|0.0   ;;  %s4325_s29 = smov (!%p344_p3), 4   ;;  %v4326_v1 = vmov (!%p344_p3), 0  }
   0x7   : > { %347 = sbr.rel (%p344_p3) target bundleno = 626 (0x272), region = 48  ;;  %2126 = vrot.lane.b32.xlu0 (!%p344_p3), %v5375_v0, %s4325_s29  ;;  %v888_v2 = vrot.slane (!%p344_p3), %v4326_v1, 1  ;;  %vm4394_vm2 = vmand (!%p344_p3), %vm942_vm0, %vm943_vm1  ;;  %p425_p4 = scmp.lt.s32.totalorder (!%p344_p3), %s4314_s26, 1  ;;  %v4293_v5 = vld [vmem:[%s5370_s4 + $0x8] sm:$0x3f] (!%p344_p3)   ;;  %vm1206_vm3 = vcmask (!%p344_p3), 1045504  }
   0x8   : > { %s4327_s30 = smov (!%p344_p3), 8   ;;  %v4294_v6 = vld [vmem:[%s5371_s5] sm:$0x3f] (!%p344_p3)   ;;  %4223 = vmatprep.subr.msk.bf16.mxu1 (!%p344_p3), %vm1206_vm3, %v4293_v5  ;;  %v1208_v7 = vsel (!%p344_p3), %vm1206_vm3, %v4293_v5, 0  ;;  %vm867_vm4 = vcmask (!%p344_p3), 1040384   ;;  %vm1071_vm7 = vcmask (!%p344_p3), 31744  }
   0x9   : > { %v4400_v4 = vsel (!%p344_p3), %vm4394_vm2, %v888_v2, 0  ;;  %4226 = vmatprep.subr.msk.bf16.mxu0 (!%p344_p3), %vm1206_vm3, %v4294_v6  ;;  %3860 = vmatpush3.bf16.msra.mxu1 (!%p344_p3), %v1208_v7  ;;  %v2346_v9 = vsel (!%p344_p3), %vm1206_vm3, %v4294_v6, 0  ;;  %vm868_vm5 = vsmask.f32 (!%p344_p3), 256  ;;  %vm1126_vm8 = vcmask (!%p344_p3), 64512  }
   0xa   : > { %2180 = vrot.lane.b32.xlu1 (!%p344_p3), %v4400_v4, %s4327_s30  ;;  %3962 = vmatpush3.bf16.msra.mxu0 (!%p344_p3), %v2346_v9  ;;  %vm4678_vm6 = vmand (!%p344_p3), %vm867_vm4, %vm868_vm5  ;;  %vm1173_vm9 = vcmask (!%p344_p3), 97280   ;;  %vm3120_vm10 = vcmask (!%p344_p3), 27648   ;;  %vm3325_vm11 = vcmask (!%p344_p3), 25600  }
   0xe   : > { %s5387_s26 = smov (!%p425_p4, %s4314_s26), 1 }
   0xf   : > { %s4410_s11 = sshll.u32 %s5387_s26, 7 }
  0x10   : > { %s4419_s16 = scalar_lea.vmem %s5366_s0, %s4410_s11  ;;  %s4428_s19 = scalar_lea.vmem %s5368_s2, %s4410_s11 }
  0x11   : > { %v4262_v8 = vld [vmem:[%s4419_s16 + $0x8] sm:$0xff]   ;;  %v4263_v10 = vld [vmem:[%s4419_s16] sm:$0xff]   ;;  %v4266_v15 = vld [vmem:[%s4419_s16 + $0x10] sm:$0xff]   ;;  %s5191_s13 = scalar_lea.vmem %s5373_s7, %s4410_s11  ;;  %s3542_s11 = sshll.u32 %s5387_s26, 1 }
  0x12   : > { %985 = vrot.lane.b32.xlu1 %v4262_v8, %s4325_s29  ;;  %v4264_v11 = vld [vmem:[%s4428_s19 + $0x8] sm:$0xff]   ;;  %v738_v12 = vshrl.u32 %v4262_v8, 16  ;;  %983 = vrot.lane.b32.xlu0 %v4263_v10, %s4325_s29  ;;  %v4265_v13 = vld [vmem:[%s4428_s19] sm:$0xff]   ;;  %v731_v14 = vshrl.u32 %v4263_v10, 16  ;;  %v734_v16 = vshll.u32 %v4263_v10, 16  ;;  %v741_v18 = vshll.u32 %v4262_v8, 16 }
  0x13   : > { %v1882_v20 = vshrl.u32 %v4265_v13, 16  ;;  %v1885_v21 = vshll.u32 %v4265_v13, 16  ;;  %v4267_v23 = vld [vmem:[%s4419_s16 + $0x18] sm:$0xff]   ;;  %v748_v24 = vshll.u32 %v4266_v15, 16  ;;  %v745_v28 = vshrl.u32 %v4266_v15, 16  ;;  %v4268_v29 = vld [vmem:[%s4428_s19 + $0x10] sm:$0xff]  }
  0x14   : > { %v740_v17 = vrot.slane %v738_v12, 7  ;;  %v890_v19 = vrot.slane %v734_v16, 1  ;;  %v892_v22 = vrot.slane %v741_v18, 1  ;;  %v733_v30 = vrot.slane %v731_v14, 7  ;;  %v4269_v51 = vld [vmem:[%s4419_s16 + $0x20] sm:$0xff]   ;;  %v4270_v58 = vld [vmem:[%s4428_s19 + $0x18] sm:$0xff]  }
  0x15   : > { %v2038_v27 = vrot.slane %v1885_v21, 1  ;;  %v894_v32 = vrot.slane %v748_v24, 1  ;;  %v1892_v33 = vshll.u32 %v4264_v11, 16  ;;  %v1889_v37 = vshrl.u32 %v4264_v11, 16  ;;  %v4271_v5 = vld [vmem:[%s4419_s16 + $0x28] sm:$0xff]   ;;  %v4272_v7 = vld [vmem:[%s4428_s19 + $0x20] sm:$0xff]  }
  0x16   : > { %2130 = vrot.lane.b32.xlu1 %v4264_v11, %s4325_s29  ;;  %2128 = vrot.lane.b32.xlu0 %v4265_v13, %s4325_s29  ;;  %v4441_v25 = vor.u32 %v741_v18, %v740_v17  ;;  %v891_v26 = vor.u32 %v890_v19, %v731_v14  ;;  %v893_v31 = vor.u32 %v892_v22, %v738_v12  ;;  %v755_v38 = vshll.u32 %v4267_v23, 16 }
  0x17   : > { %v2039_v35 = vor.u32 %v2038_v27, %v1882_v20  ;;  %v895_v40 = vor.u32 %v894_v32, %v745_v28  ;;  %v2040_v41 = vrot.slane %v1892_v33, 1  ;;  %v1899_v42 = vshll.u32 %v4268_v29, 16  ;;  %v4274_v32 = vld [vmem:[%s4428_s19 + $0x28] sm:$0xff]  }
  0x18   : > { %v946_v34 = vsel %vm4394_vm2, %v891_v26, 0  ;;  %v947_v36 = vsel %vm4394_vm2, %v893_v31, 0  ;;  %v4452_v43 = vor.u32 %v734_v16, %v733_v30  ;;  %v1891_v44 = vrot.slane %v1889_v37, 7  ;;  %v4273_v26 = vld [vmem:[%s4419_s16 + $0x30] sm:$0xff]  }
  0x19   : > { %v2091_v39 = vsel %vm4394_vm2, %v2039_v35, 0  ;;  %v752_v45 = vshrl.u32 %v4267_v23, 16  ;;  %v896_v46 = vrot.slane %v755_v38, 1  ;;  %v948_v47 = vsel %vm4394_vm2, %v895_v40, 0  ;;  %v4275_v40 = vld [vmem:[%s4419_s16 + $0x38] sm:$0xff]  }
  0x1a   : > { %987 = vrot.lane.b32.xlu0 %v4266_v15, %s4325_s29  ;;  %1037 = vrot.lane.b32.xlu1 %v946_v34, %s4327_s30  ;;  %v2041_v48 = vor.u32 %v2040_v41, %v1889_v37  ;;  %v1896_v49 = vshrl.u32 %v4268_v29, 16  ;;  %v2042_v50 = vrot.slane %v1899_v42, 1  ;;  %v1884_v52 = vrot.slane %v1882_v20, 7 }
  0x1b   : > { %v747_v53 = vrot.slane %v745_v28, 7  ;;  %v4461_v54 = vor.u32 %v1892_v33, %v1891_v44  ;;  %v897_v56 = vor.u32 %v896_v46, %v752_v45  ;;  %v762_v59 = vshll.u32 %v4269_v51, 16 }
  0x1c   : > { %v2092_v55 = vsel %vm4394_vm2, %v2041_v48, 0  ;;  %v2043_v57 = vor.u32 %v2042_v50, %v1896_v49  ;;  %v759_v60 = vshrl.u32 %v4269_v51, 16  ;;  %v4466_v61 = vor.u32 %v1885_v21, %v1884_v52  ;;  %v4507_v48 = vld [vmem:[%s4419_s16 + $0x40] sm:$0xff]  }
  0x1d   : > { %v4468_v62 = vor.u32 %v748_v24, %v747_v53  ;;  %v754_v63 = vrot.slane %v752_v45, 7  ;;  %v1898_v2 = vrot.slane %v1896_v49, 7  ;;  %v949_v8 = vsel %vm4394_vm2, %v897_v56, 0 }
  0x1e   : > { %1039 = vrot.lane.b32.xlu0 %v947_v36, %s4327_s30  ;;  %2182 = vrot.lane.b32.xlu1 %v2091_v39, %s4327_s30  ;;  %v761_v6 = vrot.slane %v759_v60, 7  ;;  %v2093_v9 = vsel %vm4394_vm2, %v2043_v57, 0  ;;  %v898_v10 = vrot.slane %v762_v59, 1  ;;  %v1906_v11 = vshll.u32 %v4270_v58, 16 }
  0x1f   : > { %v1903_v12 = vshrl.u32 %v4270_v58, 16  ;;  %v4478_v13 = vor.u32 %v755_v38, %v754_v63  ;;  %v4480_v14 = vor.u32 %v1899_v42, %v1898_v2  ;;  %v766_v16 = vshrl.u32 %v4271_v5, 16  ;;  %v4276_v42 = vld [vmem:[%s4428_s19 + $0x30] sm:$0xff]  }
  0x20   : > { %v769_v17 = vshll.u32 %v4271_v5, 16  ;;  %v899_v18 = vor.u32 %v898_v10, %v759_v60  ;;  %v2044_v19 = vrot.slane %v1906_v11, 1  ;;  %v1913_v20 = vshll.u32 %v4272_v7, 16 }
  0x21   : > { %v1905_v15 = vrot.slane %v1903_v12, 7  ;;  %v4484_v21 = vor.u32 %v762_v59, %v761_v6  ;;  %v768_v22 = vrot.slane %v766_v16, 7  ;;  %v1910_v24 = vshrl.u32 %v4272_v7, 16 }
  0x22   : > { %989 = vrot.lane.b32.xlu0 %v4267_v23, %s4325_s29  ;;  %1041 = vrot.lane.b32.xlu1 %v948_v47, %s4327_s30  ;;  %v900_v23 = vrot.slane %v769_v17, 1  ;;  %v950_v27 = vsel %vm4394_vm2, %v899_v18, 0  ;;  %v2045_v28 = vor.u32 %v2044_v19, %v1903_v12  ;;  %v776_v35 = vshll.u32 %v4273_v26, 16 }
  0x23   : > { %v4491_v30 = vor.u32 %v1906_v11, %v1905_v15  ;;  %v4493_v31 = vor.u32 %v769_v17, %v768_v22  ;;  %v1912_v34 = vrot.slane %v1910_v24, 7  ;;  %v773_v38 = vshrl.u32 %v4273_v26, 16  ;;  %v4279_v17 = vld [vmem:[%s4419_s16 + $0x48] sm:$0xff]   ;;  %v4280_v22 = vld [vmem:[%s4428_s19 + $0x40] sm:$0xff]  }
  0x24   : > { %v901_v33 = vor.u32 %v900_v23, %v766_v16  ;;  %v2094_v36 = vsel %vm4394_vm2, %v2045_v28, 0  ;;  %v1917_v39 = vshrl.u32 %v4274_v32, 16  ;;  %v902_v46 = vrot.slane %v776_v35, 1  ;;  %v4278_v16 = vld [vmem:[%s4428_s19 + $0x38] sm:$0xff]   ;;  %v4539_v28 = vld [vmem:[%s4419_s16 + $0x50] sm:$0xff]  }
  0x25   : > { %v775_v41 = vrot.slane %v773_v38, 7  ;;  %v1920_v47 = vshll.u32 %v4274_v32, 16  ;;  %v780_v50 = vshrl.u32 %v4275_v40, 16  ;;  %v1924_v52 = vshrl.u32 %v4276_v42, 16 }
  0x26   : > { %2132 = vrot.lane.b32.xlu0 %v4268_v29, %s4325_s29  ;;  %2184 = vrot.lane.b32.xlu1 %v2092_v55, %s4327_s30  ;;  %v2046_v29 = vrot.slane %v1913_v20, 1  ;;  %v1919_v44 = vrot.slane %v1917_v39, 7  ;;  %v951_v45 = vsel %vm4394_vm2, %v901_v33, 0  ;;  %v787_v55 = vshrl.u32 %v4507_v48, 16 }
  0x27   : > { %v782_v53 = vrot.slane %v780_v50, 7  ;;  %v4514_v56 = vor.u32 %v776_v35, %v775_v41  ;;  %v1926_v59 = vrot.slane %v1924_v52, 7  ;;  %v903_v60 = vor.u32 %v902_v46, %v773_v38  ;;  %v4554_v35 = vld [vmem:[%s5371_s5 + $0x8] sm:$0x3f]  }
  0x28   : > { %v2047_v37 = vor.u32 %v2046_v29, %v1910_v24  ;;  %v4516_v57 = vor.u32 %v1920_v47, %v1919_v44  ;;  %v2048_v63 = vrot.slane %v1920_v47, 1  ;;  %v1927_v2 = vshll.u32 %v4276_v42, 16  ;;  %v4544_v29 = vld [vmem:[%s5370_s4] sm:$0x3f]   ;;  %4227 = vmatprep.subr.msk.bf16.mxu0 %vm1206_vm3, %v4554_v35 }
  0x29   : > { %v790_v6 = vshll.u32 %v4507_v48, 16  ;;  %v952_v10 = vsel %vm4394_vm2, %v903_v60, 0  ;;  %v1931_v23 = vshrl.u32 %v4278_v16, 16  ;;  %v794_v24 = vshrl.u32 %v4279_v17, 16  ;;  %4224 = vmatprep.subr.msk.bf16.mxu1 %vm1206_vm3, %v4544_v29 }
  0x2a   : > { %1043 = vrot.lane.b32.xlu0 %v949_v8, %s4327_s30  ;;  %2186 = vrot.lane.b32.xlu1 %v2093_v9, %s4327_s30  ;;  %v2095_v49 = vsel %vm4394_vm2, %v2047_v37, 0  ;;  %v4525_v9 = vor.u32 %v1927_v2, %v1926_v59  ;;  %v2049_v11 = vor.u32 %v2048_v63, %v1917_v39  ;;  %v2050_v12 = vrot.slane %v1927_v2, 1 }
  0x2b   : > { %v796_v33 = vrot.slane %v794_v24, 7  ;;  %v906_v38 = vrot.slane %v790_v6, 1  ;;  %v801_v41 = vshrl.u32 %v4539_v28, 16  ;;  %v1941_v44 = vshll.u32 %v4280_v22, 16 }
  0x2c   : > { %v2096_v18 = vsel %vm4394_vm2, %v2049_v11, 0  ;;  %v804_v60 = vshll.u32 %v4539_v28, 16 }
  0x2e   : > { %991 = vrot.lane.b32.xlu0 %v4269_v51, %s4325_s29  ;;  %2134 = vrot.lane.b32.xlu1 %v4270_v58, %s4325_s29  ;;  %v4511_v51 = vor.u32 %v1913_v20, %v1912_v34  ;;  %v783_v58 = vshll.u32 %v4275_v40, 16  ;;  %v2051_v20 = vor.u32 %v2050_v12, %v1924_v52  ;;  %v4549_v34 = vld [vmem:[%s4428_s19 + $0x48] sm:$0xff]   ;;  %v2054_v12 = vrot.slane %v1941_v44, 1 }
  0x2f   : > { %v1948_v63 = vshll.u32 %v4549_v34, 16 }
  0x30   : > { %v904_v8 = vrot.slane %v783_v58, 1  ;;  %v2097_v37 = vsel %vm4394_vm2, %v2051_v20, 0 }
  0x32   : > { %993 = vrot.lane.b32.xlu0 %v4271_v5, %s4325_s29  ;;  %1045 = vrot.lane.b32.xlu1 %v950_v27, %s4327_s30  ;;  %v789_v5 = vrot.slane %v787_v55, 7  ;;  %v905_v19 = vor.u32 %v904_v8, %v780_v50  ;;  %v1938_v27 = vshrl.u32 %v4280_v22, 16 }
  0x34   : > { %v4529_v15 = vor.u32 %v790_v6, %v789_v5  ;;  %v1940_v39 = vrot.slane %v1938_v27, 7  ;;  %v4284_v6 = vld [vmem:[%s4428_s19 + $0x50] sm:$0xff]  }
  0x36   : > { %2136 = vrot.lane.b32.xlu0 %v4272_v7, %s4325_s29  ;;  %2188 = vrot.lane.b32.xlu1 %v2094_v36, %s4327_s30  ;;  %v4521_v7 = vor.u32 %v783_v58, %v782_v53  ;;  %v953_v36 = vsel %vm4394_vm2, %v905_v19, 0  ;;  %v907_v53 = vor.u32 %v906_v38, %v787_v55  ;;  %v4578_v59 = vor.u32 %v1941_v44, %v1940_v39 }
  0x37   : > { %v1952_v19 = vshrl.u32 %v4284_v6, 16  ;;  %v910_v39 = vrot.slane %v804_v60, 1 }
  0x38   : > { %v954_v55 = vsel %vm4394_vm2, %v907_v53, 0 }
  0x3a   : > { %1047 = vrot.lane.b32.xlu0 %v951_v45, %s4327_s30  ;;  %2190 = vrot.lane.b32.xlu1 %v2095_v49, %s4327_s30  ;;  %v4567_v45 = vld [vmem:[%s4419_s16 + $0x58] sm:$0xff]   ;;  %v803_v49 = vrot.slane %v801_v41, 7 }
  0x3b   : > { %v808_v58 = vshrl.u32 %v4567_v45, 16 }
  0x3c   : > { %v4586_v8 = vor.u32 %v804_v60, %v803_v49  ;;  %v2056_v49 = vrot.slane %v1948_v63, 1 }
  0x3d   : > { %v810_v2 = vrot.slane %v808_v58, 7 }
  0x3e   : > { %995 = vrot.lane.b32.xlu0 %v4273_v26, %s4325_s29  ;;  %2138 = vrot.lane.b32.xlu1 %v4274_v32, %s4325_s29  ;;  %v1933_v26 = vrot.slane %v1931_v23, 7  ;;  %v1934_v32 = vshll.u32 %v4278_v16, 16 }
  0x40   : > { %v4569_v46 = vor.u32 %v1934_v32, %v1933_v26  ;;  %v2052_v47 = vrot.slane %v1934_v32, 1  ;;  %v2055_v26 = vor.u32 %v2054_v12, %v1938_v27  ;;  %v1955_v32 = vshll.u32 %v4284_v6, 16  ;;  %v4613_v27 = vld [vmem:[%s4419_s16 + $0x68] sm:$0xff]  }
  0x42   : > { %997 = vrot.lane.b32.xlu0 %v4275_v40, %s4325_s29  ;;  %1049 = vrot.lane.b32.xlu1 %v952_v10, %s4327_s30  ;;  %v797_v40 = vshll.u32 %v4279_v17, 16  ;;  %v2053_v5 = vor.u32 %v2052_v47, %v1931_v23  ;;  %v2099_v38 = vsel %vm4394_vm2, %v2055_v26, 0  ;;  %v911_v47 = vor.u32 %v910_v39, %v801_v41 }
  0x44   : > { %v4575_v52 = vor.u32 %v797_v40, %v796_v33  ;;  %v908_v11 = vrot.slane %v797_v40, 1  ;;  %v4285_v33 = vld [vmem:[%s4419_s16 + $0x60] sm:$0xff]   ;;  %v956_v41 = vsel %vm4394_vm2, %v911_v47, 0 }
  0x45   : > { %v815_v40 = vshrl.u32 %v4285_v33, 16  ;;  %v818_v53 = vshll.u32 %v4285_v33, 16 }
  0x46   : > { %2140 = vrot.lane.b32.xlu0 %v4276_v42, %s4325_s29  ;;  %2192 = vrot.lane.b32.xlu1 %v2096_v18, %s4327_s30  ;;  %v1945_v42 = vshrl.u32 %v4549_v34, 16  ;;  %v811_v18 = vshll.u32 %v4567_v45, 16  ;;  %v909_v23 = vor.u32 %v908_v11, %v794_v24 }
  0x48   : > { %v1947_v50 = vrot.slane %v1945_v42, 7  ;;  %v4593_v20 = vor.u32 %v811_v18, %v810_v2 }
  0x4a   : > { %1051 = vrot.lane.b32.xlu0 %v953_v36, %s4327_s30  ;;  %2194 = vrot.lane.b32.xlu1 %v2097_v37, %s4327_s30  ;;  %v4588_v10 = vor.u32 %v1948_v63, %v1947_v50  ;;  %v4603_v36 = vld [vmem:[%s4428_s19 + $0x58] sm:$0xff]   ;;  %v822_v50 = vshrl.u32 %v4613_v27, 16  ;;  %v2057_v63 = vor.u32 %v2056_v49, %v1945_v42  ;;  %v4289_v42 = vld [vmem:[%s4419_s16 + $0x70] sm:$0xff]  }
  0x4b   : > { %v1959_v24 = vshrl.u32 %v4603_v36, 16  ;;  %v1962_v2 = vshll.u32 %v4603_v36, 16  ;;  %v829_v47 = vshrl.u32 %v4289_v42, 16 }
  0x4c   : > { %v824_v60 = vrot.slane %v822_v50, 7  ;;  %v2100_v26 = vsel %vm4394_vm2, %v2057_v63, 0  ;;  %v832_v63 = vshll.u32 %v4289_v42, 16 }
  0x4d   : > { %v1961_v44 = vrot.slane %v1959_v24, 7 }
  0x4e   : > { %999 = vrot.lane.b32.xlu0 %v4507_v48, %s4325_s29  ;;  %2142 = vrot.lane.b32.xlu1 %v4278_v16, %s4325_s29  ;;  %v1954_v48 = vrot.slane %v1952_v19, 7  ;;  %v2098_v16 = vsel %vm4394_vm2, %v2053_v5, 0  ;;  %v912_v5 = vrot.slane %v811_v18, 1 }
  0x4f   : > { %v4626_v12 = vor.u32 %v1962_v2, %v1961_v44  ;;  %v914_v44 = vrot.slane %v818_v53, 1 }
  0x50   : > { %v4605_v37 = vor.u32 %v1955_v32, %v1954_v48  ;;  %v2058_v48 = vrot.slane %v1955_v32, 1  ;;  %v4290_v32 = vld [vmem:[%s4428_s19 + $0x68] sm:$0xff]  }
  0x52   : > { %1001 = vrot.lane.b32.xlu0 %v4279_v17, %s4325_s29  ;;  %1053 = vrot.lane.b32.xlu1 %v954_v55, %s4327_s30  ;;  %v955_v17 = vsel %vm4394_vm2, %v909_v23, 0  ;;  %v4288_v55 = vld [vmem:[%s4428_s19 + $0x60] sm:$0xff]  }
  0x56   : > { %2144 = vrot.lane.b32.xlu0 %v4280_v22, %s4325_s29  ;;  %2196 = vrot.lane.b32.xlu1 %v2098_v16, %s4327_s30  ;;  %v817_v22 = vrot.slane %v815_v40, 7  ;;  %v1966_v16 = vshrl.u32 %v4288_v55, 16 }
  0x58   : > { %v4624_v11 = vor.u32 %v818_v53, %v817_v22  ;;  %v1968_v18 = vrot.slane %v1966_v16, 7 }
  0x5a   : > { %1055 = vrot.lane.b32.xlu0 %v955_v17, %s4327_s30  ;;  %2198 = vrot.lane.b32.xlu1 %v2099_v38, %s4327_s30  ;;  %v913_v17 = vor.u32 %v912_v5, %v808_v58  ;;  %v1969_v38 = vshll.u32 %v4288_v55, 16  ;;  %v1973_v58 = vshrl.u32 %v4290_v32, 16  ;;  %v2060_v5 = vrot.slane %v1962_v2, 1 }
  0x5c   : > { %v4644_v39 = vor.u32 %v1969_v38, %v1968_v18  ;;  %v1975_v49 = vrot.slane %v1973_v58, 7  ;;  %v2061_v2 = vor.u32 %v2060_v5, %v1959_v24 }
  0x5e   : > { %1003 = vrot.lane.b32.xlu0 %v4539_v28, %s4325_s29  ;;  %2146 = vrot.lane.b32.xlu1 %v4549_v34, %s4325_s29  ;;  %v825_v28 = vshll.u32 %v4613_v27, 16  ;;  %v2059_v34 = vor.u32 %v2058_v48, %v1952_v19  ;;  %v4651_v19 = vld [vmem:[%s4419_s16 + $0x78] sm:$0xff]   ;;  %v1976_v48 = vshll.u32 %v4290_v32, 16  ;;  %s485_s16 = scalar_lea.vmem %s5374_s8, %s3542_s11 }
  0x60   : > { %v4633_v23 = vor.u32 %v825_v28, %v824_v60  ;;  %v2101_v22 = vsel %vm4394_vm2, %v2059_v34, 0  ;;  %v915_v60 = vor.u32 %v914_v44, %v815_v40  ;;  %v916_v53 = vrot.slane %v825_v28, 1 }
  0x61   : > { %v4662_v34 = vor.u32 %v1976_v48, %v1975_v49 }
  0x62   : > { %1005 = vrot.lane.b32.xlu0 %v4567_v45, %s4325_s29  ;;  %1057 = vrot.lane.b32.xlu1 %v956_v41, %s4327_s30  ;;  %v957_v45 = vsel %vm4394_vm2, %v913_v17, 0  ;;  %v836_v41 = vshrl.u32 %v4651_v19, 16  ;;  %v958_v40 = vsel %vm4394_vm2, %v915_v60, 0  ;;  %v917_v28 = vor.u32 %v916_v53, %v822_v50 }
  0x64   : > { %v838_v18 = vrot.slane %v836_v41, 7  ;;  %v959_v60 = vsel %vm4394_vm2, %v917_v28, 0 }
  0x66   : > { %2148 = vrot.lane.b32.xlu0 %v4284_v6, %s4325_s29  ;;  %2200 = vrot.lane.b32.xlu1 %v2100_v26, %s4327_s30  ;;  %v831_v6 = vrot.slane %v829_v47, 7  ;;  %v4292_v26 = vld [vmem:[%s4428_s19 + $0x70] sm:$0xff]  }
  0x67   : > { %v1980_v44 = vshrl.u32 %v4292_v26, 16  ;;  %v1983_v24 = vshll.u32 %v4292_v26, 16 }
  0x68   : > { %v4660_v17 = vor.u32 %v832_v63, %v831_v6 }
  0x6a   : > { %1059 = vrot.lane.b32.xlu0 %v957_v45, %s4327_s30  ;;  %2202 = vrot.lane.b32.xlu1 %v2101_v22, %s4327_s30  ;;  %v2062_v45 = vrot.slane %v1969_v38, 1  ;;  %v839_v22 = vshll.u32 %v4651_v19, 16  ;;  %v726_v38 = vrot.slane %v4326_v1, 7 }
  0x6c   : > { %v4667_v0 = vor.u32 %v839_v22, %v838_v18  ;;  %v2063_v6 = vor.u32 %v2062_v45, %v1966_v16  ;;  %v918_v16 = vrot.slane %v832_v63, 1  ;;  %v4690_v1 = vsel %vm4678_vm6, 0, %v726_v38 }
  0x6e   : > { %1007 = vrot.lane.b32.xlu0 %v4285_v33, %s4325_s29  ;;  %2150 = vrot.lane.b32.xlu1 %v4603_v36, %s4325_s29  ;;  %v1982_v33 = vrot.slane %v1980_v44, 7  ;;  %v2102_v36 = vsel %vm4394_vm2, %v2061_v2, 0  ;;  %v2103_v50 = vsel %vm4394_vm2, %v2063_v6, 0  ;;  %v919_v18 = vor.u32 %v918_v16, %v829_v47  ;;  %v4703_v47 = vld [vmem:[%s4428_s19 + $0x78] sm:$0xff]  }
  0x6f   : > { %v1990_v6 = vshll.u32 %v4703_v47, 16 }
  0x70   : > { %v4682_v49 = vor.u32 %v1983_v24, %v1982_v33  ;;  %v960_v45 = vsel %vm4394_vm2, %v919_v18, 0  ;;  %v920_v33 = vrot.slane %v839_v22, 1 }
  0x72   : > { %1009 = vrot.lane.b32.xlu0 %v4613_v27, %s4325_s29  ;;  %1061 = vrot.lane.b32.xlu1 %v958_v40, %s4327_s30 }
  0x76   : > { %2152 = vrot.lane.b32.xlu0 %v4288_v55, %s4325_s29  ;;  %2204 = vrot.lane.b32.xlu1 %v2102_v36, %s4327_s30  ;;  %v2064_v55 = vrot.slane %v1976_v48, 1  ;;  %v2066_v48 = vrot.slane %v1983_v24, 1 }
  0x78   : > { %v2065_v40 = vor.u32 %v2064_v55, %v1973_v58  ;;  %v921_v58 = vor.u32 %v920_v33, %v836_v41  ;;  %v2067_v36 = vor.u32 %v2066_v48, %v1980_v44  ;;  %v871_v41 = vsel %vm4678_vm6, 0, %v4452_v43 }
  0x79   : > { %v2127_v5 = vpop.permute.xlu0 %2126  ;;  %v1987_v44 = vshrl.u32 %v4703_v47, 16  ;;  %v872_v55 = vsel %vm4678_vm6, 0, %v4441_v25  ;;  %v2019_v43 = vsel %vm4678_vm6, 0, %v4466_v61  ;;  %v873_v33 = vsel %vm4678_vm6, 0, %v4468_v62 }
  0x7a   : > { %1063 = vrot.lane.b32.xlu0 %v959_v60, %s4327_s30  ;;  %2206 = vrot.lane.b32.xlu1 %v2103_v50, %s4327_s30  ;;  %v2218_v53 = vsel %vm1071_vm7, %v4690_v1, %v2127_v5  ;;  %v961_v24 = vsel %vm4394_vm2, %v921_v58, 0  ;;  %v2068_v60 = vrot.slane %v1990_v6, 1 }
  0x7c   : > { %v2181_v63 = vpop.permute.xlu1 %2180  ;;  %v2069_v18 = vor.u32 %v2068_v60, %v1987_v44  ;;  %v2021_v60 = vsel %vm4678_vm6, 0, %v4480_v14 }
  0x7d   : > { %v2271_v2 = vsel %vm1126_vm8, %v2218_v53, %v2181_v63  ;;  %v5381_v53 = vmov 0.0|0.0  }
  0x7e   : > { %1011 = vrot.lane.b32.xlu0 %v4289_v42, %s4325_s29  ;;  %2154 = vrot.lane.b32.xlu1 %v4290_v32, %s4325_s29  ;;  %v2104_v32 = vsel %vm4394_vm2, %v2065_v40, 0 }
  0x7f   : > { %3963 = vmatprep.mubr.msk.bf16.mxu0 %vm1173_vm9, %v2271_v2  ;;  %v1379_v2 = vsel %vm1206_vm3, %v4544_v29, 0  ;;  %v4763_v29 = vld [vmem:[%s5370_s4 + $0x10] sm:$0x3f]  }
  0x82   : > { %1013 = vrot.lane.b32.xlu0 %v4651_v19, %s4325_s29  ;;  %1065 = vrot.lane.b32.xlu1 %v960_v45, %s4327_s30  ;;  %v2105_v19 = vsel %vm4394_vm2, %v2067_v36, 0  ;;  %v2552_v45 = vsel %vm1206_vm3, %v4554_v35, 0  ;;  %v4768_v35 = vld [vmem:[%s5371_s5 + $0x10] sm:$0x3f]   ;;  %v2020_v36 = vsel %vm4678_vm6, 0, %v4461_v54  ;;  %v4257_v54 = vpack.i.bf16 %v4400_v4, %v4400_v4 }
  0x84   : > { %v986_v42 = vpop.permute.xlu1 %985  ;;  %v984_v28 = vpop.permute.xlu0 %983 }
  0x85   : > { %v1080_v25 = vsel %vm1071_vm7, %v872_v55, %v986_v42  ;;  %v2106_v42 = vsel %vm4394_vm2, %v2069_v18, 0  ;;  %v875_v18 = vsel %vm4678_vm6, 0, %v4484_v21  ;;  %v876_v21 = vsel %vm4678_vm6, 0, %v4493_v31 }
  0x86   : > { %2156 = vrot.lane.b32.xlu0 %v4292_v26, %s4325_s29  ;;  %2208 = vrot.lane.b32.xlu1 %v2104_v32, %s4327_s30  ;;  %v1077_v26 = vsel %vm1071_vm7, %v871_v41, %v984_v28  ;;  %v874_v41 = vsel %vm4678_vm6, 0, %v4478_v13 }
  0x88   : > { %v2131_v22 = vpop.permute.xlu1 %2130  ;;  %v2129_v38 = vpop.permute.xlu0 %2128 }
  0x89   : > { %v2221_v63 = vsel %vm1071_vm7, %v2019_v43, %v2129_v38 }
  0x8a   : > { %1067 = vrot.lane.b32.xlu0 %v961_v24, %s4327_s30  ;;  %2210 = vrot.lane.b32.xlu1 %v2105_v19, %s4327_s30  ;;  %v2224_v24 = vsel %vm1071_vm7, %v2020_v36, %v2131_v22 }
  0x8c   : > { %v988_v50 = vpop.permute.xlu0 %987  ;;  %v1038_v16 = vpop.permute.xlu1 %1037 }
  0x8d   : > { %v4733_v5 = vsel %vm1126_vm8, %v1077_v26, %v1038_v16  ;;  %v1083_v3 = vsel %vm1071_vm7, %v873_v33, %v988_v50 }
  0x8e   : > { %3861 = vmatprep.mubr.msk.bf16.mxu1 %vm1173_vm9, %v4733_v5  ;;  %981 = vrot.lane.b32.xlu0 %v5381_v53, %s4325_s29 }
  0x8f   : > { %1035 = vrot.lane.b32.xlu1 %v4400_v4, %s4327_s30 }
  0x90   : > { %v1040_v61 = vpop.permute.xlu0 %1039  ;;  %v2183_v40 = vpop.permute.xlu1 %2182 }
  0x91   : > { %v4753_v48 = vsel %vm1126_vm8, %v1080_v25, %v1040_v61  ;;  %v4756_v32 = vsel %vm1126_vm8, %v2221_v63, %v2183_v40  ;;  %v2022_v61 = vsel %vm4678_vm6, 0, %v4491_v30 }
  0x92   : > { %3862 = vmatmul.mubr.msk.bf16.vlgmr.msra.gmra.mrb[0].mxu1 %vm1173_vm9, %v4753_v48  ;;  %3964 = vmatmul.mubr.msk.bf16.vlgmr.msra.gmra.mrb[0].mxu0 %vm1173_vm9, %v4756_v32 }
  0x93   : > { %3894 = vmatpush3.bf16.msra.mxu1 %v1379_v2  ;;  %3996 = vmatpush3.bf16.msra.mxu0 %v2552_v45 }
  0x94   : > { %v990_v62 = vpop.permute.xlu0 %989  ;;  %v1042_v58 = vpop.permute.xlu1 %1041  ;;  %2158 = vrot.lane.b32.xlu0 %v4703_v47, %s4325_s29  ;;  %2212 = vrot.lane.b32.xlu1 %v2106_v42, %s4327_s30  ;;  %v2023_v42 = vsel %vm4678_vm6, 0, %v4511_v51 }
  0x95   : > { %v4782_v28 = vsel %vm1126_vm8, %v1083_v3, %v1042_v58  ;;  %4225 = vmatprep.subr.msk.bf16.mxu1 %vm1206_vm3, %v4763_v29  ;;  %4228 = vmatprep.subr.msk.bf16.mxu0 %vm1206_vm3, %v4768_v35  ;;  %v1086_v26 = vsel %vm1071_vm7, %v874_v41, %v990_v62 }
  0x96   : > { %3865 = vmatprep.mubr.msk.bf16.mxu1 %vm1173_vm9, %v4782_v28 }
  0x98   : > { %v2133_v19 = vpop.permute.xlu0 %2132  ;;  %v2185_v38 = vpop.permute.xlu1 %2184  ;;  %1015 = vrot.lane.b32.xlu0 %v5381_v53, %s4325_s29  ;;  %2160 = vrot.lane.b32.xlu1 %v5381_v53, %s4325_s29 }
  0x99   : > { %v4804_v22 = vsel %vm1126_vm8, %v2224_v24, %v2185_v38  ;;  %v2227_v4 = vsel %vm1071_vm7, %v2021_v60, %v2133_v19  ;;  %v877_v38 = vsel %vm4678_vm6, 0, %v4514_v56  ;;  %v878_v56 = vsel %vm4678_vm6, 0, %v4521_v7 }
  0x9a   : > { %3967 = vmatprep.mubr.msk.bf16.mxu0 %vm1173_vm9, %v4804_v22 }
  0x9c   : > { %v1044_v50 = vpop.permute.xlu0 %1043  ;;  %v2187_v16 = vpop.permute.xlu1 %2186  ;;  %4258 = vrot.lane.b32.xlu0 %v4257_v54, %s4327_s30 }
  0x9d   : > { %v4812_v13 = vsel %vm1126_vm8, %v1086_v26, %v1044_v50  ;;  %v4815_v55 = vsel %vm1126_vm8, %v2227_v4, %v2187_v16  ;;  %v2024_v26 = vsel %vm4678_vm6, 0, %v4516_v57 }
  0x9e   : > { %3866 = vmatmul.mubr.msk.bf16.gmra.mrb[4].mxu1 %vm1173_vm9, %v4812_v13  ;;  %3968 = vmatmul.mubr.msk.bf16.gmra.mrb[4].mxu0 %vm1173_vm9, %v4815_v55 }
  0xa0   : > { %v992_v14 = vpop.permute.xlu0 %991  ;;  %v2135_v43 = vpop.permute.xlu1 %2134 }
  0xa1   : > { %v1089_v53 = vsel %vm1071_vm7, %v875_v18, %v992_v14  ;;  %v2230_v2 = vsel %vm1071_vm7, %v2022_v61, %v2135_v43  ;;  %v2025_v43 = vsel %vm4678_vm6, 0, %v4525_v9 }
  0xa4   : > { %v994_v25 = vpop.permute.xlu0 %993  ;;  %v1046_v63 = vpop.permute.xlu1 %1045 }
  0xa5   : > { %v4829_v40 = vsel %vm1126_vm8, %v1089_v53, %v1046_v63  ;;  %v1092_v3 = vsel %vm1071_vm7, %v876_v21, %v994_v25 }
  0xa6   : > { %3869 = vmatprep.mubr.msk.bf16.mxu1 %vm1173_vm9, %v4829_v40 }
  0xa8   : > { %v2137_v45 = vpop.permute.xlu0 %2136  ;;  %v2189_v33 = vpop.permute.xlu1 %2188 }
  0xa9   : > { %v4841_v30 = vsel %vm1126_vm8, %v2230_v2, %v2189_v33  ;;  %v2233_v62 = vsel %vm1071_vm7, %v2023_v42, %v2137_v45  ;;  %v879_v45 = vsel %vm4678_vm6, 0, %v4529_v15  ;;  %v880_v15 = vsel %vm4678_vm6, 0, %v4575_v52 }
  0xaa   : > { %3971 = vmatprep.mubr.msk.bf16.mxu0 %vm1173_vm9, %v4841_v30 }
  0xac   : > { %v1048_v58 = vpop.permute.xlu0 %1047  ;;  %v2191_v36 = vpop.permute.xlu1 %2190 }
  0xad   : > { %v4848_v24 = vsel %vm1126_vm8, %v1092_v3, %v1048_v58  ;;  %v4851_v31 = vsel %vm1126_vm8, %v2233_v62, %v2191_v36  ;;  %v2026_v3 = vsel %vm4678_vm6, 0, %v4569_v46 }
  0xae   : > { %3870 = vmatmul.mubr.msk.bf16.gmra.mrb[8].mxu1 %vm1173_vm9, %v4848_v24  ;;  %3972 = vmatmul.mubr.msk.bf16.gmra.mrb[8].mxu0 %vm1173_vm9, %v4851_v31 }
  0xb0   : > { %v996_v51 = vpop.permute.xlu0 %995  ;;  %v2139_v19 = vpop.permute.xlu1 %2138 }
  0xb1   : > { %v1095_v54 = vsel %vm1071_vm7, %v877_v38, %v996_v51  ;;  %v2236_v50 = vsel %vm1071_vm7, %v2024_v26, %v2139_v19  ;;  %v2027_v19 = vsel %vm4678_vm6, 0, %v4578_v59 }
  0xb4   : > { %v998_v41 = vpop.permute.xlu0 %997  ;;  %v1050_v60 = vpop.permute.xlu1 %1049 }
  0xb5   : > { %v4865_v4 = vsel %vm1126_vm8, %v1095_v54, %v1050_v60  ;;  %v1098_v18 = vsel %vm1071_vm7, %v878_v56, %v998_v41 }
  0xb6   : > { %3873 = vmatprep.mubr.msk.bf16.mxu1 %vm1173_vm9, %v4865_v4 }
  0xb8   : > { %v2141_v16 = vpop.permute.xlu0 %2140  ;;  %v2193_v14 = vpop.permute.xlu1 %2192 }
  0xb9   : > { %v4877_v57 = vsel %vm1126_vm8, %v2236_v50, %v2193_v14  ;;  %v2239_v53 = vsel %vm1071_vm7, %v2025_v43, %v2141_v16  ;;  %v881_v16 = vsel %vm4678_vm6, 0, %v4586_v8  ;;  %v882_v8 = vsel %vm4678_vm6, 0, %v4593_v20 }
  0xba   : > { %3975 = vmatprep.mubr.msk.bf16.mxu0 %vm1173_vm9, %v4877_v57 }
  0xbc   : > { %v1052_v25 = vpop.permute.xlu0 %1051  ;;  %v2195_v63 = vpop.permute.xlu1 %2194 }
  0xbd   : > { %v4884_v61 = vsel %vm1126_vm8, %v1098_v18, %v1052_v25  ;;  %v4887_v7 = vsel %vm1126_vm8, %v2239_v53, %v2195_v63  ;;  %v2028_v18 = vsel %vm4678_vm6, 0, %v4588_v10 }
  0xbe   : > { %3874 = vmatmul.mubr.msk.bf16.gmra.mrb[12].mxu1 %vm1173_vm9, %v4884_v61  ;;  %3976 = vmatmul.mubr.msk.bf16.gmra.mrb[12].mxu0 %vm1173_vm9, %v4887_v7 }
  0xc0   : > { %v1000_v9 = vpop.permute.xlu0 %999  ;;  %v2143_v2 = vpop.permute.xlu1 %2142 }
  0xc1   : > { %v1101_v33 = vsel %vm1071_vm7, %v879_v45, %v1000_v9  ;;  %v2242_v58 = vsel %vm1071_vm7, %v2026_v3, %v2143_v2  ;;  %v2029_v2 = vsel %vm4678_vm6, 0, %v4605_v37 }
  0xc4   : > { %v1002_v21 = vpop.permute.xlu0 %1001  ;;  %v1054_v42 = vpop.permute.xlu1 %1053 }
  0xc5   : > { %v4901_v62 = vsel %vm1126_vm8, %v1101_v33, %v1054_v42  ;;  %v1104_v38 = vsel %vm1071_vm7, %v880_v15, %v1002_v21 }
  0xc6   : > { %3877 = vmatprep.mubr.msk.bf16.mxu1 %vm1173_vm9, %v4901_v62 }
  0xc8   : > { %v2145_v36 = vpop.permute.xlu0 %2144  ;;  %v2197_v51 = vpop.permute.xlu1 %2196 }
  0xc9   : > { %v4913_v46 = vsel %vm1126_vm8, %v2242_v58, %v2197_v51  ;;  %v2245_v54 = vsel %vm1071_vm7, %v2027_v19, %v2145_v36  ;;  %v883_v36 = vsel %vm4678_vm6, 0, %v4624_v11  ;;  %v884_v11 = vsel %vm4678_vm6, 0, %v4633_v23 }
  0xca   : > { %3979 = vmatprep.mubr.msk.bf16.mxu0 %vm1173_vm9, %v4913_v46 }
  0xcc   : > { %v1056_v41 = vpop.permute.xlu0 %1055  ;;  %v2199_v60 = vpop.permute.xlu1 %2198 }
  0xcd   : > { %v4920_v26 = vsel %vm1126_vm8, %v1104_v38, %v1056_v41  ;;  %v4923_v52 = vsel %vm1126_vm8, %v2245_v54, %v2199_v60  ;;  %v2030_v38 = vsel %vm4678_vm6, 0, %v4626_v12 }
  0xce   : > { %3878 = vmatmul.mubr.msk.bf16.gmra.mrb[16].mxu1 %vm1173_vm9, %v4920_v26  ;;  %3980 = vmatmul.mubr.msk.bf16.gmra.mrb[16].mxu0 %vm1173_vm9, %v4923_v52 }
  0xd0   : > { %v1004_v59 = vpop.permute.xlu0 %1003  ;;  %v2147_v50 = vpop.permute.xlu1 %2146 }
  0xd1   : > { %v1107_v14 = vsel %vm1071_vm7, %v881_v16, %v1004_v59  ;;  %v2248_v25 = vsel %vm1071_vm7, %v2028_v18, %v2147_v50  ;;  %v2031_v50 = vsel %vm4678_vm6, 0, %v4644_v39 }
  0xd4   : > { %v1006_v56 = vpop.permute.xlu0 %1005  ;;  %v1058_v43 = vpop.permute.xlu1 %1057 }
  0xd5   : > { %v4937_v53 = vsel %vm1126_vm8, %v1107_v14, %v1058_v43  ;;  %v1110_v45 = vsel %vm1071_vm7, %v882_v8, %v1006_v56 }
  0xd6   : > { %3881 = vmatprep.mubr.msk.bf16.mxu1 %vm1173_vm9, %v4937_v53 }
  0xd8   : > { %v2149_v63 = vpop.permute.xlu0 %2148  ;;  %v2201_v9 = vpop.permute.xlu1 %2200 }
  0xd9   : > { %v4949_v10 = vsel %vm1126_vm8, %v2248_v25, %v2201_v9  ;;  %v2251_v33 = vsel %vm1071_vm7, %v2029_v2, %v2149_v63  ;;  %v885_v63 = vsel %vm4678_vm6, 0, %v4660_v17  ;;  %v886_v17 = vsel %vm4678_vm6, 0, %v4667_v0 }
  0xda   : > { %3983 = vmatprep.mubr.msk.bf16.mxu0 %vm1173_vm9, %v4949_v10 }
  0xdc   : > { %v1060_v21 = vpop.permute.xlu0 %1059  ;;  %v2203_v42 = vpop.permute.xlu1 %2202 }
  0xdd   : > { %v4956_v3 = vsel %vm1126_vm8, %v1110_v45, %v1060_v21  ;;  %v4959_v20 = vsel %vm1126_vm8, %v2251_v33, %v2203_v42  ;;  %v2032_v45 = vsel %vm4678_vm6, 0, %v4662_v34 }
  0xde   : > { %3882 = vmatmul.mubr.msk.bf16.gmra.mrb[20].mxu1 %vm1173_vm9, %v4956_v3  ;;  %3984 = vmatmul.mubr.msk.bf16.gmra.mrb[20].mxu0 %vm1173_vm9, %v4959_v20 }
  0xe0   : > { %v1008_v37 = vpop.permute.xlu0 %1007  ;;  %v2151_v58 = vpop.permute.xlu1 %2150 }
  0xe1   : > { %v1113_v51 = vsel %vm1071_vm7, %v883_v36, %v1008_v37  ;;  %v2254_v41 = vsel %vm1071_vm7, %v2030_v38, %v2151_v58  ;;  %v2033_v58 = vsel %vm4678_vm6, 0, %v4682_v49 }
  0xe4   : > { %v1010_v15 = vpop.permute.xlu0 %1009  ;;  %v1062_v19 = vpop.permute.xlu1 %1061 }
  0xe5   : > { %v4973_v54 = vsel %vm1126_vm8, %v1113_v51, %v1062_v19  ;;  %v1116_v16 = vsel %vm1071_vm7, %v884_v11, %v1010_v15  ;;  %v1553_v11 = vsel %vm1206_vm3, %v4763_v29, 0 }
  0xe6   : > { %3885 = vmatprep.mubr.msk.bf16.mxu1 %vm1173_vm9, %v4973_v54 }
  0xe8   : > { %v2153_v60 = vpop.permute.xlu0 %2152  ;;  %v2205_v59 = vpop.permute.xlu1 %2204 }
  0xe9   : > { %v4985_v12 = vsel %vm1126_vm8, %v2254_v41, %v2205_v59  ;;  %v2257_v14 = vsel %vm1071_vm7, %v2031_v50, %v2153_v60  ;;  %v2758_v50 = vsel %vm1206_vm3, %v4768_v35, 0 }
  0xea   : > { %3987 = vmatprep.mubr.msk.bf16.mxu0 %vm1173_vm9, %v4985_v12 }
  0xec   : > { %v1064_v56 = vpop.permute.xlu0 %1063  ;;  %v2207_v43 = vpop.permute.xlu1 %2206 }
  0xed   : > { %v4992_v18 = vsel %vm1126_vm8, %v1116_v16, %v1064_v56  ;;  %v4995_v23 = vsel %vm1126_vm8, %v2257_v14, %v2207_v43 }
  0xee   : > { %3886 = vmatmul.mubr.msk.bf16.gmra.mrb[24].mxu1 %vm1173_vm9, %v4992_v18  ;;  %3988 = vmatmul.mubr.msk.bf16.gmra.mrb[24].mxu0 %vm1173_vm9, %v4995_v23 }
  0xf0   : > { %v1012_v39 = vpop.permute.xlu0 %1011  ;;  %v2155_v25 = vpop.permute.xlu1 %2154 }
  0xf1   : > { %v1119_v9 = vsel %vm1071_vm7, %v885_v63, %v1012_v39  ;;  %v2260_v21 = vsel %vm1071_vm7, %v2032_v45, %v2155_v25 }
  0xf4   : > { %v1014_v8 = vpop.permute.xlu0 %1013  ;;  %v1066_v2 = vpop.permute.xlu1 %1065 }
  0xf5   : > { %v5009_v33 = vsel %vm1126_vm8, %v1119_v9, %v1066_v2  ;;  %v1122_v36 = vsel %vm1071_vm7, %v886_v17, %v1014_v8 }
  0xf6   : > { %3889 = vmatprep.mubr.msk.bf16.mxu1 %vm1173_vm9, %v5009_v33 }
  0xf8   : > { %v2157_v42 = vpop.permute.xlu0 %2156  ;;  %v2209_v37 = vpop.permute.xlu1 %2208 }
  0xf9   : > { %v5021_v34 = vsel %vm1126_vm8, %v2260_v21, %v2209_v37  ;;  %v2263_v51 = vsel %vm1071_vm7, %v2033_v58, %v2157_v42 }
  0xfa   : > { %3991 = vmatprep.mubr.msk.bf16.mxu0 %vm1173_vm9, %v5021_v34 }
  0xfc   : > { %v1068_v15 = vpop.permute.xlu0 %1067  ;;  %v2211_v19 = vpop.permute.xlu1 %2210 }
  0xfd   : > { %v5028_v38 = vsel %vm1126_vm8, %v1122_v36, %v1068_v15  ;;  %v5031_v0 = vsel %vm1126_vm8, %v2263_v51, %v2211_v19 }
  0xfe   : > { %3890 = vmatmul.mubr.msk.bf16.gmra.mrb[28].mxu1 %vm1173_vm9, %v5028_v38  ;;  %3992 = vmatmul.mubr.msk.bf16.gmra.mrb[28].mxu0 %vm1173_vm9, %v5031_v0 }
  0xff   : > { %3997 = vmatprep.mubr.msk.bf16.mxu0 %vm1173_vm9, %v4756_v32 }
 0x100   : > { %v982_v49 = vpop.permute.xlu0 %981 }
 0x101   : > { %v1074_v41 = vsel %vm1071_vm7, %v4690_v1, %v982_v49  ;;  %v1036_v60 = vpop.permute.xlu1 %1035 }
 0x102   : > { %v1128_v59 = vsel %vm1126_vm8, %v1074_v41, %v1036_v60 }
 0x103   : > { %3895 = vmatprep.mubr.msk.bf16.mxu1 %vm1173_vm9, %v1128_v59 }
 0x106   : > { %3896 = vmatmul.mubr.msk.bf16.vlgmr.msra.gmra.mrb[0].mxu1 %vm1173_vm9, %v4733_v5  ;;  %3998 = vmatmul.mubr.msk.bf16.vlgmr.msra.gmra.mrb[0].mxu0 %vm1173_vm9, %v4804_v22  ;;  %v1989_v5 = vrot.slane %v1987_v44, 7  ;;  %v2159_v35 = vpop.permute.xlu0 %2158  ;;  %v2213_v47 = vpop.permute.xlu1 %2212 }
 0x107   : > { %3928 = vmatpush3.bf16.msra.mxu1 %v1553_v11  ;;  %4030 = vmatpush3.bf16.msra.mxu0 %v2758_v50 }
 0x108   : > { %3899 = vmatprep.mubr.msk.bf16.mxu1 %vm1173_vm9, %v4753_v48  ;;  %4001 = vmatprep.mubr.msk.bf16.mxu0 %vm1173_vm9, %v4815_v55  ;;  %v1992_v32 = vor.u32 %v1990_v6, %v1989_v5 }
 0x10a   : > { %v2034_v29 = vsel %vm4678_vm6, 0, %v1992_v32  ;;  %v1016_v27 = vpop.permute.xlu0 %1015 }
 0x10b   : > { %v2266_v44 = vsel %vm1071_vm7, %v2034_v29, %v2159_v35 }
 0x10c   : > { %v2303_v6 = vsel %vm1126_vm8, %v2266_v44, %v2213_v47 }
 0x10e   : > { %3900 = vmatmul.mubr.msk.bf16.gmra.mrb[4].mxu1 %vm1173_vm9, %v4782_v28  ;;  %4002 = vmatmul.mubr.msk.bf16.gmra.mrb[4].mxu0 %vm1173_vm9, %v4841_v30 }
 0x10f   : > { %3903 = vmatprep.mubr.msk.bf16.mxu1 %vm1173_vm9, %v4812_v13  ;;  %4005 = vmatprep.mubr.msk.bf16.mxu0 %vm1173_vm9, %v4851_v31 }
 0x116   : > { %3904 = vmatmul.mubr.msk.bf16.gmra.mrb[8].mxu1 %vm1173_vm9, %v4829_v40  ;;  %4006 = vmatmul.mubr.msk.bf16.gmra.mrb[8].mxu0 %vm1173_vm9, %v4877_v57 }
 0x117   : > { %3907 = vmatprep.mubr.msk.bf16.mxu1 %vm1173_vm9, %v4848_v24  ;;  %4009 = vmatprep.mubr.msk.bf16.mxu0 %vm1173_vm9, %v4887_v7 }
 0x11e   : > { %3908 = vmatmul.mubr.msk.bf16.gmra.mrb[12].mxu1 %vm1173_vm9, %v4865_v4  ;;  %4010 = vmatmul.mubr.msk.bf16.gmra.mrb[12].mxu0 %vm1173_vm9, %v4913_v46 }
 0x11f   : > { %3911 = vmatprep.mubr.msk.bf16.mxu1 %vm1173_vm9, %v4884_v61  ;;  %4013 = vmatprep.mubr.msk.bf16.mxu0 %vm1173_vm9, %v4923_v52 }
 0x126   : > { %3912 = vmatmul.mubr.msk.bf16.gmra.mrb[16].mxu1 %vm1173_vm9, %v4901_v62  ;;  %4014 = vmatmul.mubr.msk.bf16.gmra.mrb[16].mxu0 %vm1173_vm9, %v4949_v10 }
 0x127   : > { %3915 = vmatprep.mubr.msk.bf16.mxu1 %vm1173_vm9, %v4920_v26  ;;  %4017 = vmatprep.mubr.msk.bf16.mxu0 %vm1173_vm9, %v4959_v20 }
 0x12e   : > { %3916 = vmatmul.mubr.msk.bf16.gmra.mrb[20].mxu1 %vm1173_vm9, %v4937_v53  ;;  %4018 = vmatmul.mubr.msk.bf16.gmra.mrb[20].mxu0 %vm1173_vm9, %v4985_v12 }
 0x12f   : > { %3919 = vmatprep.mubr.msk.bf16.mxu1 %vm1173_vm9, %v4956_v3  ;;  %4021 = vmatprep.mubr.msk.bf16.mxu0 %vm1173_vm9, %v4995_v23 }
 0x136   : > { %3920 = vmatmul.mubr.msk.bf16.gmra.mrb[24].mxu1 %vm1173_vm9, %v4973_v54  ;;  %4022 = vmatmul.mubr.msk.bf16.gmra.mrb[24].mxu0 %vm1173_vm9, %v5021_v34 }
 0x137   : > { %3923 = vmatprep.mubr.msk.bf16.mxu1 %vm1173_vm9, %v4992_v18  ;;  %4025 = vmatprep.mubr.msk.bf16.mxu0 %vm1173_vm9, %v5031_v0 }
 0x13e   : > { %3924 = vmatmul.mubr.msk.bf16.gmra.mrb[28].mxu1 %vm1173_vm9, %v5009_v33  ;;  %4026 = vmatmul.mubr.msk.bf16.gmra.mrb[28].mxu0 %vm1173_vm9, %v2303_v6 }
 0x13f   : > { %3929 = vmatprep.mubr.msk.bf16.mxu1 %vm1173_vm9, %v4753_v48  ;;  %4031 = vmatprep.mubr.msk.bf16.mxu0 %vm1173_vm9, %v4804_v22  ;;  %v2161_v48 = vpop.permute.xlu1 %2160 }
 0x146   : > { %3930 = vmatmul.mubr.msk.bf16.vlgmr.msra.gmra.mrb[0].mxu1 %vm1173_vm9, %v4782_v28  ;;  %4032 = vmatmul.mubr.msk.bf16.vlgmr.msra.gmra.mrb[0].mxu0 %vm1173_vm9, %v4815_v55  ;;  %v4259_v28 = vpop.permute.xlu0 %4258 }
 0x147   : > { %3933 = vmatprep.mubr.msk.bf16.mxu1 %vm1173_vm9, %v4812_v13  ;;  %4035 = vmatprep.mubr.msk.bf16.mxu0 %vm1173_vm9, %v4841_v30  ;;  %v4261_v22 = vunpack.i.h.bf16 %v4259_v28  ;;  %v2269_v13 = vsel %vm1071_vm7, %v4690_v1, %v2161_v48  ;;  %v4260_v55 = vunpack.i.l.bf16 %v4259_v28 }
 0x149   : > { %v2305_v30 = vsel %vm1126_vm8, %v2269_v13, %v4261_v22 }
 0x14e   : > { %3934 = vmatmul.mubr.msk.bf16.gmra.mrb[4].mxu1 %vm1173_vm9, %v4829_v40  ;;  %4036 = vmatmul.mubr.msk.bf16.gmra.mrb[4].mxu0 %vm1173_vm9, %v4851_v31  ;;  %v1125_v40 = vsel %vm1071_vm7, %v4690_v1, %v1016_v27 }
 0x14f   : > { %3937 = vmatprep.mubr.msk.bf16.mxu1 %vm1173_vm9, %v4848_v24  ;;  %4039 = vmatprep.mubr.msk.bf16.mxu0 %vm1173_vm9, %v4877_v57  ;;  %v1162_v24 = vsel %vm1126_vm8, %v1125_v40, %v4260_v55  ;;  %v5184_v57 = vld [vmem:[%s5372_s6] ss:$0 sm:$0xff] }
 0x156   : > { %3938 = vmatmul.mubr.msk.bf16.gmra.mrb[8].mxu1 %vm1173_vm9, %v4865_v4  ;;  %4040 = vmatmul.mubr.msk.bf16.gmra.mrb[8].mxu0 %vm1173_vm9, %v4887_v7 }
 0x157   : > { %3941 = vmatprep.mubr.msk.bf16.mxu1 %vm1173_vm9, %v4884_v61  ;;  %4043 = vmatprep.mubr.msk.bf16.mxu0 %vm1173_vm9, %v4913_v46 }
 0x15e   : > { %3942 = vmatmul.mubr.msk.bf16.gmra.mrb[12].mxu1 %vm1173_vm9, %v4901_v62  ;;  %4044 = vmatmul.mubr.msk.bf16.gmra.mrb[12].mxu0 %vm1173_vm9, %v4923_v52 }
 0x15f   : > { %3945 = vmatprep.mubr.msk.bf16.mxu1 %vm1173_vm9, %v4920_v26  ;;  %4047 = vmatprep.mubr.msk.bf16.mxu0 %vm1173_vm9, %v4949_v10 }
 0x166   : > { %3946 = vmatmul.mubr.msk.bf16.gmra.mrb[16].mxu1 %vm1173_vm9, %v4937_v53  ;;  %4048 = vmatmul.mubr.msk.bf16.gmra.mrb[16].mxu0 %vm1173_vm9, %v4959_v20 }
 0x167   : > { %3949 = vmatprep.mubr.msk.bf16.mxu1 %vm1173_vm9, %v4956_v3  ;;  %4051 = vmatprep.mubr.msk.bf16.mxu0 %vm1173_vm9, %v4985_v12 }
 0x16e   : > { %3950 = vmatmul.mubr.msk.bf16.gmra.mrb[20].mxu1 %vm1173_vm9, %v4973_v54  ;;  %4052 = vmatmul.mubr.msk.bf16.gmra.mrb[20].mxu0 %vm1173_vm9, %v4995_v23 }
 0x16f   : > { %3953 = vmatprep.mubr.msk.bf16.mxu1 %vm1173_vm9, %v4992_v18  ;;  %4055 = vmatprep.mubr.msk.bf16.mxu0 %vm1173_vm9, %v5021_v34 }
 0x176   : > { %3954 = vmatmul.mubr.msk.bf16.gmra.mrb[24].mxu1 %vm1173_vm9, %v5009_v33  ;;  %4056 = vmatmul.mubr.msk.bf16.gmra.mrb[24].mxu0 %vm1173_vm9, %v5031_v0 }
 0x177   : > { %3957 = vmatprep.mubr.msk.bf16.mxu1 %vm1173_vm9, %v5028_v38  ;;  %4059 = vmatprep.mubr.msk.bf16.mxu0 %vm1173_vm9, %v2303_v6 }
 0x17e   : > { %3958 = vmatmul.mubr.msk.bf16.gmra.mrb[28].mxu1 %vm1173_vm9, %v1162_v24  ;;  %4060 = vmatmul.mubr.msk.bf16.gmra.mrb[28].mxu0 %vm1173_vm9, %v2305_v30 }
 0x219   : > { %v3931_v31 = vpop.f32.mrb[0].mxu1  ;;  %v4033_v4 = vpop.f32.mrb[0].mxu0 }
 0x21a   : > { %v4063_v61 = vadd.f32 %v4033_v4, %v3931_v31  ;;  %v1589_v7 = vpop.f32.mrb[1].mxu1  ;;  %v2794_v62 = vpop.f32.mrb[1].mxu0 }
 0x21b   : > { %v4064_v1 = vadd.f32 %v2794_v62, %v1589_v7  ;;  %v3932_v46 = vpop.f32.mrb[2].mxu1  ;;  %v4034_v26 = vpop.f32.mrb[2].mxu0 }
 0x21c   : > { %v2962_v52 = vadd.f32 %v4063_v61, %v5184_v57  ;;  %v4065_v53 = vadd.f32 %v4034_v26, %v3932_v46  ;;  %v1592_v10 = vpop.f32.mrb[3].mxu1  ;;  %v2797_v3 = vpop.f32.mrb[3].mxu0 }
 0x21d   : > { %v2960_v20 = vadd.f32 %v4064_v1, %v5184_v57  ;;  %v4066_v54 = vadd.f32 %v2797_v3, %v1592_v10 }
 0x21e   : > { %v3727_v12 = vpack.c.bf16 %v2962_v52, %v2962_v52  ;;  %v2963_v16 = vadd.f32 %v4065_v53, %v5184_v57  ;;  %v3224_v18 = vmul.f32 %v2962_v52, %v2962_v52  ;;  %v3156_v17 = vsel %vm1071_vm7, %v2962_v52, 0.0 }
 0x21f   : > { %v3725_v14 = vpack.c.bf16 %v2960_v20, %v2960_v20  ;;  %v3222_v56 = vmul.f32 %v2960_v20, %v2960_v20  ;;  %v2961_v43 = vadd.f32 %v4066_v54, %v5184_v57  ;;  %v3153_v39 = vsel %vm1071_vm7, %v2960_v20, 0.0 }
 0x220   : > { %3123 = vst.msk [vmem:[%s5191_s13 + $0x8] sm:$0xf] %vm3120_vm10, %v3727_v12  ;;  %v3728_v23 = vpack.c.bf16 %v2963_v16, %v2963_v16  ;;  %v3225_v45 = vmul.f32 %v2963_v16, %v2963_v16  ;;  %v3257_v59 = vsel %vm1071_vm7, %v3224_v18, 0.0  ;;  %v3158_v5 = vsel %vm1071_vm7, %v2963_v16, 0.0 }
 0x221   : > { %3121 = vst.msk [vmem:[%s5191_s13] sm:$0xf] %vm3120_vm10, %v3725_v14  ;;  %v3726_v25 = vpack.c.bf16 %v2961_v43, %v2961_v43  ;;  %v3154_v63 = vsel %vm1071_vm7, %v2961_v43, 0.0  ;;  %v3223_v9 = vmul.f32 %v2961_v43, %v2961_v43  ;;  %v3935_v8 = vpop.f32.mrb[4].mxu1  ;;  %v4037_v2 = vpop.f32.mrb[4].mxu0  ;;  %v3254_v58 = vsel %vm1071_vm7, %v3222_v56, 0.0 }
 0x222   : > { %3124 = vst.msk [vmem:[%s5191_s13 + $0xc] sm:$0xf] %vm3120_vm10, %v3728_v23  ;;  %v3155_v33 = vadd.f32 %v3154_v63, %v3153_v39  ;;  %v4067_v21 = vadd.f32 %v4037_v2, %v3935_v8  ;;  %v1605_v42 = vpop.f32.mrb[5].mxu1  ;;  %v2810_v37 = vpop.f32.mrb[5].mxu0  ;;  %v3259_v32 = vsel %vm1071_vm7, %v3225_v45, 0.0 }
 0x223   : > { %3122 = vst.msk [vmem:[%s5191_s13 + $0x4] sm:$0xf] %vm3120_vm10, %v3726_v25  ;;  %v3255_v34 = vsel %vm1071_vm7, %v3223_v9, 0.0  ;;  %v4068_v36 = vadd.f32 %v2810_v37, %v1605_v42  ;;  %v3936_v51 = vpop.f32.mrb[6].mxu1  ;;  %v4038_v15 = vpop.f32.mrb[6].mxu0 }
 0x224   : > { %v3157_v19 = vadd.f32 %v3156_v17, %v3155_v33  ;;  %v3256_v38 = vadd.f32 %v3255_v34, %v3254_v58  ;;  %v2966_v0 = vadd.f32 %v4067_v21, %v5184_v57  ;;  %v4069_v49 = vadd.f32 %v4038_v15, %v3936_v51  ;;  %v1608_v41 = vpop.f32.mrb[7].mxu1  ;;  %v2813_v60 = vpop.f32.mrb[7].mxu0 }
 0x225   : > { %v2964_v11 = vadd.f32 %v4068_v36, %v5184_v57  ;;  %v4070_v50 = vadd.f32 %v2813_v60, %v1608_v41 }
 0x226   : > { %v3258_v29 = vadd.f32 %v3257_v59, %v3256_v38  ;;  %v3731_v35 = vpack.c.bf16 %v2966_v0, %v2966_v0  ;;  %v3159_v47 = vadd.f32 %v3158_v5, %v3157_v19  ;;  %v2967_v28 = vadd.f32 %v4069_v49, %v5184_v57 }
 0x227   : > { %v3729_v44 = vpack.c.bf16 %v2964_v11, %v2964_v11  ;;  %v3160_v6 = vsel %vm1071_vm7, %v2964_v11, 0.0  ;;  %v3226_v27 = vmul.f32 %v2964_v11, %v2964_v11  ;;  %v2965_v22 = vadd.f32 %v4070_v50, %v5184_v57 }
 0x228   : > { %3127 = vst.msk [vmem:[%s5191_s13 + $0x18] sm:$0xf] %vm3120_vm10, %v3731_v35  ;;  %v3260_v48 = vadd.f32 %v3259_v32, %v3258_v29  ;;  %v3161_v13 = vadd.f32 %v3160_v6, %v3159_v47  ;;  %v3228_v24 = vmul.f32 %v2966_v0, %v2966_v0  ;;  %v3732_v4 = vpack.c.bf16 %v2967_v28, %v2967_v28 }
 0x229   : > { %3125 = vst.msk [vmem:[%s5191_s13 + $0x10] sm:$0xf] %vm3120_vm10, %v3729_v44  ;;  %v3261_v55 = vsel %vm1071_vm7, %v3226_v27, 0.0  ;;  %v3939_v40 = vpop.f32.mrb[8].mxu1  ;;  %v4041_v30 = vpop.f32.mrb[8].mxu0  ;;  %v3730_v62 = vpack.c.bf16 %v2965_v22, %v2965_v22  ;;  %v3162_v1 = vsel %vm1071_vm7, %v2965_v22, 0.0  ;;  %v3227_v46 = vmul.f32 %v2965_v22, %v2965_v22 }
 0x22a   : > { %v3262_v31 = vadd.f32 %v3261_v55, %v3260_v48  ;;  %v1621_v61 = vpop.f32.mrb[9].mxu1  ;;  %v2826_v7 = vpop.f32.mrb[9].mxu0  ;;  %v4071_v26 = vadd.f32 %v4041_v30, %v3939_v40  ;;  %v3164_v10 = vsel %vm1071_vm7, %v2966_v0, 0.0  ;;  %3128 = vst.msk [vmem:[%s5191_s13 + $0x1c] sm:$0xf] %vm3120_vm10, %v3732_v4  ;;  %v3163_v3 = vadd.f32 %v3162_v1, %v3161_v13 }
 0x22b   : > { %v3940_v52 = vpop.f32.mrb[10].mxu1  ;;  %v4042_v53 = vpop.f32.mrb[10].mxu0  ;;  %v4072_v20 = vadd.f32 %v2826_v7, %v1621_v61  ;;  %v3229_v14 = vmul.f32 %v2967_v28, %v2967_v28  ;;  %3126 = vst.msk [vmem:[%s5191_s13 + $0x14] sm:$0xf] %vm3120_vm10, %v3730_v62  ;;  %v3263_v56 = vsel %vm1071_vm7, %v3227_v46, 0.0  ;;  %v3265_v9 = vsel %vm1071_vm7, %v3228_v24, 0.0 }
 0x22c   : > { %v4073_v54 = vadd.f32 %v4042_v53, %v3940_v52  ;;  %v1624_v12 = vpop.f32.mrb[11].mxu1  ;;  %v2829_v16 = vpop.f32.mrb[11].mxu0  ;;  %v2970_v43 = vadd.f32 %v4071_v26, %v5184_v57  ;;  %v3165_v23 = vadd.f32 %v3164_v10, %v3163_v3  ;;  %v3264_v39 = vadd.f32 %v3263_v56, %v3262_v31 }
 0x22d   : > { %v4074_v18 = vadd.f32 %v2829_v16, %v1624_v12  ;;  %v2968_v25 = vadd.f32 %v4072_v20, %v5184_v57  ;;  %v3166_v8 = vsel %vm1071_vm7, %v2967_v28, 0.0  ;;  %v3267_v17 = vsel %vm1071_vm7, %v3229_v14, 0.0 }
 0x22e   : > { %v2971_v63 = vadd.f32 %v4073_v54, %v5184_v57  ;;  %v3735_v2 = vpack.c.bf16 %v2970_v43, %v2970_v43  ;;  %v3266_v33 = vadd.f32 %v3265_v9, %v3264_v39  ;;  %v3167_v42 = vadd.f32 %v3166_v8, %v3165_v23 }
 0x22f   : > { %v2969_v45 = vadd.f32 %v4074_v18, %v5184_v57  ;;  %v3733_v21 = vpack.c.bf16 %v2968_v25, %v2968_v25  ;;  %v3168_v37 = vsel %vm1071_vm7, %v2968_v25, 0.0  ;;  %v3172_v58 = vsel %vm1071_vm7, %v2970_v43, 0.0 }
 0x230   : > { %3131 = vst.msk [vmem:[%s5191_s13 + $0x28] sm:$0xf] %vm3120_vm10, %v3735_v2  ;;  %v3230_v34 = vmul.f32 %v2968_v25, %v2968_v25  ;;  %v3736_v36 = vpack.c.bf16 %v2971_v63, %v2971_v63  ;;  %v3232_v19 = vmul.f32 %v2970_v43, %v2970_v43  ;;  %v3169_v38 = vadd.f32 %v3168_v37, %v3167_v42 }
 0x231   : > { %v3943_v51 = vpop.f32.mrb[12].mxu1  ;;  %v4045_v15 = vpop.f32.mrb[12].mxu0  ;;  %3129 = vst.msk [vmem:[%s5191_s13 + $0x20] sm:$0xf] %vm3120_vm10, %v3733_v21  ;;  %v3268_v0 = vadd.f32 %v3267_v17, %v3266_v33  ;;  %v3734_v49 = vpack.c.bf16 %v2969_v45, %v2969_v45  ;;  %v3170_v11 = vsel %vm1071_vm7, %v2969_v45, 0.0  ;;  %v3231_v50 = vmul.f32 %v2969_v45, %v2969_v45 }
 0x232   : > { %v1637_v41 = vpop.f32.mrb[13].mxu1  ;;  %v2842_v60 = vpop.f32.mrb[13].mxu0  ;;  %v3269_v59 = vsel %vm1071_vm7, %v3230_v34, 0.0  ;;  %3132 = vst.msk [vmem:[%s5191_s13 + $0x2c] sm:$0xf] %vm3120_vm10, %v3736_v36  ;;  %v4075_v5 = vadd.f32 %v4045_v15, %v3943_v51  ;;  %v3233_v44 = vmul.f32 %v2971_v63, %v2971_v63  ;;  %v3171_v47 = vadd.f32 %v3170_v11, %v3169_v38 }
 0x233   : > { %v3944_v32 = vpop.f32.mrb[14].mxu1  ;;  %v4046_v29 = vpop.f32.mrb[14].mxu0  ;;  %v3270_v35 = vadd.f32 %v3269_v59, %v3268_v0  ;;  %3130 = vst.msk [vmem:[%s5191_s13 + $0x24] sm:$0xf] %vm3120_vm10, %v3734_v49  ;;  %v4076_v6 = vadd.f32 %v2842_v60, %v1637_v41  ;;  %v3271_v28 = vsel %vm1071_vm7, %v3231_v50, 0.0  ;;  %v3273_v31 = vsel %vm1071_vm7, %v3232_v19, 0.0 }
 0x234   : > { %v1640_v27 = vpop.f32.mrb[15].mxu1  ;;  %v2845_v48 = vpop.f32.mrb[15].mxu0  ;;  %v2974_v22 = vadd.f32 %v4075_v5, %v5184_v57  ;;  %v4077_v13 = vadd.f32 %v4046_v29, %v3944_v32  ;;  %v3173_v40 = vadd.f32 %v3172_v58, %v3171_v47  ;;  %v3174_v4 = vsel %vm1071_vm7, %v2971_v63, 0.0 }
 0x235   : > { %v4078_v55 = vadd.f32 %v2845_v48, %v1640_v27  ;;  %v3272_v30 = vadd.f32 %v3271_v28, %v3270_v35  ;;  %v2972_v24 = vadd.f32 %v4076_v6, %v5184_v57  ;;  %v3275_v52 = vsel %vm1071_vm7, %v3233_v44, 0.0 }
 0x236   : > { %v3739_v61 = vpack.c.bf16 %v2974_v22, %v2974_v22  ;;  %v2975_v7 = vadd.f32 %v4077_v13, %v5184_v57  ;;  %v3175_v46 = vadd.f32 %v3174_v4, %v3173_v40  ;;  %v3236_v43 = vmul.f32 %v2974_v22, %v2974_v22 }
 0x237   : > { %v3274_v62 = vadd.f32 %v3273_v31, %v3272_v30  ;;  %v3737_v1 = vpack.c.bf16 %v2972_v24, %v2972_v24  ;;  %v3176_v26 = vsel %vm1071_vm7, %v2972_v24, 0.0  ;;  %v3234_v53 = vmul.f32 %v2972_v24, %v2972_v24 }
 0x238   : > { %3135 = vst.msk [vmem:[%s5191_s13 + $0x38] sm:$0xf] %vm3120_vm10, %v3739_v61  ;;  %v3740_v10 = vpack.c.bf16 %v2975_v7, %v2975_v7  ;;  %v3177_v54 = vadd.f32 %v3176_v26, %v3175_v46  ;;  %v2973_v16 = vadd.f32 %v4078_v55, %v5184_v57  ;;  %v3180_v58 = vsel %vm1071_vm7, %v2974_v22, 0.0 }
 0x239   : > { %v3947_v3 = vpop.f32.mrb[16].mxu1  ;;  %v4049_v20 = vpop.f32.mrb[16].mxu0  ;;  %3133 = vst.msk [vmem:[%s5191_s13 + $0x30] sm:$0xf] %vm3120_vm10, %v3737_v1  ;;  %v3276_v12 = vadd.f32 %v3275_v52, %v3274_v62  ;;  %v3277_v18 = vsel %vm1071_vm7, %v3234_v53, 0.0  ;;  %v3237_v34 = vmul.f32 %v2975_v7, %v2975_v7  ;;  %v3281_v15 = vsel %vm1071_vm7, %v3236_v43, 0.0 }
 0x23a   : > { %v1653_v14 = vpop.f32.mrb[17].mxu1  ;;  %v2858_v56 = vpop.f32.mrb[17].mxu0  ;;  %3136 = vst.msk [vmem:[%s5191_s13 + $0x3c] sm:$0xf] %vm3120_vm10, %v3740_v10  ;;  %v4079_v23 = vadd.f32 %v4049_v20, %v3947_v3  ;;  %v3738_v8 = vpack.c.bf16 %v2973_v16, %v2973_v16  ;;  %v3178_v2 = vsel %vm1071_vm7, %v2973_v16, 0.0  ;;  %v3235_v42 = vmul.f32 %v2973_v16, %v2973_v16 }
 0x23b   : > { %v4080_v39 = vadd.f32 %v2858_v56, %v1653_v14  ;;  %v3948_v25 = vpop.f32.mrb[18].mxu1  ;;  %v4050_v63 = vpop.f32.mrb[18].mxu0  ;;  %v3278_v9 = vadd.f32 %v3277_v18, %v3276_v12  ;;  %v3179_v21 = vadd.f32 %v3178_v2, %v3177_v54  ;;  %v3182_v49 = vsel %vm1071_vm7, %v2975_v7, 0.0 }
 0x23c   : > { %v1656_v45 = vpop.f32.mrb[19].mxu1  ;;  %v2861_v33 = vpop.f32.mrb[19].mxu0  ;;  %v2978_v37 = vadd.f32 %v4079_v23, %v5184_v57  ;;  %3134 = vst.msk [vmem:[%s5191_s13 + $0x34] sm:$0xf] %vm3120_vm10, %v3738_v8  ;;  %v4081_v36 = vadd.f32 %v4050_v63, %v3948_v25  ;;  %v3279_v38 = vsel %vm1071_vm7, %v3235_v42, 0.0  ;;  %v3283_v44 = vsel %vm1071_vm7, %v3237_v34, 0.0 }
 0x23d   : > { %v2976_v17 = vadd.f32 %v4080_v39, %v5184_v57  ;;  %v4082_v51 = vadd.f32 %v2861_v33, %v1656_v45  ;;  %v3181_v19 = vadd.f32 %v3180_v58, %v3179_v21  ;;  %v3280_v41 = vadd.f32 %v3279_v38, %v3278_v9 }
 0x23e   : > { %v3743_v0 = vpack.c.bf16 %v2978_v37, %v2978_v37  ;;  %v2979_v5 = vadd.f32 %v4081_v36, %v5184_v57  ;;  %v3188_v28 = vsel %vm1071_vm7, %v2978_v37, 0.0  ;;  %v3240_v24 = vmul.f32 %v2978_v37, %v2978_v37 }
 0x23f   : > { %v3741_v60 = vpack.c.bf16 %v2976_v17, %v2976_v17  ;;  %v3184_v59 = vsel %vm1071_vm7, %v2976_v17, 0.0  ;;  %v3183_v11 = vadd.f32 %v3182_v49, %v3181_v19  ;;  %v3238_v50 = vmul.f32 %v2976_v17, %v2976_v17 }
 0x240   : > { %3139 = vst.msk [vmem:[%s5191_s13 + $0x48] sm:$0xf] %vm3120_vm10, %v3743_v0  ;;  %v2977_v32 = vadd.f32 %v4082_v51, %v5184_v57  ;;  %v3282_v47 = vadd.f32 %v3281_v15, %v3280_v41  ;;  %v3744_v55 = vpack.c.bf16 %v2979_v5, %v2979_v5  ;;  %v3241_v10 = vmul.f32 %v2979_v5, %v2979_v5 }
 0x241   : > { %v3951_v29 = vpop.f32.mrb[20].mxu1  ;;  %v4053_v35 = vpop.f32.mrb[20].mxu0  ;;  %3137 = vst.msk [vmem:[%s5191_s13 + $0x40] sm:$0xf] %vm3120_vm10, %v3741_v60  ;;  %v3185_v22 = vadd.f32 %v3184_v59, %v3183_v11  ;;  %v3285_v13 = vsel %vm1071_vm7, %v3238_v50, 0.0  ;;  %v3190_v14 = vsel %vm1071_vm7, %v2979_v5, 0.0 }
 0x242   : > { %v4083_v6 = vadd.f32 %v4053_v35, %v3951_v29  ;;  %v1669_v27 = vpop.f32.mrb[21].mxu1  ;;  %v2874_v48 = vpop.f32.mrb[21].mxu0  ;;  %v3284_v31 = vadd.f32 %v3283_v44, %v3282_v47  ;;  %v3742_v4 = vpack.c.bf16 %v2977_v32, %v2977_v32  ;;  %v3186_v61 = vsel %vm1071_vm7, %v2977_v32, 0.0  ;;  %3140 = vst.msk [vmem:[%s5191_s13 + $0x4c] sm:$0xf] %vm3120_vm10, %v3744_v55 }
 0x243   : > { %v3952_v40 = vpop.f32.mrb[22].mxu1  ;;  %v4054_v30 = vpop.f32.mrb[22].mxu0  ;;  %v3187_v1 = vadd.f32 %v3186_v61, %v3185_v22  ;;  %v3239_v46 = vmul.f32 %v2977_v32, %v2977_v32  ;;  %v4084_v52 = vadd.f32 %v2874_v48, %v1669_v27  ;;  %v3289_v23 = vsel %vm1071_vm7, %v3240_v24, 0.0 }
 0x244   : > { %v1672_v7 = vpop.f32.mrb[23].mxu1  ;;  %v2877_v62 = vpop.f32.mrb[23].mxu0  ;;  %v2982_v26 = vadd.f32 %v4083_v6, %v5184_v57  ;;  %v3286_v53 = vadd.f32 %v3285_v13, %v3284_v31  ;;  %3138 = vst.msk [vmem:[%s5191_s13 + $0x44] sm:$0xf] %vm3120_vm10, %v3742_v4  ;;  %v4085_v3 = vadd.f32 %v4054_v30, %v3952_v40  ;;  %v3291_v8 = vsel %vm1071_vm7, %v3241_v10, 0.0 }
 0x245   : > { %v4086_v20 = vadd.f32 %v2877_v62, %v1672_v7  ;;  %v3189_v54 = vadd.f32 %v3188_v28, %v3187_v1  ;;  %v3287_v12 = vsel %vm1071_vm7, %v3239_v46, 0.0  ;;  %v2980_v43 = vadd.f32 %v4084_v52, %v5184_v57 }
 0x246   : > { %v3747_v16 = vpack.c.bf16 %v2982_v26, %v2982_v26  ;;  %v3288_v56 = vadd.f32 %v3287_v12, %v3286_v53  ;;  %v2983_v18 = vadd.f32 %v4085_v3, %v5184_v57  ;;  %v3196_v37 = vsel %vm1071_vm7, %v2982_v26, 0.0 }
 0x247   : > { %v3191_v39 = vadd.f32 %v3190_v14, %v3189_v54  ;;  %v2981_v25 = vadd.f32 %v4086_v20, %v5184_v57  ;;  %v3745_v45 = vpack.c.bf16 %v2980_v43, %v2980_v43  ;;  %v3192_v33 = vsel %vm1071_vm7, %v2980_v43, 0.0 }
 0x248   : > { %3143 = vst.msk [vmem:[%s5191_s13 + $0x58] sm:$0xf] %vm3120_vm10, %v3747_v16  ;;  %v3290_v2 = vadd.f32 %v3289_v23, %v3288_v56  ;;  %v3242_v58 = vmul.f32 %v2980_v43, %v2980_v43  ;;  %v3748_v34 = vpack.c.bf16 %v2983_v18, %v2983_v18  ;;  %v3244_v15 = vmul.f32 %v2982_v26, %v2982_v26 }
 0x249   : > { %v3955_v63 = vpop.f32.mrb[24].mxu1  ;;  %v4057_v9 = vpop.f32.mrb[24].mxu0  ;;  %v3193_v17 = vadd.f32 %v3192_v33, %v3191_v39  ;;  %3141 = vst.msk [vmem:[%s5191_s13 + $0x50] sm:$0xf] %vm3120_vm10, %v3745_v45  ;;  %v3746_v38 = vpack.c.bf16 %v2981_v25, %v2981_v25  ;;  %v3194_v0 = vsel %vm1071_vm7, %v2981_v25, 0.0  ;;  %v3243_v11 = vmul.f32 %v2981_v25, %v2981_v25 }
 0x24a   : > { %v1685_v21 = vpop.f32.mrb[25].mxu1  ;;  %v2890_v42 = vpop.f32.mrb[25].mxu0  ;;  %v3292_v19 = vadd.f32 %v3291_v8, %v3290_v2  ;;  %v3293_v60 = vsel %vm1071_vm7, %v3242_v58, 0.0  ;;  %3144 = vst.msk [vmem:[%s5191_s13 + $0x5c] sm:$0xf] %vm3120_vm10, %v3748_v34  ;;  %v4087_v50 = vadd.f32 %v4057_v9, %v3955_v63  ;;  %v3245_v32 = vmul.f32 %v2983_v18, %v2983_v18 }
 0x24b   : > { %v3956_v36 = vpop.f32.mrb[26].mxu1  ;;  %v4058_v51 = vpop.f32.mrb[26].mxu0  ;;  %v3195_v59 = vadd.f32 %v3194_v0, %v3193_v17  ;;  %3142 = vst.msk [vmem:[%s5191_s13 + $0x54] sm:$0xf] %vm3120_vm10, %v3746_v38  ;;  %v4088_v29 = vadd.f32 %v2890_v42, %v1685_v21  ;;  %v3295_v47 = vsel %vm1071_vm7, %v3243_v11, 0.0  ;;  %v3198_v48 = vsel %vm1071_vm7, %v2983_v18, 0.0 }
 0x24c   : > { %v1688_v49 = vpop.f32.mrb[27].mxu1  ;;  %v2893_v41 = vpop.f32.mrb[27].mxu0  ;;  %v3294_v5 = vadd.f32 %v3293_v60, %v3292_v19  ;;  %v4089_v35 = vadd.f32 %v4058_v51, %v3956_v36  ;;  %v2986_v6 = vadd.f32 %v4087_v50, %v5184_v57  ;;  %v3297_v55 = vsel %vm1071_vm7, %v3244_v15, 0.0 }
 0x24d   : > { %v3197_v44 = vadd.f32 %v3196_v37, %v3195_v59  ;;  %v4090_v27 = vadd.f32 %v2893_v41, %v1688_v49  ;;  %v2984_v22 = vadd.f32 %v4088_v29, %v5184_v57  ;;  %v3299_v26 = vsel %vm1071_vm7, %v3245_v32, 0.0 }
 0x24e   : > { %v3296_v28 = vadd.f32 %v3295_v47, %v3294_v5  ;;  %v2987_v13 = vadd.f32 %v4089_v35, %v5184_v57  ;;  %v3751_v40 = vpack.c.bf16 %v2986_v6, %v2986_v6  ;;  %v3248_v39 = vmul.f32 %v2986_v6, %v2986_v6 }
 0x24f   : > { %v3199_v30 = vadd.f32 %v3198_v48, %v3197_v44  ;;  %v3749_v61 = vpack.c.bf16 %v2984_v22, %v2984_v22  ;;  %v3200_v7 = vsel %vm1071_vm7, %v2984_v22, 0.0  ;;  %v3246_v62 = vmul.f32 %v2984_v22, %v2984_v22 }
 0x250   : > { %v3298_v4 = vadd.f32 %v3297_v55, %v3296_v28  ;;  %3147 = vst.msk [vmem:[%s5191_s13 + $0x68] sm:$0xf] %vm3120_vm10, %v3751_v40  ;;  %v3752_v53 = vpack.c.bf16 %v2987_v13, %v2987_v13  ;;  %v2985_v12 = vadd.f32 %v4090_v27, %v5184_v57  ;;  %v3204_v21 = vsel %vm1071_vm7, %v2986_v6, 0.0 }
 0x251   : > { %v3959_v24 = vpop.f32.mrb[28].mxu1  ;;  %v4061_v31 = vpop.f32.mrb[28].mxu0  ;;  %v3201_v52 = vadd.f32 %v3200_v7, %v3199_v30  ;;  %3145 = vst.msk [vmem:[%s5191_s13 + $0x60] sm:$0xf] %vm3120_vm10, %v3749_v61  ;;  %v3301_v54 = vsel %vm1071_vm7, %v3246_v62, 0.0  ;;  %v3249_v42 = vmul.f32 %v2987_v13, %v2987_v13  ;;  %v3206_v51 = vsel %vm1071_vm7, %v2987_v13, 0.0 }
 0x252   : > { %v1701_v1 = vpop.f32.mrb[29].mxu1  ;;  %v2906_v46 = vpop.f32.mrb[29].mxu0  ;;  %v3300_v20 = vadd.f32 %v3299_v26, %v3298_v4  ;;  %3148 = vst.msk [vmem:[%s5191_s13 + $0x6c] sm:$0xf] %vm3120_vm10, %v3752_v53  ;;  %v4091_v56 = vadd.f32 %v4061_v31, %v3959_v24  ;;  %v3750_v63 = vpack.c.bf16 %v2985_v12, %v2985_v12  ;;  %v3202_v9 = vsel %vm1071_vm7, %v2985_v12, 0.0 }
 0x253   : > { %v3960_v10 = vpop.f32.mrb[30].mxu1  ;;  %v4062_v3 = vpop.f32.mrb[30].mxu0  ;;  %v4092_v43 = vadd.f32 %v2906_v46, %v1701_v1  ;;  %v3203_v8 = vadd.f32 %v3202_v9, %v3201_v52  ;;  %v3247_v2 = vmul.f32 %v2985_v12, %v2985_v12  ;;  %v3305_v0 = vsel %vm1071_vm7, %v3248_v39, 0.0 }
 0x254   : > { %v1704_v16 = vpop.f32.mrb[31].mxu1  ;;  %v2909_v14 = vpop.f32.mrb[31].mxu0  ;;  %v4093_v18 = vadd.f32 %v4062_v3, %v3960_v10  ;;  %v3302_v25 = vadd.f32 %v3301_v54, %v3300_v20  ;;  %v2990_v45 = vadd.f32 %v4091_v56, %v5184_v57  ;;  %3146 = vst.msk [vmem:[%s5191_s13 + $0x64] sm:$0xf] %vm3120_vm10, %v3750_v63 }
 0x255   : > { %v4094_v23 = vadd.f32 %v2909_v14, %v1704_v16  ;;  %v2988_v33 = vadd.f32 %v4092_v43, %v5184_v57  ;;  %v3205_v58 = vadd.f32 %v3204_v21, %v3203_v8  ;;  %v3303_v34 = vsel %vm1071_vm7, %v3247_v2, 0.0 }
 0x256   : > { %v2991_v37 = vadd.f32 %v4093_v18, %v5184_v57  ;;  %v3755_v36 = vpack.c.bf16 %v2990_v45, %v2990_v45  ;;  %v3304_v15 = vadd.f32 %v3303_v34, %v3302_v25  ;;  %v3252_v44 = vmul.f32 %v2990_v45, %v2990_v45 }
 0x257   : > { %v2989_v17 = vadd.f32 %v4094_v23, %v5184_v57  ;;  %v3753_v19 = vpack.c.bf16 %v2988_v33, %v2988_v33  ;;  %v3208_v38 = vsel %vm1071_vm7, %v2988_v33, 0.0  ;;  %v3207_v49 = vadd.f32 %v3206_v51, %v3205_v58 }
 0x258   : > { %3151 = vst.msk [vmem:[%s5191_s13 + $0x78] sm:$0xf] %vm3120_vm10, %v3755_v36  ;;  %v3250_v41 = vmul.f32 %v2988_v33, %v2988_v33  ;;  %v3756_v60 = vpack.c.bf16 %v2991_v37, %v2991_v37  ;;  %v3307_v57 = vsel %vm1071_vm7, %v3249_v42, 0.0  ;;  %v3306_v59 = vadd.f32 %v3305_v0, %v3304_v15 }
 0x259   : > { %3149 = vst.msk [vmem:[%s5191_s13 + $0x70] sm:$0xf] %vm3120_vm10, %v3753_v19  ;;  %v3754_v11 = vpack.c.bf16 %v2989_v17, %v2989_v17  ;;  %v3209_v50 = vadd.f32 %v3208_v38, %v3207_v49  ;;  %v3210_v32 = vsel %vm1071_vm7, %v2989_v17, 0.0  ;;  %v3251_v29 = vmul.f32 %v2989_v17, %v2989_v17 }
 0x25a   : > { %v3309_v5 = vsel %vm1071_vm7, %v3250_v41, 0.0  ;;  %3152 = vst.msk [vmem:[%s5191_s13 + $0x7c] sm:$0xf] %vm3120_vm10, %v3756_v60  ;;  %v3308_v35 = vadd.f32 %v3307_v57, %v3306_v59  ;;  %v3212_v27 = vsel %vm1071_vm7, %v2990_v45, 0.0  ;;  %v3253_v28 = vmul.f32 %v2991_v37, %v2991_v37 }
 0x25b   : > { %3150 = vst.msk [vmem:[%s5191_s13 + $0x74] sm:$0xf] %vm3120_vm10, %v3754_v11  ;;  %v3211_v47 = vadd.f32 %v3210_v32, %v3209_v50  ;;  %v3311_v6 = vsel %vm1071_vm7, %v3251_v29, 0.0  ;;  %v3214_v13 = vsel %vm1071_vm7, %v2991_v37, 0.0  ;;  %v3313_v40 = vsel %vm1071_vm7, %v3252_v44, 0.0 }
 0x25c   : > { %v3310_v48 = vadd.f32 %v3309_v5, %v3308_v35  ;;  %v3315_v31 = vsel %vm1071_vm7, %v3253_v28, 0.0 }
 0x25d   : > { %v3213_v22 = vadd.f32 %v3212_v27, %v3211_v47 }
 0x25e   : > { %v3312_v55 = vadd.f32 %v3311_v6, %v3310_v48 }
 0x25f   : > { %v3215_v30 = vadd.f32 %v3214_v13, %v3213_v22 }
 0x260   : > { %v3314_v24 = vadd.f32 %v3313_v40, %v3312_v55 }
 0x261   : > { %v3216_v4 = vrot.slane %v3215_v30, 4 }
 0x262   : > { %v3316_v61 = vadd.f32 %v3315_v31, %v3314_v24 }
 0x263   : > { %v3217_v7 = vadd.f32 %v3216_v4, %v3215_v30 }
 0x264   : > { %v3317_v62 = vrot.slane %v3316_v61, 4 }
 0x265   : > { %v3218_v1 = vrot.slane %v3217_v7, 2 }
 0x266   : > { %v3318_v46 = vadd.f32 %v3317_v62, %v3316_v61 }
 0x267   : > { %v3219_v26 = vadd.f32 %v3218_v1, %v3217_v7 }
 0x268   : > { %v3319_v52 = vrot.slane %v3318_v46, 2 }
 0x269   : > { %v3220_v53 = vrot.slane %v3219_v26, 1 }
 0x26a   : > { %v3320_v10 = vadd.f32 %v3319_v52, %v3318_v46 }
 0x26b   : > { %v3221_v20 = vadd.f32 %v3220_v53, %v3219_v26 }
 0x26c   : > { %v3321_v3 = vrot.slane %v3320_v10, 1 }
 0x26e   : > { %v3322_v54 = vadd.f32 %v3321_v3, %v3320_v10 }
 0x270   : > { %v3324_v12 = vsel %vm867_vm4, %v3221_v20, %v3322_v54 }
 0x271   : > { %3326 = vst.msk [vmem:[%s485_s16] sm:$0x3] %vm3325_vm11, %v3324_v12 }
 0x272 PF: > { %s19_s3 = sadd.s32 1, %s4322_s3   ;;  %s5382_s26 = smov %s4318_s27 }
 0x273   : > { %p16_p5 = scmp.ge.s32.totalorder %s19_s3, 4   ;;  %s5383_s27 = smov %s5385_s28 }
 0x275   :  { %18 = sbr.rel (!%p16_p5) target bundleno = 2 (0x2), region = 103 }

</bundles_post_ra>
